<compile_context>
chip_gen: v7x
topology: tpu7x:2x2x1
jax: 0.10.0
libtpu: 0.0.40
codegen_flags: <defaults>
</compile_context>

<pallas_src>
import functools

import jax
import jax.numpy as jnp
from jax import lax
from jax.experimental import pallas as pl
from jax.experimental.pallas import tpu as pltpu


# ----------------------------- GRU cell math ------------------------------ #
def _gru_cell(gi, gh, h, H):
    """PyTorch GRU cell, gates ordered [r, z, n].

    gi = x @ W_ih + b_ih (hoisted, precomputed), gh = h @ W_hh + b_hh.
    """
    r = jax.nn.sigmoid(gi[:, 0:H] + gh[:, 0:H])
    z = jax.nn.sigmoid(gi[:, H:2 * H] + gh[:, H:2 * H])
    n = jnp.tanh(gi[:, 2 * H:3 * H] + r * gh[:, 2 * H:3 * H])
    return (1.0 - z) * n + z * h


# ------------------ fused bidirectional encoder + latent ------------------- #
def _encoder_latent_kernel(gi_f_ref, gi_b_ref,
                           w_hh_f_ref, b_hh_f_ref, w_hh_b_ref, b_hh_b_ref,
                           w_lat_ref, b_lat_ref, eps_ref,
                           z_ref, hf_ref, *, S, B, H, L):
    w_hh_f = w_hh_f_ref[...]
    b_hh_f = b_hh_f_ref[...]
    w_hh_b = w_hh_b_ref[...]
    b_hh_b = b_hh_b_ref[...]

    def step(t, carry):
        h_f, h_b = carry
        gi_fwd = gi_f_ref[t]              # [B, 3H]  forward dir, time t
        gi_bwd = gi_b_ref[S - 1 - t]      # [B, 3H]  backward dir, time S-1-t
        gh_f = jnp.dot(h_f, w_hh_f, preferred_element_type=jnp.float32) + b_hh_f
        gh_b = jnp.dot(h_b, w_hh_b, preferred_element_type=jnp.float32) + b_hh_b
        return (_gru_cell(gi_fwd, gh_f, h_f, H),
                _gru_cell(gi_bwd, gh_b, h_b, H))

    h0 = jnp.zeros((B, H), jnp.float32)
    h_f, h_b = lax.fori_loop(0, S, step, (h0, h0), unroll=True)

    # decoder init hidden = forward-direction final hidden (hidden_states[::2])
    hf_ref[...] = h_f

    # VAE latent head: [mean | logvar] = cat(h_f, h_b) @ W_lat + b_lat
    ml = (jnp.dot(h_f, w_lat_ref[0:H, :], preferred_element_type=jnp.float32)
          + jnp.dot(h_b, w_lat_ref[H:2 * H, :], preferred_element_type=jnp.float32)
          + b_lat_ref[...])
    mean = ml[:, 0:L]
    logvar = ml[:, L:2 * L]
    z_ref[...] = mean + eps_ref[...] * jnp.exp(0.5 * logvar)


def run_encoder_latent(gi_f, gi_b, w_hh_f, b_hh_f, w_hh_b, b_hh_b,
                       w_lat, b_lat, eps):
    S, B, H3 = gi_f.shape
    H = H3 // 3
    L = eps.shape[1]
    kernel = functools.partial(_encoder_latent_kernel, S=S, B=B, H=H, L=L)
    z, h_f = pl.pallas_call(
        kernel,
        out_shape=(jax.ShapeDtypeStruct((B, L), jnp.float32),
                   jax.ShapeDtypeStruct((B, H), jnp.float32)),
    )(gi_f, gi_b, w_hh_f, b_hh_f, w_hh_b, b_hh_b, w_lat, b_lat, eps)
    return z, h_f


# ------------------------ greedy decoder kernel ---------------------------- #
def _decoder_kernel(z_ref, h0_ref, w_ih_ref, b_ih_ref, w_hh_ref, b_hh_ref,
                    w_out_ref, b_out_ref, emb_ref,
                    logits_ref, sym_ref, *, T, B, E, L, H, V, sos_idx):
    w_hh = w_hh_ref[...]
    b_hh = b_hh_ref[...]
    w_out = w_out_ref[...]
    b_out = b_out_ref[...]

    # Fold the output embedding table and the step-invariant latent z into
    # gate space (computed once):
    #   gi_t = emb(y_{t-1}) @ W_ih[:E] + z @ W_ih[E:E+L] + b_ih
    t_gates = jnp.dot(emb_ref[...], w_ih_ref[0:E, :],
                      preferred_element_type=jnp.float32)                 # [V, 3H]
    gi_z = (jnp.dot(z_ref[...], w_ih_ref[E:E + L, :],
                    preferred_element_type=jnp.float32) + b_ih_ref[...])  # [B, 3H]

    iota0 = lax.broadcasted_iota(jnp.int32, (B, V), 1)
    sos_onehot = (iota0 == sos_idx).astype(jnp.float32)                   # [B, V]
    gi0 = jnp.dot(sos_onehot, t_gates, preferred_element_type=jnp.float32) + gi_z

    def step(t, carry):
        h, gi = carry
        gh = jnp.dot(h, w_hh, preferred_element_type=jnp.float32) + b_hh
        h_new = _gru_cell(gi, gh, h, H)

        logits = jnp.dot(h_new, w_out,
                         preferred_element_type=jnp.float32) + b_out      # [B, V]
        logits_ref[t] = logits

        # greedy argmax (first max wins, like torch.topk(1))
        m = jnp.max(logits, axis=-1, keepdims=True)
        iota = lax.broadcasted_iota(jnp.int32, logits.shape, 1)
        idx = jnp.min(jnp.where(logits == m, iota, V),
                      axis=-1, keepdims=True)                             # [B, 1]
        sym_ref[t] = idx

        onehot = (iota == idx).astype(jnp.float32)                        # [B, V]
        gi_next = jnp.dot(onehot, t_gates,
                          preferred_element_type=jnp.float32) + gi_z
        return (h_new, gi_next)

    lax.fori_loop(0, T, step, (h0_ref[...], gi0), unroll=True)


def run_decoder(z, h0, w_ih, b_ih, w_hh, b_hh, w_out, b_out, emb_out,
                max_gen_len, sos_idx):
    B, L = z.shape
    H = w_hh.shape[0]
    V, E = emb_out.shape
    kernel = functools.partial(_decoder_kernel, T=max_gen_len, B=B, E=E, L=L,
                               H=H, V=V, sos_idx=sos_idx)
    logits, symbols = pl.pallas_call(
        kernel,
        out_shape=(jax.ShapeDtypeStruct((max_gen_len, B, V), jnp.float32),
                   jax.ShapeDtypeStruct((max_gen_len, B, 1), jnp.int32)),
    )(z, h0, w_ih, b_ih, w_hh, b_hh, w_out, b_out, emb_out)
    return logits, symbols


# ------------------------------ full forward ------------------------------- #
def rnnvae_forward(params, seq, eps, max_gen_len, sos_idx):
    """seq: int32 [B, S]. Returns (token_logits [B,T,V], symbols [B,T,1])."""
    B, S = seq.shape
    E = params["emb_in"].shape[1]
    H = params["enc_w_hh_f"].shape[0]

    # input embedding (eval-mode dropout = identity), time-major & flattened
    seq_emb = jnp.take(params["emb_in"], seq, axis=0)                     # [B, S, E]
    x = jnp.transpose(seq_emb, (1, 0, 2)).reshape(S * B, E)               # [S*B, E]

    # hoisted encoder input projection for BOTH directions in one matmul
    w_ih_fb = jnp.concatenate([params["enc_w_ih_f"], params["enc_w_ih_b"]], axis=1)
    b_ih_fb = jnp.concatenate([params["enc_b_ih_f"], params["enc_b_ih_b"]], axis=1)
    gi_all = jnp.dot(x, w_ih_fb, preferred_element_type=jnp.float32) + b_ih_fb
    gi_f = gi_all[:, 0:3 * H].reshape(S, B, 3 * H)
    gi_b = gi_all[:, 3 * H:6 * H].reshape(S, B, 3 * H)

    # stacked latent head: [mean | logvar]
    w_lat = jnp.concatenate([params["w_mean"], params["w_logvar"]], axis=1)   # [2H, 2L]
    b_lat = jnp.concatenate([params["b_mean"], params["b_logvar"]], axis=1)   # [1, 2L]

    # fused bidirectional GRU encoder + VAE reparameterization (one pallas_call)
    z, h_f = run_encoder_latent(gi_f, gi_b,
                                params["enc_w_hh_f"], params["enc_b_hh_f"],
                                params["enc_w_hh_b"], params["enc_b_hh_b"],
                                w_lat, b_lat, eps)

    # greedy free-running decoder (one pallas_call); hidden init = fwd final h
    logits_tbv, sym_tb1 = run_decoder(z, h_f,
                                      params["dec_w_ih"], params["dec_b_ih"],
                                      params["dec_w_hh"], params["dec_b_hh"],
                                      params["w_out"], params["b_out"],
                                      params["emb_out"], max_gen_len, sos_idx)

    token_logits = jnp.transpose(logits_tbv, (1, 0, 2))                   # [B, T, V]
    symbols = jnp.transpose(sym_tb1, (1, 0, 2))                           # [B, T, 1]
    return token_logits, symbols


# --------------------------- deterministic params -------------------------- #
def init_params(key, vocab_size, symbol_size, E, H, L):
    ks = list(jax.random.split(key, 24))
    kit = iter(ks)
    s = 1.0 / jnp.sqrt(jnp.float32(H))

    def u(shape, scale):
        return jax.random.uniform(next(kit), shape, jnp.float32, -scale, scale)

    p = {
        "emb_in": u((vocab_size, E), 0.1),
        "emb_out": u((symbol_size, E), 0.1),
        # encoder GRU, forward direction (weights stored [in, 3H])
        "enc_w_ih_f": u((E, 3 * H), s), "enc_w_hh_f": u((H, 3 * H), s),
        "enc_b_ih_f": u((1, 3 * H), s), "enc_b_hh_f": u((1, 3 * H), s),
        # encoder GRU, backward direction
        "enc_w_ih_b": u((E, 3 * H), s), "enc_w_hh_b": u((H, 3 * H), s),
        "enc_b_ih_b": u((1, 3 * H), s), "enc_b_hh_b": u((1, 3 * H), s),
        # hidden_to_mean / hidden_to_logvar (in = 2H)
        "w_mean": u((2 * H, L), s), "b_mean": u((1, L), s),
        "w_logvar": u((2 * H, L), s), "b_logvar": u((1, L), s),
        # decoder GRU (input = E + L)
        "dec_w_ih": u((E + L, 3 * H), s), "dec_w_hh": u((H, 3 * H), s),
        "dec_b_ih": u((1, 3 * H), s), "dec_b_hh": u((1, 3 * H), s),
        # output projection
        "w_out": u((H, symbol_size), s), "b_out": u((1, symbol_size), s),
    }
    return p


# --------------------------------- main ------------------------------------ #
if __name__ == "__main__":
    B, S = 2, 8
    E, H, L = 32, 32, 16
    VOCAB, SYMBOL = 50, 20
    MAX_GEN_LEN = 6
    SOS_IDX = 1

    root = jax.random.PRNGKey(0)
    k_par, k_seq, k_eps = jax.random.split(root, 3)

    params = init_params(k_par, VOCAB, SYMBOL, E, H, L)
    seq = jax.random.randint(k_seq, (B, S), 0, VOCAB, dtype=jnp.int32)
    eps = jax.random.normal(k_eps, (B, L), dtype=jnp.float32)   # ~ torch.randn

    token_logits, symbols = jax.jit(
        functools.partial(rnnvae_forward, max_gen_len=MAX_GEN_LEN, sos_idx=SOS_IDX)
    )(params, seq, eps)
    jax.block_until_ready(token_logits)
    jax.block_until_ready(symbols)

    assert token_logits.shape == (B, MAX_GEN_LEN, SYMBOL)
    assert symbols.shape == (B, MAX_GEN_LEN, 1)
    assert symbols.dtype == jnp.int32
    print("KERNEL_OK")
</pallas_src>

<mosaic_0001>
module attributes {stable_mosaic.version = 11 : i64} {
  func.func @_decoder_kernel(%arg0: memref<2x16xf32, #tpu.memory_space<vmem>>, %arg1: memref<2x32xf32, #tpu.memory_space<vmem>>, %arg2: memref<48x96xf32, #tpu.memory_space<vmem>>, %arg3: memref<1x96xf32, #tpu.memory_space<vmem>>, %arg4: memref<32x96xf32, #tpu.memory_space<vmem>>, %arg5: memref<1x96xf32, #tpu.memory_space<vmem>>, %arg6: memref<32x20xf32, #tpu.memory_space<vmem>>, %arg7: memref<1x20xf32, #tpu.memory_space<vmem>>, %arg8: memref<20x32xf32, #tpu.memory_space<vmem>>, %arg9: memref<6x2x20xf32, #tpu.memory_space<vmem>>, %arg10: memref<6x2x1xi32, #tpu.memory_space<vmem>>) attributes {dimension_semantics = [], scalar_prefetch = 0 : i64, scratch_operands = 0 : i64, tpu.core_type = #tpu.core_type<tc>} {
    %c0 = arith.constant 0 : index
    %c0_0 = arith.constant 0 : index
    %0 = vector.load %arg4[%c0, %c0_0] : memref<32x96xf32, #tpu.memory_space<vmem>>, vector<32x96xf32>
    %c0_1 = arith.constant 0 : index
    %c0_2 = arith.constant 0 : index
    %1 = vector.load %arg5[%c0_1, %c0_2] : memref<1x96xf32, #tpu.memory_space<vmem>>, vector<1x96xf32>
    %c0_3 = arith.constant 0 : index
    %c0_4 = arith.constant 0 : index
    %2 = vector.load %arg6[%c0_3, %c0_4] : memref<32x20xf32, #tpu.memory_space<vmem>>, vector<32x20xf32>
    %c0_5 = arith.constant 0 : index
    %c0_6 = arith.constant 0 : index
    %3 = vector.load %arg7[%c0_5, %c0_6] : memref<1x20xf32, #tpu.memory_space<vmem>>, vector<1x20xf32>
    %c0_7 = arith.constant 0 : index
    %c0_8 = arith.constant 0 : index
    %4 = vector.load %arg8[%c0_7, %c0_8] : memref<20x32xf32, #tpu.memory_space<vmem>>, vector<20x32xf32>
    %c0_9 = arith.constant 0 : index
    %c0_10 = arith.constant 0 : index
    %5 = vector.load %arg2[%c0_9, %c0_10] : memref<48x96xf32, #tpu.memory_space<vmem>>, vector<32x96xf32>
    %cst = arith.constant dense<0.000000e+00> : vector<20x96xf32>
    %6 = tpu.matmul %4, %5, %cst {dimension_numbers = #tpu.dot_dimension_numbers<[1], [0], [0], [1], [0, 0, 1, 1], [], []>} : vector<20x32xf32>, vector<32x96xf32>, vector<20x96xf32> -> vector<20x96xf32>
    %c0_11 = arith.constant 0 : index
    %c0_12 = arith.constant 0 : index
    %7 = vector.load %arg0[%c0_11, %c0_12] : memref<2x16xf32, #tpu.memory_space<vmem>>, vector<2x16xf32>
    %c32 = arith.constant 32 : index
    %c0_13 = arith.constant 0 : index
    %8 = vector.load %arg2[%c32, %c0_13] : memref<48x96xf32, #tpu.memory_space<vmem>>, vector<16x96xf32>
    %cst_14 = arith.constant dense<0.000000e+00> : vector<2x96xf32>
    %9 = tpu.matmul %7, %8, %cst_14 {dimension_numbers = #tpu.dot_dimension_numbers<[1], [0], [0], [1], [0, 0, 1, 1], [], []>} : vector<2x16xf32>, vector<16x96xf32>, vector<2x96xf32> -> vector<2x96xf32>
    %c0_15 = arith.constant 0 : index
    %c0_16 = arith.constant 0 : index
    %10 = vector.load %arg3[%c0_15, %c0_16] : memref<1x96xf32, #tpu.memory_space<vmem>>, vector<1x96xf32>
    %11 = vector.broadcast %10 : vector<1x96xf32> to vector<2x96xf32>
    %12 = arith.addf %9, %11 : vector<2x96xf32>
    %13 = tpu.iota {dimensions = array<i32: 1>} : vector<2x20xi32>
    %c1_i32 = arith.constant 1 : i32
    %14 = vector.broadcast %c1_i32 : i32 to vector<2x20xi32>
    %15 = arith.cmpi eq, %13, %14 : vector<2x20xi32>
    %16 = arith.extui %15 : vector<2x20xi1> to vector<2x20xi32>
    %17 = arith.sitofp %16 : vector<2x20xi32> to vector<2x20xf32>
    %cst_17 = arith.constant dense<0.000000e+00> : vector<2x96xf32>
    %18 = tpu.matmul %17, %6, %cst_17 {dimension_numbers = #tpu.dot_dimension_numbers<[1], [0], [0], [1], [0, 0, 1, 1], [], []>} : vector<2x20xf32>, vector<20x96xf32>, vector<2x96xf32> -> vector<2x96xf32>
    %19 = arith.addf %18, %12 : vector<2x96xf32>
    %c0_18 = arith.constant 0 : index
    %c0_19 = arith.constant 0 : index
    %20 = vector.load %arg1[%c0_18, %c0_19] : memref<2x32xf32, #tpu.memory_space<vmem>>, vector<2x32xf32>
    %c0_i32 = arith.constant 0 : i32
    %cst_20 = arith.constant dense<0.000000e+00> : vector<2x96xf32>
    %21 = tpu.matmul %20, %0, %cst_20 {dimension_numbers = #tpu.dot_dimension_numbers<[1], [0], [0], [1], [0, 0, 1, 1], [], []>} : vector<2x32xf32>, vector<32x96xf32>, vector<2x96xf32> -> vector<2x96xf32>
    %22 = vector.broadcast %1 : vector<1x96xf32> to vector<2x96xf32>
    %23 = arith.addf %21, %22 : vector<2x96xf32>
    %24 = vector.extract_strided_slice %19 {offsets = [0, 0], sizes = [2, 32], strides = [1, 1]} : vector<2x96xf32> to vector<2x32xf32>
    %25 = vector.extract_strided_slice %23 {offsets = [0, 0], sizes = [2, 32], strides = [1, 1]} : vector<2x96xf32> to vector<2x32xf32>
    %26 = arith.addf %24, %25 : vector<2x32xf32>
    %27 = arith.negf %26 : vector<2x32xf32>
    %28 = math.exp %27 : vector<2x32xf32>
    %cst_21 = arith.constant 1.000000e+00 : f32
    %29 = vector.broadcast %cst_21 : f32 to vector<2x32xf32>
    %30 = arith.addf %29, %28 : vector<2x32xf32>
    %31 = arith.divf %29, %30 : vector<2x32xf32>
    %32 = vector.extract_strided_slice %19 {offsets = [0, 32], sizes = [2, 32], strides = [1, 1]} : vector<2x96xf32> to vector<2x32xf32>
    %33 = vector.extract_strided_slice %23 {offsets = [0, 32], sizes = [2, 32], strides = [1, 1]} : vector<2x96xf32> to vector<2x32xf32>
    %34 = arith.addf %32, %33 : vector<2x32xf32>
    %35 = arith.negf %34 : vector<2x32xf32>
    %36 = math.exp %35 : vector<2x32xf32>
    %cst_22 = arith.constant 1.000000e+00 : f32
    %37 = vector.broadcast %cst_22 : f32 to vector<2x32xf32>
    %38 = arith.addf %37, %36 : vector<2x32xf32>
    %39 = arith.divf %37, %38 : vector<2x32xf32>
    %40 = vector.extract_strided_slice %19 {offsets = [0, 64], sizes = [2, 32], strides = [1, 1]} : vector<2x96xf32> to vector<2x32xf32>
    %41 = vector.extract_strided_slice %23 {offsets = [0, 64], sizes = [2, 32], strides = [1, 1]} : vector<2x96xf32> to vector<2x32xf32>
    %42 = arith.mulf %31, %41 : vector<2x32xf32>
    %43 = arith.addf %40, %42 : vector<2x32xf32>
    %44 = math.tanh %43 : vector<2x32xf32>
    %cst_23 = arith.constant 1.000000e+00 : f32
    %45 = vector.broadcast %cst_23 : f32 to vector<2x32xf32>
    %46 = arith.subf %45, %39 : vector<2x32xf32>
    %47 = arith.mulf %46, %44 : vector<2x32xf32>
    %48 = arith.mulf %39, %20 : vector<2x32xf32>
    %49 = arith.addf %47, %48 : vector<2x32xf32>
    %cst_24 = arith.constant dense<0.000000e+00> : vector<2x20xf32>
    %50 = tpu.matmul %49, %2, %cst_24 {dimension_numbers = #tpu.dot_dimension_numbers<[1], [0], [0], [1], [0, 0, 1, 1], [], []>} : vector<2x32xf32>, vector<32x20xf32>, vector<2x20xf32> -> vector<2x20xf32>
    %51 = vector.broadcast %3 : vector<1x20xf32> to vector<2x20xf32>
    %52 = arith.addf %50, %51 : vector<2x20xf32>
    %53 = arith.index_cast %c0_i32 : i32 to index
    %c0_25 = arith.constant 0 : index
    %c0_26 = arith.constant 0 : index
    %54 = vector.load %arg9[%53, %c0_25, %c0_26] : memref<6x2x20xf32, #tpu.memory_space<vmem>>, vector<1x2x20xf32>
    %55 = vector.shape_cast %54 : vector<1x2x20xf32> to vector<2x20xf32>
    %56 = vector.shape_cast %52 : vector<2x20xf32> to vector<1x2x20xf32>
    tpu.vector_store %arg9[%53, %c0_25, %c0_26], %56 {strides = array<i32>} : memref<6x2x20xf32, #tpu.memory_space<vmem>>, vector<1x2x20xf32>,
    %cst_27 = arith.constant dense<0xFF800000> : vector<2xf32>
    %57 = vector.multi_reduction <maximumf>, %52, %cst_27 [1] : vector<2x20xf32> to vector<2xf32>
    %58 = vector.shape_cast %57 : vector<2xf32> to vector<2x1xf32>
    %59 = tpu.iota {dimensions = array<i32: 1>} : vector<2x20xi32>
    %60 = vector.broadcast %58 : vector<2x1xf32> to vector<2x20xf32>
    %61 = arith.cmpf oeq, %52, %60 : vector<2x20xf32>
    %c20_i32 = arith.constant 20 : i32
    %62 = vector.broadcast %c20_i32 : i32 to vector<2x20xi32>
    %63 = arith.select %61, %59, %62 : vector<2x20xi1>, vector<2x20xi32>
    %cst_28 = arith.constant dense<2147483647> : vector<2xi32>
    %64 = vector.multi_reduction <minsi>, %63, %cst_28 [1] : vector<2x20xi32> to vector<2xi32>
    %65 = vector.shape_cast %64 : vector<2xi32> to vector<2x1xi32>
    %66 = arith.index_cast %c0_i32 : i32 to index
    %c0_29 = arith.constant 0 : index
    %c0_30 = arith.constant 0 : index
    %67 = vector.load %arg10[%66, %c0_29, %c0_30] : memref<6x2x1xi32, #tpu.memory_space<vmem>>, vector<1x2x1xi32>
    %68 = vector.shape_cast %67 : vector<1x2x1xi32> to vector<2x1xi32>
    %69 = vector.shape_cast %65 : vector<2x1xi32> to vector<1x2x1xi32>
    tpu.vector_store %arg10[%66, %c0_29, %c0_30], %69 {strides = array<i32>} : memref<6x2x1xi32, #tpu.memory_space<vmem>>, vector<1x2x1xi32>,
    %70 = vector.broadcast %65 : vector<2x1xi32> to vector<2x20xi32>
    %71 = arith.cmpi eq, %59, %70 : vector<2x20xi32>
    %72 = arith.extui %71 : vector<2x20xi1> to vector<2x20xi32>
    %73 = arith.sitofp %72 : vector<2x20xi32> to vector<2x20xf32>
    %cst_31 = arith.constant dense<0.000000e+00> : vector<2x96xf32>
    %74 = tpu.matmul %73, %6, %cst_31 {dimension_numbers = #tpu.dot_dimension_numbers<[1], [0], [0], [1], [0, 0, 1, 1], [], []>} : vector<2x20xf32>, vector<20x96xf32>, vector<2x96xf32> -> vector<2x96xf32>
    %75 = arith.addf %74, %12 : vector<2x96xf32>
    %c1_i32_32 = arith.constant 1 : i32
    %cst_33 = arith.constant dense<0.000000e+00> : vector<2x96xf32>
    %76 = tpu.matmul %49, %0, %cst_33 {dimension_numbers = #tpu.dot_dimension_numbers<[1], [0], [0], [1], [0, 0, 1, 1], [], []>} : vector<2x32xf32>, vector<32x96xf32>, vector<2x96xf32> -> vector<2x96xf32>
    %77 = vector.broadcast %1 : vector<1x96xf32> to vector<2x96xf32>
    %78 = arith.addf %76, %77 : vector<2x96xf32>
    %79 = vector.extract_strided_slice %75 {offsets = [0, 0], sizes = [2, 32], strides = [1, 1]} : vector<2x96xf32> to vector<2x32xf32>
    %80 = vector.extract_strided_slice %78 {offsets = [0, 0], sizes = [2, 32], strides = [1, 1]} : vector<2x96xf32> to vector<2x32xf32>
    %81 = arith.addf %79, %80 : vector<2x32xf32>
    %82 = arith.negf %81 : vector<2x32xf32>
    %83 = math.exp %82 : vector<2x32xf32>
    %cst_34 = arith.constant 1.000000e+00 : f32
    %84 = vector.broadcast %cst_34 : f32 to vector<2x32xf32>
    %85 = arith.addf %84, %83 : vector<2x32xf32>
    %86 = arith.divf %84, %85 : vector<2x32xf32>
    %87 = vector.extract_strided_slice %75 {offsets = [0, 32], sizes = [2, 32], strides = [1, 1]} : vector<2x96xf32> to vector<2x32xf32>
    %88 = vector.extract_strided_slice %78 {offsets = [0, 32], sizes = [2, 32], strides = [1, 1]} : vector<2x96xf32> to vector<2x32xf32>
    %89 = arith.addf %87, %88 : vector<2x32xf32>
    %90 = arith.negf %89 : vector<2x32xf32>
    %91 = math.exp %90 : vector<2x32xf32>
    %cst_35 = arith.constant 1.000000e+00 : f32
    %92 = vector.broadcast %cst_35 : f32 to vector<2x32xf32>
    %93 = arith.addf %92, %91 : vector<2x32xf32>
    %94 = arith.divf %92, %93 : vector<2x32xf32>
    %95 = vector.extract_strided_slice %75 {offsets = [0, 64], sizes = [2, 32], strides = [1, 1]} : vector<2x96xf32> to vector<2x32xf32>
    %96 = vector.extract_strided_slice %78 {offsets = [0, 64], sizes = [2, 32], strides = [1, 1]} : vector<2x96xf32> to vector<2x32xf32>
    %97 = arith.mulf %86, %96 : vector<2x32xf32>
    %98 = arith.addf %95, %97 : vector<2x32xf32>
    %99 = math.tanh %98 : vector<2x32xf32>
    %cst_36 = arith.constant 1.000000e+00 : f32
    %100 = vector.broadcast %cst_36 : f32 to vector<2x32xf32>
    %101 = arith.subf %100, %94 : vector<2x32xf32>
    %102 = arith.mulf %101, %99 : vector<2x32xf32>
    %103 = arith.mulf %94, %49 : vector<2x32xf32>
    %104 = arith.addf %102, %103 : vector<2x32xf32>
    %cst_37 = arith.constant dense<0.000000e+00> : vector<2x20xf32>
    %105 = tpu.matmul %104, %2, %cst_37 {dimension_numbers = #tpu.dot_dimension_numbers<[1], [0], [0], [1], [0, 0, 1, 1], [], []>} : vector<2x32xf32>, vector<32x20xf32>, vector<2x20xf32> -> vector<2x20xf32>
    %106 = vector.broadcast %3 : vector<1x20xf32> to vector<2x20xf32>
    %107 = arith.addf %105, %106 : vector<2x20xf32>
    %108 = arith.index_cast %c1_i32_32 : i32 to index
    %c0_38 = arith.constant 0 : index
    %c0_39 = arith.constant 0 : index
    %109 = vector.load %arg9[%108, %c0_38, %c0_39] : memref<6x2x20xf32, #tpu.memory_space<vmem>>, vector<1x2x20xf32>
    %110 = vector.shape_cast %109 : vector<1x2x20xf32> to vector<2x20xf32>
    %111 = vector.shape_cast %107 : vector<2x20xf32> to vector<1x2x20xf32>
    tpu.vector_store %arg9[%108, %c0_38, %c0_39], %111 {strides = array<i32>} : memref<6x2x20xf32, #tpu.memory_space<vmem>>, vector<1x2x20xf32>,
    %cst_40 = arith.constant dense<0xFF800000> : vector<2xf32>
    %112 = vector.multi_reduction <maximumf>, %107, %cst_40 [1] : vector<2x20xf32> to vector<2xf32>
    %113 = vector.shape_cast %112 : vector<2xf32> to vector<2x1xf32>
    %114 = tpu.iota {dimensions = array<i32: 1>} : vector<2x20xi32>
    %115 = vector.broadcast %113 : vector<2x1xf32> to vector<2x20xf32>
    %116 = arith.cmpf oeq, %107, %115 : vector<2x20xf32>
    %c20_i32_41 = arith.constant 20 : i32
    %117 = vector.broadcast %c20_i32_41 : i32 to vector<2x20xi32>
    %118 = arith.select %116, %114, %117 : vector<2x20xi1>, vector<2x20xi32>
    %cst_42 = arith.constant dense<2147483647> : vector<2xi32>
    %119 = vector.multi_reduction <minsi>, %118, %cst_42 [1] : vector<2x20xi32> to vector<2xi32>
    %120 = vector.shape_cast %119 : vector<2xi32> to vector<2x1xi32>
    %121 = arith.index_cast %c1_i32_32 : i32 to index
    %c0_43 = arith.constant 0 : index
    %c0_44 = arith.constant 0 : index
    %122 = vector.load %arg10[%121, %c0_43, %c0_44] : memref<6x2x1xi32, #tpu.memory_space<vmem>>, vector<1x2x1xi32>
    %123 = vector.shape_cast %122 : vector<1x2x1xi32> to vector<2x1xi32>
    %124 = vector.shape_cast %120 : vector<2x1xi32> to vector<1x2x1xi32>
    tpu.vector_store %arg10[%121, %c0_43, %c0_44], %124 {strides = array<i32>} : memref<6x2x1xi32, #tpu.memory_space<vmem>>, vector<1x2x1xi32>,
    %125 = vector.broadcast %120 : vector<2x1xi32> to vector<2x20xi32>
    %126 = arith.cmpi eq, %114, %125 : vector<2x20xi32>
    %127 = arith.extui %126 : vector<2x20xi1> to vector<2x20xi32>
    %128 = arith.sitofp %127 : vector<2x20xi32> to vector<2x20xf32>
    %cst_45 = arith.constant dense<0.000000e+00> : vector<2x96xf32>
    %129 = tpu.matmul %128, %6, %cst_45 {dimension_numbers = #tpu.dot_dimension_numbers<[1], [0], [0], [1], [0, 0, 1, 1], [], []>} : vector<2x20xf32>, vector<20x96xf32>, vector<2x96xf32> -> vector<2x96xf32>
    %130 = arith.addf %129, %12 : vector<2x96xf32>
    %c2_i32 = arith.constant 2 : i32
    %cst_46 = arith.constant dense<0.000000e+00> : vector<2x96xf32>
    %131 = tpu.matmul %104, %0, %cst_46 {dimension_numbers = #tpu.dot_dimension_numbers<[1], [0], [0], [1], [0, 0, 1, 1], [], []>} : vector<2x32xf32>, vector<32x96xf32>, vector<2x96xf32> -> vector<2x96xf32>
    %132 = vector.broadcast %1 : vector<1x96xf32> to vector<2x96xf32>
    %133 = arith.addf %131, %132 : vector<2x96xf32>
    %134 = vector.extract_strided_slice %130 {offsets = [0, 0], sizes = [2, 32], strides = [1, 1]} : vector<2x96xf32> to vector<2x32xf32>
    %135 = vector.extract_strided_slice %133 {offsets = [0, 0], sizes = [2, 32], strides = [1, 1]} : vector<2x96xf32> to vector<2x32xf32>
    %136 = arith.addf %134, %135 : vector<2x32xf32>
    %137 = arith.negf %136 : vector<2x32xf32>
    %138 = math.exp %137 : vector<2x32xf32>
    %cst_47 = arith.constant 1.000000e+00 : f32
    %139 = vector.broadcast %cst_47 : f32 to vector<2x32xf32>
    %140 = arith.addf %139, %138 : vector<2x32xf32>
    %141 = arith.divf %139, %140 : vector<2x32xf32>
    %142 = vector.extract_strided_slice %130 {offsets = [0, 32], sizes = [2, 32], strides = [1, 1]} : vector<2x96xf32> to vector<2x32xf32>
    %143 = vector.extract_strided_slice %133 {offsets = [0, 32], sizes = [2, 32], strides = [1, 1]} : vector<2x96xf32> to vector<2x32xf32>
    %144 = arith.addf %142, %143 : vector<2x32xf32>
    %145 = arith.negf %144 : vector<2x32xf32>
    %146 = math.exp %145 : vector<2x32xf32>
    %cst_48 = arith.constant 1.000000e+00 : f32
    %147 = vector.broadcast %cst_48 : f32 to vector<2x32xf32>
    %148 = arith.addf %147, %146 : vector<2x32xf32>
    %149 = arith.divf %147, %148 : vector<2x32xf32>
    %150 = vector.extract_strided_slice %130 {offsets = [0, 64], sizes = [2, 32], strides = [1, 1]} : vector<2x96xf32> to vector<2x32xf32>
    %151 = vector.extract_strided_slice %133 {offsets = [0, 64], sizes = [2, 32], strides = [1, 1]} : vector<2x96xf32> to vector<2x32xf32>
    %152 = arith.mulf %141, %151 : vector<2x32xf32>
    %153 = arith.addf %150, %152 : vector<2x32xf32>
    %154 = math.tanh %153 : vector<2x32xf32>
    %cst_49 = arith.constant 1.000000e+00 : f32
    %155 = vector.broadcast %cst_49 : f32 to vector<2x32xf32>
    %156 = arith.subf %155, %149 : vector<2x32xf32>
    %157 = arith.mulf %156, %154 : vector<2x32xf32>
    %158 = arith.mulf %149, %104 : vector<2x32xf32>
    %159 = arith.addf %157, %158 : vector<2x32xf32>
    %cst_50 = arith.constant dense<0.000000e+00> : vector<2x20xf32>
    %160 = tpu.matmul %159, %2, %cst_50 {dimension_numbers = #tpu.dot_dimension_numbers<[1], [0], [0], [1], [0, 0, 1, 1], [], []>} : vector<2x32xf32>, vector<32x20xf32>, vector<2x20xf32> -> vector<2x20xf32>
    %161 = vector.broadcast %3 : vector<1x20xf32> to vector<2x20xf32>
    %162 = arith.addf %160, %161 : vector<2x20xf32>
    %163 = arith.index_cast %c2_i32 : i32 to index
    %c0_51 = arith.constant 0 : index
    %c0_52 = arith.constant 0 : index
    %164 = vector.load %arg9[%163, %c0_51, %c0_52] : memref<6x2x20xf32, #tpu.memory_space<vmem>>, vector<1x2x20xf32>
    %165 = vector.shape_cast %164 : vector<1x2x20xf32> to vector<2x20xf32>
    %166 = vector.shape_cast %162 : vector<2x20xf32> to vector<1x2x20xf32>
    tpu.vector_store %arg9[%163, %c0_51, %c0_52], %166 {strides = array<i32>} : memref<6x2x20xf32, #tpu.memory_space<vmem>>, vector<1x2x20xf32>,
    %cst_53 = arith.constant dense<0xFF800000> : vector<2xf32>
    %167 = vector.multi_reduction <maximumf>, %162, %cst_53 [1] : vector<2x20xf32> to vector<2xf32>
    %168 = vector.shape_cast %167 : vector<2xf32> to vector<2x1xf32>
    %169 = tpu.iota {dimensions = array<i32: 1>} : vector<2x20xi32>
    %170 = vector.broadcast %168 : vector<2x1xf32> to vector<2x20xf32>
    %171 = arith.cmpf oeq, %162, %170 : vector<2x20xf32>
    %c20_i32_54 = arith.constant 20 : i32
    %172 = vector.broadcast %c20_i32_54 : i32 to vector<2x20xi32>
    %173 = arith.select %171, %169, %172 : vector<2x20xi1>, vector<2x20xi32>
    %cst_55 = arith.constant dense<2147483647> : vector<2xi32>
    %174 = vector.multi_reduction <minsi>, %173, %cst_55 [1] : vector<2x20xi32> to vector<2xi32>
    %175 = vector.shape_cast %174 : vector<2xi32> to vector<2x1xi32>
    %176 = arith.index_cast %c2_i32 : i32 to index
    %c0_56 = arith.constant 0 : index
    %c0_57 = arith.constant 0 : index
    %177 = vector.load %arg10[%176, %c0_56, %c0_57] : memref<6x2x1xi32, #tpu.memory_space<vmem>>, vector<1x2x1xi32>
    %178 = vector.shape_cast %177 : vector<1x2x1xi32> to vector<2x1xi32>
    %179 = vector.shape_cast %175 : vector<2x1xi32> to vector<1x2x1xi32>
    tpu.vector_store %arg10[%176, %c0_56, %c0_57], %179 {strides = array<i32>} : memref<6x2x1xi32, #tpu.memory_space<vmem>>, vector<1x2x1xi32>,
    %180 = vector.broadcast %175 : vector<2x1xi32> to vector<2x20xi32>
    %181 = arith.cmpi eq, %169, %180 : vector<2x20xi32>
    %182 = arith.extui %181 : vector<2x20xi1> to vector<2x20xi32>
    %183 = arith.sitofp %182 : vector<2x20xi32> to vector<2x20xf32>
    %cst_58 = arith.constant dense<0.000000e+00> : vector<2x96xf32>
    %184 = tpu.matmul %183, %6, %cst_58 {dimension_numbers = #tpu.dot_dimension_numbers<[1], [0], [0], [1], [0, 0, 1, 1], [], []>} : vector<2x20xf32>, vector<20x96xf32>, vector<2x96xf32> -> vector<2x96xf32>
    %185 = arith.addf %184, %12 : vector<2x96xf32>
    %c3_i32 = arith.constant 3 : i32
    %cst_59 = arith.constant dense<0.000000e+00> : vector<2x96xf32>
    %186 = tpu.matmul %159, %0, %cst_59 {dimension_numbers = #tpu.dot_dimension_numbers<[1], [0], [0], [1], [0, 0, 1, 1], [], []>} : vector<2x32xf32>, vector<32x96xf32>, vector<2x96xf32> -> vector<2x96xf32>
    %187 = vector.broadcast %1 : vector<1x96xf32> to vector<2x96xf32>
    %188 = arith.addf %186, %187 : vector<2x96xf32>
    %189 = vector.extract_strided_slice %185 {offsets = [0, 0], sizes = [2, 32], strides = [1, 1]} : vector<2x96xf32> to vector<2x32xf32>
    %190 = vector.extract_strided_slice %188 {offsets = [0, 0], sizes = [2, 32], strides = [1, 1]} : vector<2x96xf32> to vector<2x32xf32>
    %191 = arith.addf %189, %190 : vector<2x32xf32>
    %192 = arith.negf %191 : vector<2x32xf32>
    %193 = math.exp %192 : vector<2x32xf32>
    %cst_60 = arith.constant 1.000000e+00 : f32
    %194 = vector.broadcast %cst_60 : f32 to vector<2x32xf32>
    %195 = arith.addf %194, %193 : vector<2x32xf32>
    %196 = arith.divf %194, %195 : vector<2x32xf32>
    %197 = vector.extract_strided_slice %185 {offsets = [0, 32], sizes = [2, 32], strides = [1, 1]} : vector<2x96xf32> to vector<2x32xf32>
    %198 = vector.extract_strided_slice %188 {offsets = [0, 32], sizes = [2, 32], strides = [1, 1]} : vector<2x96xf32> to vector<2x32xf32>
    %199 = arith.addf %197, %198 : vector<2x32xf32>
    %200 = arith.negf %199 : vector<2x32xf32>
    %201 = math.exp %200 : vector<2x32xf32>
    %cst_61 = arith.constant 1.000000e+00 : f32
    %202 = vector.broadcast %cst_61 : f32 to vector<2x32xf32>
    %203 = arith.addf %202, %201 : vector<2x32xf32>
    %204 = arith.divf %202, %203 : vector<2x32xf32>
    %205 = vector.extract_strided_slice %185 {offsets = [0, 64], sizes = [2, 32], strides = [1, 1]} : vector<2x96xf32> to vector<2x32xf32>
    %206 = vector.extract_strided_slice %188 {offsets = [0, 64], sizes = [2, 32], strides = [1, 1]} : vector<2x96xf32> to vector<2x32xf32>
    %207 = arith.mulf %196, %206 : vector<2x32xf32>
    %208 = arith.addf %205, %207 : vector<2x32xf32>
    %209 = math.tanh %208 : vector<2x32xf32>
    %cst_62 = arith.constant 1.000000e+00 : f32
    %210 = vector.broadcast %cst_62 : f32 to vector<2x32xf32>
    %211 = arith.subf %210, %204 : vector<2x32xf32>
    %212 = arith.mulf %211, %209 : vector<2x32xf32>
    %213 = arith.mulf %204, %159 : vector<2x32xf32>
    %214 = arith.addf %212, %213 : vector<2x32xf32>
    %cst_63 = arith.constant dense<0.000000e+00> : vector<2x20xf32>
    %215 = tpu.matmul %214, %2, %cst_63 {dimension_numbers = #tpu.dot_dimension_numbers<[1], [0], [0], [1], [0, 0, 1, 1], [], []>} : vector<2x32xf32>, vector<32x20xf32>, vector<2x20xf32> -> vector<2x20xf32>
    %216 = vector.broadcast %3 : vector<1x20xf32> to vector<2x20xf32>
    %217 = arith.addf %215, %216 : vector<2x20xf32>
    %218 = arith.index_cast %c3_i32 : i32 to index
    %c0_64 = arith.constant 0 : index
    %c0_65 = arith.constant 0 : index
    %219 = vector.load %arg9[%218, %c0_64, %c0_65] : memref<6x2x20xf32, #tpu.memory_space<vmem>>, vector<1x2x20xf32>
    %220 = vector.shape_cast %219 : vector<1x2x20xf32> to vector<2x20xf32>
    %221 = vector.shape_cast %217 : vector<2x20xf32> to vector<1x2x20xf32>
    tpu.vector_store %arg9[%218, %c0_64, %c0_65], %221 {strides = array<i32>} : memref<6x2x20xf32, #tpu.memory_space<vmem>>, vector<1x2x20xf32>,
    %cst_66 = arith.constant dense<0xFF800000> : vector<2xf32>
    %222 = vector.multi_reduction <maximumf>, %217, %cst_66 [1] : vector<2x20xf32> to vector<2xf32>
    %223 = vector.shape_cast %222 : vector<2xf32> to vector<2x1xf32>
    %224 = tpu.iota {dimensions = array<i32: 1>} : vector<2x20xi32>
    %225 = vector.broadcast %223 : vector<2x1xf32> to vector<2x20xf32>
    %226 = arith.cmpf oeq, %217, %225 : vector<2x20xf32>
    %c20_i32_67 = arith.constant 20 : i32
    %227 = vector.broadcast %c20_i32_67 : i32 to vector<2x20xi32>
    %228 = arith.select %226, %224, %227 : vector<2x20xi1>, vector<2x20xi32>
    %cst_68 = arith.constant dense<2147483647> : vector<2xi32>
    %229 = vector.multi_reduction <minsi>, %228, %cst_68 [1] : vector<2x20xi32> to vector<2xi32>
    %230 = vector.shape_cast %229 : vector<2xi32> to vector<2x1xi32>
    %231 = arith.index_cast %c3_i32 : i32 to index
    %c0_69 = arith.constant 0 : index
    %c0_70 = arith.constant 0 : index
    %232 = vector.load %arg10[%231, %c0_69, %c0_70] : memref<6x2x1xi32, #tpu.memory_space<vmem>>, vector<1x2x1xi32>
    %233 = vector.shape_cast %232 : vector<1x2x1xi32> to vector<2x1xi32>
    %234 = vector.shape_cast %230 : vector<2x1xi32> to vector<1x2x1xi32>
    tpu.vector_store %arg10[%231, %c0_69, %c0_70], %234 {strides = array<i32>} : memref<6x2x1xi32, #tpu.memory_space<vmem>>, vector<1x2x1xi32>,
    %235 = vector.broadcast %230 : vector<2x1xi32> to vector<2x20xi32>
    %236 = arith.cmpi eq, %224, %235 : vector<2x20xi32>
    %237 = arith.extui %236 : vector<2x20xi1> to vector<2x20xi32>
    %238 = arith.sitofp %237 : vector<2x20xi32> to vector<2x20xf32>
    %cst_71 = arith.constant dense<0.000000e+00> : vector<2x96xf32>
    %239 = tpu.matmul %238, %6, %cst_71 {dimension_numbers = #tpu.dot_dimension_numbers<[1], [0], [0], [1], [0, 0, 1, 1], [], []>} : vector<2x20xf32>, vector<20x96xf32>, vector<2x96xf32> -> vector<2x96xf32>
    %240 = arith.addf %239, %12 : vector<2x96xf32>
    %c4_i32 = arith.constant 4 : i32
    %cst_72 = arith.constant dense<0.000000e+00> : vector<2x96xf32>
    %241 = tpu.matmul %214, %0, %cst_72 {dimension_numbers = #tpu.dot_dimension_numbers<[1], [0], [0], [1], [0, 0, 1, 1], [], []>} : vector<2x32xf32>, vector<32x96xf32>, vector<2x96xf32> -> vector<2x96xf32>
    %242 = vector.broadcast %1 : vector<1x96xf32> to vector<2x96xf32>
    %243 = arith.addf %241, %242 : vector<2x96xf32>
    %244 = vector.extract_strided_slice %240 {offsets = [0, 0], sizes = [2, 32], strides = [1, 1]} : vector<2x96xf32> to vector<2x32xf32>
    %245 = vector.extract_strided_slice %243 {offsets = [0, 0], sizes = [2, 32], strides = [1, 1]} : vector<2x96xf32> to vector<2x32xf32>
    %246 = arith.addf %244, %245 : vector<2x32xf32>
    %247 = arith.negf %246 : vector<2x32xf32>
    %248 = math.exp %247 : vector<2x32xf32>
    %cst_73 = arith.constant 1.000000e+00 : f32
    %249 = vector.broadcast %cst_73 : f32 to vector<2x32xf32>
    %250 = arith.addf %249, %248 : vector<2x32xf32>
    %251 = arith.divf %249, %250 : vector<2x32xf32>
    %252 = vector.extract_strided_slice %240 {offsets = [0, 32], sizes = [2, 32], strides = [1, 1]} : vector<2x96xf32> to vector<2x32xf32>
    %253 = vector.extract_strided_slice %243 {offsets = [0, 32], sizes = [2, 32], strides = [1, 1]} : vector<2x96xf32> to vector<2x32xf32>
    %254 = arith.addf %252, %253 : vector<2x32xf32>
    %255 = arith.negf %254 : vector<2x32xf32>
    %256 = math.exp %255 : vector<2x32xf32>
    %cst_74 = arith.constant 1.000000e+00 : f32
    %257 = vector.broadcast %cst_74 : f32 to vector<2x32xf32>
    %258 = arith.addf %257, %256 : vector<2x32xf32>
    %259 = arith.divf %257, %258 : vector<2x32xf32>
    %260 = vector.extract_strided_slice %240 {offsets = [0, 64], sizes = [2, 32], strides = [1, 1]} : vector<2x96xf32> to vector<2x32xf32>
    %261 = vector.extract_strided_slice %243 {offsets = [0, 64], sizes = [2, 32], strides = [1, 1]} : vector<2x96xf32> to vector<2x32xf32>
    %262 = arith.mulf %251, %261 : vector<2x32xf32>
    %263 = arith.addf %260, %262 : vector<2x32xf32>
    %264 = math.tanh %263 : vector<2x32xf32>
    %cst_75 = arith.constant 1.000000e+00 : f32
    %265 = vector.broadcast %cst_75 : f32 to vector<2x32xf32>
    %266 = arith.subf %265, %259 : vector<2x32xf32>
    %267 = arith.mulf %266, %264 : vector<2x32xf32>
    %268 = arith.mulf %259, %214 : vector<2x32xf32>
    %269 = arith.addf %267, %268 : vector<2x32xf32>
    %cst_76 = arith.constant dense<0.000000e+00> : vector<2x20xf32>
    %270 = tpu.matmul %269, %2, %cst_76 {dimension_numbers = #tpu.dot_dimension_numbers<[1], [0], [0], [1], [0, 0, 1, 1], [], []>} : vector<2x32xf32>, vector<32x20xf32>, vector<2x20xf32> -> vector<2x20xf32>
    %271 = vector.broadcast %3 : vector<1x20xf32> to vector<2x20xf32>
    %272 = arith.addf %270, %271 : vector<2x20xf32>
    %273 = arith.index_cast %c4_i32 : i32 to index
    %c0_77 = arith.constant 0 : index
    %c0_78 = arith.constant 0 : index
    %274 = vector.load %arg9[%273, %c0_77, %c0_78] : memref<6x2x20xf32, #tpu.memory_space<vmem>>, vector<1x2x20xf32>
    %275 = vector.shape_cast %274 : vector<1x2x20xf32> to vector<2x20xf32>
    %276 = vector.shape_cast %272 : vector<2x20xf32> to vector<1x2x20xf32>
    tpu.vector_store %arg9[%273, %c0_77, %c0_78], %276 {strides = array<i32>} : memref<6x2x20xf32, #tpu.memory_space<vmem>>, vector<1x2x20xf32>,
    %cst_79 = arith.constant dense<0xFF800000> : vector<2xf32>
    %277 = vector.multi_reduction <maximumf>, %272, %cst_79 [1] : vector<2x20xf32> to vector<2xf32>
    %278 = vector.shape_cast %277 : vector<2xf32> to vector<2x1xf32>
    %279 = tpu.iota {dimensions = array<i32: 1>} : vector<2x20xi32>
    %280 = vector.broadcast %278 : vector<2x1xf32> to vector<2x20xf32>
    %281 = arith.cmpf oeq, %272, %280 : vector<2x20xf32>
    %c20_i32_80 = arith.constant 20 : i32
    %282 = vector.broadcast %c20_i32_80 : i32 to vector<2x20xi32>
    %283 = arith.select %281, %279, %282 : vector<2x20xi1>, vector<2x20xi32>
    %cst_81 = arith.constant dense<2147483647> : vector<2xi32>
    %284 = vector.multi_reduction <minsi>, %283, %cst_81 [1] : vector<2x20xi32> to vector<2xi32>
    %285 = vector.shape_cast %284 : vector<2xi32> to vector<2x1xi32>
    %286 = arith.index_cast %c4_i32 : i32 to index
    %c0_82 = arith.constant 0 : index
    %c0_83 = arith.constant 0 : index
    %287 = vector.load %arg10[%286, %c0_82, %c0_83] : memref<6x2x1xi32, #tpu.memory_space<vmem>>, vector<1x2x1xi32>
    %288 = vector.shape_cast %287 : vector<1x2x1xi32> to vector<2x1xi32>
    %289 = vector.shape_cast %285 : vector<2x1xi32> to vector<1x2x1xi32>
    tpu.vector_store %arg10[%286, %c0_82, %c0_83], %289 {strides = array<i32>} : memref<6x2x1xi32, #tpu.memory_space<vmem>>, vector<1x2x1xi32>,
    %290 = vector.broadcast %285 : vector<2x1xi32> to vector<2x20xi32>
    %291 = arith.cmpi eq, %279, %290 : vector<2x20xi32>
    %292 = arith.extui %291 : vector<2x20xi1> to vector<2x20xi32>
    %293 = arith.sitofp %292 : vector<2x20xi32> to vector<2x20xf32>
    %cst_84 = arith.constant dense<0.000000e+00> : vector<2x96xf32>
    %294 = tpu.matmul %293, %6, %cst_84 {dimension_numbers = #tpu.dot_dimension_numbers<[1], [0], [0], [1], [0, 0, 1, 1], [], []>} : vector<2x20xf32>, vector<20x96xf32>, vector<2x96xf32> -> vector<2x96xf32>
    %295 = arith.addf %294, %12 : vector<2x96xf32>
    %c5_i32 = arith.constant 5 : i32
    %cst_85 = arith.constant dense<0.000000e+00> : vector<2x96xf32>
    %296 = tpu.matmul %269, %0, %cst_85 {dimension_numbers = #tpu.dot_dimension_numbers<[1], [0], [0], [1], [0, 0, 1, 1], [], []>} : vector<2x32xf32>, vector<32x96xf32>, vector<2x96xf32> -> vector<2x96xf32>
    %297 = vector.broadcast %1 : vector<1x96xf32> to vector<2x96xf32>
    %298 = arith.addf %296, %297 : vector<2x96xf32>
    %299 = vector.extract_strided_slice %295 {offsets = [0, 0], sizes = [2, 32], strides = [1, 1]} : vector<2x96xf32> to vector<2x32xf32>
    %300 = vector.extract_strided_slice %298 {offsets = [0, 0], sizes = [2, 32], strides = [1, 1]} : vector<2x96xf32> to vector<2x32xf32>
    %301 = arith.addf %299, %300 : vector<2x32xf32>
    %302 = arith.negf %301 : vector<2x32xf32>
    %303 = math.exp %302 : vector<2x32xf32>
    %cst_86 = arith.constant 1.000000e+00 : f32
    %304 = vector.broadcast %cst_86 : f32 to vector<2x32xf32>
    %305 = arith.addf %304, %303 : vector<2x32xf32>
    %306 = arith.divf %304, %305 : vector<2x32xf32>
    %307 = vector.extract_strided_slice %295 {offsets = [0, 32], sizes = [2, 32], strides = [1, 1]} : vector<2x96xf32> to vector<2x32xf32>
    %308 = vector.extract_strided_slice %298 {offsets = [0, 32], sizes = [2, 32], strides = [1, 1]} : vector<2x96xf32> to vector<2x32xf32>
    %309 = arith.addf %307, %308 : vector<2x32xf32>
    %310 = arith.negf %309 : vector<2x32xf32>
    %311 = math.exp %310 : vector<2x32xf32>
    %cst_87 = arith.constant 1.000000e+00 : f32
    %312 = vector.broadcast %cst_87 : f32 to vector<2x32xf32>
    %313 = arith.addf %312, %311 : vector<2x32xf32>
    %314 = arith.divf %312, %313 : vector<2x32xf32>
    %315 = vector.extract_strided_slice %295 {offsets = [0, 64], sizes = [2, 32], strides = [1, 1]} : vector<2x96xf32> to vector<2x32xf32>
    %316 = vector.extract_strided_slice %298 {offsets = [0, 64], sizes = [2, 32], strides = [1, 1]} : vector<2x96xf32> to vector<2x32xf32>
    %317 = arith.mulf %306, %316 : vector<2x32xf32>
    %318 = arith.addf %315, %317 : vector<2x32xf32>
    %319 = math.tanh %318 : vector<2x32xf32>
    %cst_88 = arith.constant 1.000000e+00 : f32
    %320 = vector.broadcast %cst_88 : f32 to vector<2x32xf32>
    %321 = arith.subf %320, %314 : vector<2x32xf32>
    %322 = arith.mulf %321, %319 : vector<2x32xf32>
    %323 = arith.mulf %314, %269 : vector<2x32xf32>
    %324 = arith.addf %322, %323 : vector<2x32xf32>
    %cst_89 = arith.constant dense<0.000000e+00> : vector<2x20xf32>
    %325 = tpu.matmul %324, %2, %cst_89 {dimension_numbers = #tpu.dot_dimension_numbers<[1], [0], [0], [1], [0, 0, 1, 1], [], []>} : vector<2x32xf32>, vector<32x20xf32>, vector<2x20xf32> -> vector<2x20xf32>
    %326 = vector.broadcast %3 : vector<1x20xf32> to vector<2x20xf32>
    %327 = arith.addf %325, %326 : vector<2x20xf32>
    %328 = arith.index_cast %c5_i32 : i32 to index
    %c0_90 = arith.constant 0 : index
    %c0_91 = arith.constant 0 : index
    %329 = vector.load %arg9[%328, %c0_90, %c0_91] : memref<6x2x20xf32, #tpu.memory_space<vmem>>, vector<1x2x20xf32>
    %330 = vector.shape_cast %329 : vector<1x2x20xf32> to vector<2x20xf32>
    %331 = vector.shape_cast %327 : vector<2x20xf32> to vector<1x2x20xf32>
    tpu.vector_store %arg9[%328, %c0_90, %c0_91], %331 {strides = array<i32>} : memref<6x2x20xf32, #tpu.memory_space<vmem>>, vector<1x2x20xf32>,
    %cst_92 = arith.constant dense<0xFF800000> : vector<2xf32>
    %332 = vector.multi_reduction <maximumf>, %327, %cst_92 [1] : vector<2x20xf32> to vector<2xf32>
    %333 = vector.shape_cast %332 : vector<2xf32> to vector<2x1xf32>
    %334 = tpu.iota {dimensions = array<i32: 1>} : vector<2x20xi32>
    %335 = vector.broadcast %333 : vector<2x1xf32> to vector<2x20xf32>
    %336 = arith.cmpf oeq, %327, %335 : vector<2x20xf32>
    %c20_i32_93 = arith.constant 20 : i32
    %337 = vector.broadcast %c20_i32_93 : i32 to vector<2x20xi32>
    %338 = arith.select %336, %334, %337 : vector<2x20xi1>, vector<2x20xi32>
    %cst_94 = arith.constant dense<2147483647> : vector<2xi32>
    %339 = vector.multi_reduction <minsi>, %338, %cst_94 [1] : vector<2x20xi32> to vector<2xi32>
    %340 = vector.shape_cast %339 : vector<2xi32> to vector<2x1xi32>
    %341 = arith.index_cast %c5_i32 : i32 to index
    %c0_95 = arith.constant 0 : index
    %c0_96 = arith.constant 0 : index
    %342 = vector.load %arg10[%341, %c0_95, %c0_96] : memref<6x2x1xi32, #tpu.memory_space<vmem>>, vector<1x2x1xi32>
    %343 = vector.shape_cast %342 : vector<1x2x1xi32> to vector<2x1xi32>
    %344 = vector.shape_cast %340 : vector<2x1xi32> to vector<1x2x1xi32>
    tpu.vector_store %arg10[%341, %c0_95, %c0_96], %344 {strides = array<i32>} : memref<6x2x1xi32, #tpu.memory_space<vmem>>, vector<1x2x1xi32>,
    %345 = vector.broadcast %340 : vector<2x1xi32> to vector<2x20xi32>
    %346 = arith.cmpi eq, %334, %345 : vector<2x20xi32>
    %347 = arith.extui %346 : vector<2x20xi1> to vector<2x20xi32>
    %348 = arith.sitofp %347 : vector<2x20xi32> to vector<2x20xf32>
    %cst_97 = arith.constant dense<0.000000e+00> : vector<2x96xf32>
    %349 = tpu.matmul %348, %6, %cst_97 {dimension_numbers = #tpu.dot_dimension_numbers<[1], [0], [0], [1], [0, 0, 1, 1], [], []>} : vector<2x20xf32>, vector<20x96xf32>, vector<2x96xf32> -> vector<2x96xf32>
    %350 = arith.addf %349, %12 : vector<2x96xf32>
    %c6_i32 = arith.constant 6 : i32
    return
  }
}

module attributes {stable_mosaic.version = 11 : i64} {
  func.func @_encoder_latent_kernel(%arg0: memref<8x2x96xf32, #tpu.memory_space<vmem>>, %arg1: memref<8x2x96xf32, #tpu.memory_space<vmem>>, %arg2: memref<32x96xf32, #tpu.memory_space<vmem>>, %arg3: memref<1x96xf32, #tpu.memory_space<vmem>>, %arg4: memref<32x96xf32, #tpu.memory_space<vmem>>, %arg5: memref<1x96xf32, #tpu.memory_space<vmem>>, %arg6: memref<64x32xf32, #tpu.memory_space<vmem>>, %arg7: memref<1x32xf32, #tpu.memory_space<vmem>>, %arg8: memref<2x16xf32, #tpu.memory_space<vmem>>, %arg9: memref<2x16xf32, #tpu.memory_space<vmem>>, %arg10: memref<2x32xf32, #tpu.memory_space<vmem>>) attributes {dimension_semantics = [], scalar_prefetch = 0 : i64, scratch_operands = 0 : i64, tpu.core_type = #tpu.core_type<tc>} {
    %c0 = arith.constant 0 : index
    %c0_0 = arith.constant 0 : index
    %0 = vector.load %arg2[%c0, %c0_0] : memref<32x96xf32, #tpu.memory_space<vmem>>, vector<32x96xf32>
    %c0_1 = arith.constant 0 : index
    %c0_2 = arith.constant 0 : index
    %1 = vector.load %arg3[%c0_1, %c0_2] : memref<1x96xf32, #tpu.memory_space<vmem>>, vector<1x96xf32>
    %c0_3 = arith.constant 0 : index
    %c0_4 = arith.constant 0 : index
    %2 = vector.load %arg4[%c0_3, %c0_4] : memref<32x96xf32, #tpu.memory_space<vmem>>, vector<32x96xf32>
    %c0_5 = arith.constant 0 : index
    %c0_6 = arith.constant 0 : index
    %3 = vector.load %arg5[%c0_5, %c0_6] : memref<1x96xf32, #tpu.memory_space<vmem>>, vector<1x96xf32>
    %cst = arith.constant 0.000000e+00 : f32
    %4 = vector.broadcast %cst : f32 to vector<2x32xf32>
    %c0_i32 = arith.constant 0 : i32
    %5 = arith.index_cast %c0_i32 : i32 to index
    %c0_7 = arith.constant 0 : index
    %c0_8 = arith.constant 0 : index
    %6 = vector.load %arg0[%5, %c0_7, %c0_8] : memref<8x2x96xf32, #tpu.memory_space<vmem>>, vector<1x2x96xf32>
    %7 = vector.shape_cast %6 : vector<1x2x96xf32> to vector<2x96xf32>
    %c7_i32 = arith.constant 7 : i32
    %8 = arith.subi %c7_i32, %c0_i32 : i32
    %9 = arith.index_cast %8 : i32 to index
    %c0_9 = arith.constant 0 : index
    %c0_10 = arith.constant 0 : index
    %10 = vector.load %arg1[%9, %c0_9, %c0_10] : memref<8x2x96xf32, #tpu.memory_space<vmem>>, vector<1x2x96xf32>
    %11 = vector.shape_cast %10 : vector<1x2x96xf32> to vector<2x96xf32>
    %cst_11 = arith.constant dense<0.000000e+00> : vector<2x96xf32>
    %12 = tpu.matmul %4, %0, %cst_11 {dimension_numbers = #tpu.dot_dimension_numbers<[1], [0], [0], [1], [0, 0, 1, 1], [], []>} : vector<2x32xf32>, vector<32x96xf32>, vector<2x96xf32> -> vector<2x96xf32>
    %13 = vector.broadcast %1 : vector<1x96xf32> to vector<2x96xf32>
    %14 = arith.addf %12, %13 : vector<2x96xf32>
    %cst_12 = arith.constant dense<0.000000e+00> : vector<2x96xf32>
    %15 = tpu.matmul %4, %2, %cst_12 {dimension_numbers = #tpu.dot_dimension_numbers<[1], [0], [0], [1], [0, 0, 1, 1], [], []>} : vector<2x32xf32>, vector<32x96xf32>, vector<2x96xf32> -> vector<2x96xf32>
    %16 = vector.broadcast %3 : vector<1x96xf32> to vector<2x96xf32>
    %17 = arith.addf %15, %16 : vector<2x96xf32>
    %18 = vector.extract_strided_slice %7 {offsets = [0, 0], sizes = [2, 32], strides = [1, 1]} : vector<2x96xf32> to vector<2x32xf32>
    %19 = vector.extract_strided_slice %14 {offsets = [0, 0], sizes = [2, 32], strides = [1, 1]} : vector<2x96xf32> to vector<2x32xf32>
    %20 = arith.addf %18, %19 : vector<2x32xf32>
    %21 = arith.negf %20 : vector<2x32xf32>
    %22 = math.exp %21 : vector<2x32xf32>
    %cst_13 = arith.constant 1.000000e+00 : f32
    %23 = vector.broadcast %cst_13 : f32 to vector<2x32xf32>
    %24 = arith.addf %23, %22 : vector<2x32xf32>
    %25 = arith.divf %23, %24 : vector<2x32xf32>
    %26 = vector.extract_strided_slice %7 {offsets = [0, 32], sizes = [2, 32], strides = [1, 1]} : vector<2x96xf32> to vector<2x32xf32>
    %27 = vector.extract_strided_slice %14 {offsets = [0, 32], sizes = [2, 32], strides = [1, 1]} : vector<2x96xf32> to vector<2x32xf32>
    %28 = arith.addf %26, %27 : vector<2x32xf32>
    %29 = arith.negf %28 : vector<2x32xf32>
    %30 = math.exp %29 : vector<2x32xf32>
    %cst_14 = arith.constant 1.000000e+00 : f32
    %31 = vector.broadcast %cst_14 : f32 to vector<2x32xf32>
    %32 = arith.addf %31, %30 : vector<2x32xf32>
    %33 = arith.divf %31, %32 : vector<2x32xf32>
    %34 = vector.extract_strided_slice %7 {offsets = [0, 64], sizes = [2, 32], strides = [1, 1]} : vector<2x96xf32> to vector<2x32xf32>
    %35 = vector.extract_strided_slice %14 {offsets = [0, 64], sizes = [2, 32], strides = [1, 1]} : vector<2x96xf32> to vector<2x32xf32>
    %36 = arith.mulf %25, %35 : vector<2x32xf32>
    %37 = arith.addf %34, %36 : vector<2x32xf32>
    %38 = math.tanh %37 : vector<2x32xf32>
    %cst_15 = arith.constant 1.000000e+00 : f32
    %39 = vector.broadcast %cst_15 : f32 to vector<2x32xf32>
    %40 = arith.subf %39, %33 : vector<2x32xf32>
    %41 = arith.mulf %40, %38 : vector<2x32xf32>
    %42 = arith.mulf %33, %4 : vector<2x32xf32>
    %43 = arith.addf %41, %42 : vector<2x32xf32>
    %44 = vector.extract_strided_slice %11 {offsets = [0, 0], sizes = [2, 32], strides = [1, 1]} : vector<2x96xf32> to vector<2x32xf32>
    %45 = vector.extract_strided_slice %17 {offsets = [0, 0], sizes = [2, 32], strides = [1, 1]} : vector<2x96xf32> to vector<2x32xf32>
    %46 = arith.addf %44, %45 : vector<2x32xf32>
    %47 = arith.negf %46 : vector<2x32xf32>
    %48 = math.exp %47 : vector<2x32xf32>
    %cst_16 = arith.constant 1.000000e+00 : f32
    %49 = vector.broadcast %cst_16 : f32 to vector<2x32xf32>
    %50 = arith.addf %49, %48 : vector<2x32xf32>
    %51 = arith.divf %49, %50 : vector<2x32xf32>
    %52 = vector.extract_strided_slice %11 {offsets = [0, 32], sizes = [2, 32], strides = [1, 1]} : vector<2x96xf32> to vector<2x32xf32>
    %53 = vector.extract_strided_slice %17 {offsets = [0, 32], sizes = [2, 32], strides = [1, 1]} : vector<2x96xf32> to vector<2x32xf32>
    %54 = arith.addf %52, %53 : vector<2x32xf32>
    %55 = arith.negf %54 : vector<2x32xf32>
    %56 = math.exp %55 : vector<2x32xf32>
    %cst_17 = arith.constant 1.000000e+00 : f32
    %57 = vector.broadcast %cst_17 : f32 to vector<2x32xf32>
    %58 = arith.addf %57, %56 : vector<2x32xf32>
    %59 = arith.divf %57, %58 : vector<2x32xf32>
    %60 = vector.extract_strided_slice %11 {offsets = [0, 64], sizes = [2, 32], strides = [1, 1]} : vector<2x96xf32> to vector<2x32xf32>
    %61 = vector.extract_strided_slice %17 {offsets = [0, 64], sizes = [2, 32], strides = [1, 1]} : vector<2x96xf32> to vector<2x32xf32>
    %62 = arith.mulf %51, %61 : vector<2x32xf32>
    %63 = arith.addf %60, %62 : vector<2x32xf32>
    %64 = math.tanh %63 : vector<2x32xf32>
    %cst_18 = arith.constant 1.000000e+00 : f32
    %65 = vector.broadcast %cst_18 : f32 to vector<2x32xf32>
    %66 = arith.subf %65, %59 : vector<2x32xf32>
    %67 = arith.mulf %66, %64 : vector<2x32xf32>
    %68 = arith.mulf %59, %4 : vector<2x32xf32>
    %69 = arith.addf %67, %68 : vector<2x32xf32>
    %c1_i32 = arith.constant 1 : i32
    %70 = arith.index_cast %c1_i32 : i32 to index
    %c0_19 = arith.constant 0 : index
    %c0_20 = arith.constant 0 : index
    %71 = vector.load %arg0[%70, %c0_19, %c0_20] : memref<8x2x96xf32, #tpu.memory_space<vmem>>, vector<1x2x96xf32>
    %72 = vector.shape_cast %71 : vector<1x2x96xf32> to vector<2x96xf32>
    %c7_i32_21 = arith.constant 7 : i32
    %73 = arith.subi %c7_i32_21, %c1_i32 : i32
    %74 = arith.index_cast %73 : i32 to index
    %c0_22 = arith.constant 0 : index
    %c0_23 = arith.constant 0 : index
    %75 = vector.load %arg1[%74, %c0_22, %c0_23] : memref<8x2x96xf32, #tpu.memory_space<vmem>>, vector<1x2x96xf32>
    %76 = vector.shape_cast %75 : vector<1x2x96xf32> to vector<2x96xf32>
    %cst_24 = arith.constant dense<0.000000e+00> : vector<2x96xf32>
    %77 = tpu.matmul %43, %0, %cst_24 {dimension_numbers = #tpu.dot_dimension_numbers<[1], [0], [0], [1], [0, 0, 1, 1], [], []>} : vector<2x32xf32>, vector<32x96xf32>, vector<2x96xf32> -> vector<2x96xf32>
    %78 = vector.broadcast %1 : vector<1x96xf32> to vector<2x96xf32>
    %79 = arith.addf %77, %78 : vector<2x96xf32>
    %cst_25 = arith.constant dense<0.000000e+00> : vector<2x96xf32>
    %80 = tpu.matmul %69, %2, %cst_25 {dimension_numbers = #tpu.dot_dimension_numbers<[1], [0], [0], [1], [0, 0, 1, 1], [], []>} : vector<2x32xf32>, vector<32x96xf32>, vector<2x96xf32> -> vector<2x96xf32>
    %81 = vector.broadcast %3 : vector<1x96xf32> to vector<2x96xf32>
    %82 = arith.addf %80, %81 : vector<2x96xf32>
    %83 = vector.extract_strided_slice %72 {offsets = [0, 0], sizes = [2, 32], strides = [1, 1]} : vector<2x96xf32> to vector<2x32xf32>
    %84 = vector.extract_strided_slice %79 {offsets = [0, 0], sizes = [2, 32], strides = [1, 1]} : vector<2x96xf32> to vector<2x32xf32>
    %85 = arith.addf %83, %84 : vector<2x32xf32>
    %86 = arith.negf %85 : vector<2x32xf32>
    %87 = math.exp %86 : vector<2x32xf32>
    %cst_26 = arith.constant 1.000000e+00 : f32
    %88 = vector.broadcast %cst_26 : f32 to vector<2x32xf32>
    %89 = arith.addf %88, %87 : vector<2x32xf32>
    %90 = arith.divf %88, %89 : vector<2x32xf32>
    %91 = vector.extract_strided_slice %72 {offsets = [0, 32], sizes = [2, 32], strides = [1, 1]} : vector<2x96xf32> to vector<2x32xf32>
    %92 = vector.extract_strided_slice %79 {offsets = [0, 32], sizes = [2, 32], strides = [1, 1]} : vector<2x96xf32> to vector<2x32xf32>
    %93 = arith.addf %91, %92 : vector<2x32xf32>
    %94 = arith.negf %93 : vector<2x32xf32>
    %95 = math.exp %94 : vector<2x32xf32>
    %cst_27 = arith.constant 1.000000e+00 : f32
    %96 = vector.broadcast %cst_27 : f32 to vector<2x32xf32>
    %97 = arith.addf %96, %95 : vector<2x32xf32>
    %98 = arith.divf %96, %97 : vector<2x32xf32>
    %99 = vector.extract_strided_slice %72 {offsets = [0, 64], sizes = [2, 32], strides = [1, 1]} : vector<2x96xf32> to vector<2x32xf32>
    %100 = vector.extract_strided_slice %79 {offsets = [0, 64], sizes = [2, 32], strides = [1, 1]} : vector<2x96xf32> to vector<2x32xf32>
    %101 = arith.mulf %90, %100 : vector<2x32xf32>
    %102 = arith.addf %99, %101 : vector<2x32xf32>
    %103 = math.tanh %102 : vector<2x32xf32>
    %cst_28 = arith.constant 1.000000e+00 : f32
    %104 = vector.broadcast %cst_28 : f32 to vector<2x32xf32>
    %105 = arith.subf %104, %98 : vector<2x32xf32>
    %106 = arith.mulf %105, %103 : vector<2x32xf32>
    %107 = arith.mulf %98, %43 : vector<2x32xf32>
    %108 = arith.addf %106, %107 : vector<2x32xf32>
    %109 = vector.extract_strided_slice %76 {offsets = [0, 0], sizes = [2, 32], strides = [1, 1]} : vector<2x96xf32> to vector<2x32xf32>
    %110 = vector.extract_strided_slice %82 {offsets = [0, 0], sizes = [2, 32], strides = [1, 1]} : vector<2x96xf32> to vector<2x32xf32>
    %111 = arith.addf %109, %110 : vector<2x32xf32>
    %112 = arith.negf %111 : vector<2x32xf32>
    %113 = math.exp %112 : vector<2x32xf32>
    %cst_29 = arith.constant 1.000000e+00 : f32
    %114 = vector.broadcast %cst_29 : f32 to vector<2x32xf32>
    %115 = arith.addf %114, %113 : vector<2x32xf32>
    %116 = arith.divf %114, %115 : vector<2x32xf32>
    %117 = vector.extract_strided_slice %76 {offsets = [0, 32], sizes = [2, 32], strides = [1, 1]} : vector<2x96xf32> to vector<2x32xf32>
    %118 = vector.extract_strided_slice %82 {offsets = [0, 32], sizes = [2, 32], strides = [1, 1]} : vector<2x96xf32> to vector<2x32xf32>
    %119 = arith.addf %117, %118 : vector<2x32xf32>
    %120 = arith.negf %119 : vector<2x32xf32>
    %121 = math.exp %120 : vector<2x32xf32>
    %cst_30 = arith.constant 1.000000e+00 : f32
    %122 = vector.broadcast %cst_30 : f32 to vector<2x32xf32>
    %123 = arith.addf %122, %121 : vector<2x32xf32>
    %124 = arith.divf %122, %123 : vector<2x32xf32>
    %125 = vector.extract_strided_slice %76 {offsets = [0, 64], sizes = [2, 32], strides = [1, 1]} : vector<2x96xf32> to vector<2x32xf32>
    %126 = vector.extract_strided_slice %82 {offsets = [0, 64], sizes = [2, 32], strides = [1, 1]} : vector<2x96xf32> to vector<2x32xf32>
    %127 = arith.mulf %116, %126 : vector<2x32xf32>
    %128 = arith.addf %125, %127 : vector<2x32xf32>
    %129 = math.tanh %128 : vector<2x32xf32>
    %cst_31 = arith.constant 1.000000e+00 : f32
    %130 = vector.broadcast %cst_31 : f32 to vector<2x32xf32>
    %131 = arith.subf %130, %124 : vector<2x32xf32>
    %132 = arith.mulf %131, %129 : vector<2x32xf32>
    %133 = arith.mulf %124, %69 : vector<2x32xf32>
    %134 = arith.addf %132, %133 : vector<2x32xf32>
    %c2_i32 = arith.constant 2 : i32
    %135 = arith.index_cast %c2_i32 : i32 to index
    %c0_32 = arith.constant 0 : index
    %c0_33 = arith.constant 0 : index
    %136 = vector.load %arg0[%135, %c0_32, %c0_33] : memref<8x2x96xf32, #tpu.memory_space<vmem>>, vector<1x2x96xf32>
    %137 = vector.shape_cast %136 : vector<1x2x96xf32> to vector<2x96xf32>
    %c7_i32_34 = arith.constant 7 : i32
    %138 = arith.subi %c7_i32_34, %c2_i32 : i32
    %139 = arith.index_cast %138 : i32 to index
    %c0_35 = arith.constant 0 : index
    %c0_36 = arith.constant 0 : index
    %140 = vector.load %arg1[%139, %c0_35, %c0_36] : memref<8x2x96xf32, #tpu.memory_space<vmem>>, vector<1x2x96xf32>
    %141 = vector.shape_cast %140 : vector<1x2x96xf32> to vector<2x96xf32>
    %cst_37 = arith.constant dense<0.000000e+00> : vector<2x96xf32>
    %142 = tpu.matmul %108, %0, %cst_37 {dimension_numbers = #tpu.dot_dimension_numbers<[1], [0], [0], [1], [0, 0, 1, 1], [], []>} : vector<2x32xf32>, vector<32x96xf32>, vector<2x96xf32> -> vector<2x96xf32>
    %143 = vector.broadcast %1 : vector<1x96xf32> to vector<2x96xf32>
    %144 = arith.addf %142, %143 : vector<2x96xf32>
    %cst_38 = arith.constant dense<0.000000e+00> : vector<2x96xf32>
    %145 = tpu.matmul %134, %2, %cst_38 {dimension_numbers = #tpu.dot_dimension_numbers<[1], [0], [0], [1], [0, 0, 1, 1], [], []>} : vector<2x32xf32>, vector<32x96xf32>, vector<2x96xf32> -> vector<2x96xf32>
    %146 = vector.broadcast %3 : vector<1x96xf32> to vector<2x96xf32>
    %147 = arith.addf %145, %146 : vector<2x96xf32>
    %148 = vector.extract_strided_slice %137 {offsets = [0, 0], sizes = [2, 32], strides = [1, 1]} : vector<2x96xf32> to vector<2x32xf32>
    %149 = vector.extract_strided_slice %144 {offsets = [0, 0], sizes = [2, 32], strides = [1, 1]} : vector<2x96xf32> to vector<2x32xf32>
    %150 = arith.addf %148, %149 : vector<2x32xf32>
    %151 = arith.negf %150 : vector<2x32xf32>
    %152 = math.exp %151 : vector<2x32xf32>
    %cst_39 = arith.constant 1.000000e+00 : f32
    %153 = vector.broadcast %cst_39 : f32 to vector<2x32xf32>
    %154 = arith.addf %153, %152 : vector<2x32xf32>
    %155 = arith.divf %153, %154 : vector<2x32xf32>
    %156 = vector.extract_strided_slice %137 {offsets = [0, 32], sizes = [2, 32], strides = [1, 1]} : vector<2x96xf32> to vector<2x32xf32>
    %157 = vector.extract_strided_slice %144 {offsets = [0, 32], sizes = [2, 32], strides = [1, 1]} : vector<2x96xf32> to vector<2x32xf32>
    %158 = arith.addf %156, %157 : vector<2x32xf32>
    %159 = arith.negf %158 : vector<2x32xf32>
    %160 = math.exp %159 : vector<2x32xf32>
    %cst_40 = arith.constant 1.000000e+00 : f32
    %161 = vector.broadcast %cst_40 : f32 to vector<2x32xf32>
    %162 = arith.addf %161, %160 : vector<2x32xf32>
    %163 = arith.divf %161, %162 : vector<2x32xf32>
    %164 = vector.extract_strided_slice %137 {offsets = [0, 64], sizes = [2, 32], strides = [1, 1]} : vector<2x96xf32> to vector<2x32xf32>
    %165 = vector.extract_strided_slice %144 {offsets = [0, 64], sizes = [2, 32], strides = [1, 1]} : vector<2x96xf32> to vector<2x32xf32>
    %166 = arith.mulf %155, %165 : vector<2x32xf32>
    %167 = arith.addf %164, %166 : vector<2x32xf32>
    %168 = math.tanh %167 : vector<2x32xf32>
    %cst_41 = arith.constant 1.000000e+00 : f32
    %169 = vector.broadcast %cst_41 : f32 to vector<2x32xf32>
    %170 = arith.subf %169, %163 : vector<2x32xf32>
    %171 = arith.mulf %170, %168 : vector<2x32xf32>
    %172 = arith.mulf %163, %108 : vector<2x32xf32>
    %173 = arith.addf %171, %172 : vector<2x32xf32>
    %174 = vector.extract_strided_slice %141 {offsets = [0, 0], sizes = [2, 32], strides = [1, 1]} : vector<2x96xf32> to vector<2x32xf32>
    %175 = vector.extract_strided_slice %147 {offsets = [0, 0], sizes = [2, 32], strides = [1, 1]} : vector<2x96xf32> to vector<2x32xf32>
    %176 = arith.addf %174, %175 : vector<2x32xf32>
    %177 = arith.negf %176 : vector<2x32xf32>
    %178 = math.exp %177 : vector<2x32xf32>
    %cst_42 = arith.constant 1.000000e+00 : f32
    %179 = vector.broadcast %cst_42 : f32 to vector<2x32xf32>
    %180 = arith.addf %179, %178 : vector<2x32xf32>
    %181 = arith.divf %179, %180 : vector<2x32xf32>
    %182 = vector.extract_strided_slice %141 {offsets = [0, 32], sizes = [2, 32], strides = [1, 1]} : vector<2x96xf32> to vector<2x32xf32>
    %183 = vector.extract_strided_slice %147 {offsets = [0, 32], sizes = [2, 32], strides = [1, 1]} : vector<2x96xf32> to vector<2x32xf32>
    %184 = arith.addf %182, %183 : vector<2x32xf32>
    %185 = arith.negf %184 : vector<2x32xf32>
    %186 = math.exp %185 : vector<2x32xf32>
    %cst_43 = arith.constant 1.000000e+00 : f32
    %187 = vector.broadcast %cst_43 : f32 to vector<2x32xf32>
    %188 = arith.addf %187, %186 : vector<2x32xf32>
    %189 = arith.divf %187, %188 : vector<2x32xf32>
    %190 = vector.extract_strided_slice %141 {offsets = [0, 64], sizes = [2, 32], strides = [1, 1]} : vector<2x96xf32> to vector<2x32xf32>
    %191 = vector.extract_strided_slice %147 {offsets = [0, 64], sizes = [2, 32], strides = [1, 1]} : vector<2x96xf32> to vector<2x32xf32>
    %192 = arith.mulf %181, %191 : vector<2x32xf32>
    %193 = arith.addf %190, %192 : vector<2x32xf32>
    %194 = math.tanh %193 : vector<2x32xf32>
    %cst_44 = arith.constant 1.000000e+00 : f32
    %195 = vector.broadcast %cst_44 : f32 to vector<2x32xf32>
    %196 = arith.subf %195, %189 : vector<2x32xf32>
    %197 = arith.mulf %196, %194 : vector<2x32xf32>
    %198 = arith.mulf %189, %134 : vector<2x32xf32>
    %199 = arith.addf %197, %198 : vector<2x32xf32>
    %c3_i32 = arith.constant 3 : i32
    %200 = arith.index_cast %c3_i32 : i32 to index
    %c0_45 = arith.constant 0 : index
    %c0_46 = arith.constant 0 : index
    %201 = vector.load %arg0[%200, %c0_45, %c0_46] : memref<8x2x96xf32, #tpu.memory_space<vmem>>, vector<1x2x96xf32>
    %202 = vector.shape_cast %201 : vector<1x2x96xf32> to vector<2x96xf32>
    %c7_i32_47 = arith.constant 7 : i32
    %203 = arith.subi %c7_i32_47, %c3_i32 : i32
    %204 = arith.index_cast %203 : i32 to index
    %c0_48 = arith.constant 0 : index
    %c0_49 = arith.constant 0 : index
    %205 = vector.load %arg1[%204, %c0_48, %c0_49] : memref<8x2x96xf32, #tpu.memory_space<vmem>>, vector<1x2x96xf32>
    %206 = vector.shape_cast %205 : vector<1x2x96xf32> to vector<2x96xf32>
    %cst_50 = arith.constant dense<0.000000e+00> : vector<2x96xf32>
    %207 = tpu.matmul %173, %0, %cst_50 {dimension_numbers = #tpu.dot_dimension_numbers<[1], [0], [0], [1], [0, 0, 1, 1], [], []>} : vector<2x32xf32>, vector<32x96xf32>, vector<2x96xf32> -> vector<2x96xf32>
    %208 = vector.broadcast %1 : vector<1x96xf32> to vector<2x96xf32>
    %209 = arith.addf %207, %208 : vector<2x96xf32>
    %cst_51 = arith.constant dense<0.000000e+00> : vector<2x96xf32>
    %210 = tpu.matmul %199, %2, %cst_51 {dimension_numbers = #tpu.dot_dimension_numbers<[1], [0], [0], [1], [0, 0, 1, 1], [], []>} : vector<2x32xf32>, vector<32x96xf32>, vector<2x96xf32> -> vector<2x96xf32>
    %211 = vector.broadcast %3 : vector<1x96xf32> to vector<2x96xf32>
    %212 = arith.addf %210, %211 : vector<2x96xf32>
    %213 = vector.extract_strided_slice %202 {offsets = [0, 0], sizes = [2, 32], strides = [1, 1]} : vector<2x96xf32> to vector<2x32xf32>
    %214 = vector.extract_strided_slice %209 {offsets = [0, 0], sizes = [2, 32], strides = [1, 1]} : vector<2x96xf32> to vector<2x32xf32>
    %215 = arith.addf %213, %214 : vector<2x32xf32>
    %216 = arith.negf %215 : vector<2x32xf32>
    %217 = math.exp %216 : vector<2x32xf32>
    %cst_52 = arith.constant 1.000000e+00 : f32
    %218 = vector.broadcast %cst_52 : f32 to vector<2x32xf32>
    %219 = arith.addf %218, %217 : vector<2x32xf32>
    %220 = arith.divf %218, %219 : vector<2x32xf32>
    %221 = vector.extract_strided_slice %202 {offsets = [0, 32], sizes = [2, 32], strides = [1, 1]} : vector<2x96xf32> to vector<2x32xf32>
    %222 = vector.extract_strided_slice %209 {offsets = [0, 32], sizes = [2, 32], strides = [1, 1]} : vector<2x96xf32> to vector<2x32xf32>
    %223 = arith.addf %221, %222 : vector<2x32xf32>
    %224 = arith.negf %223 : vector<2x32xf32>
    %225 = math.exp %224 : vector<2x32xf32>
    %cst_53 = arith.constant 1.000000e+00 : f32
    %226 = vector.broadcast %cst_53 : f32 to vector<2x32xf32>
    %227 = arith.addf %226, %225 : vector<2x32xf32>
    %228 = arith.divf %226, %227 : vector<2x32xf32>
    %229 = vector.extract_strided_slice %202 {offsets = [0, 64], sizes = [2, 32], strides = [1, 1]} : vector<2x96xf32> to vector<2x32xf32>
    %230 = vector.extract_strided_slice %209 {offsets = [0, 64], sizes = [2, 32], strides = [1, 1]} : vector<2x96xf32> to vector<2x32xf32>
    %231 = arith.mulf %220, %230 : vector<2x32xf32>
    %232 = arith.addf %229, %231 : vector<2x32xf32>
    %233 = math.tanh %232 : vector<2x32xf32>
    %cst_54 = arith.constant 1.000000e+00 : f32
    %234 = vector.broadcast %cst_54 : f32 to vector<2x32xf32>
    %235 = arith.subf %234, %228 : vector<2x32xf32>
    %236 = arith.mulf %235, %233 : vector<2x32xf32>
    %237 = arith.mulf %228, %173 : vector<2x32xf32>
    %238 = arith.addf %236, %237 : vector<2x32xf32>
    %239 = vector.extract_strided_slice %206 {offsets = [0, 0], sizes = [2, 32], strides = [1, 1]} : vector<2x96xf32> to vector<2x32xf32>
    %240 = vector.extract_strided_slice %212 {offsets = [0, 0], sizes = [2, 32], strides = [1, 1]} : vector<2x96xf32> to vector<2x32xf32>
    %241 = arith.addf %239, %240 : vector<2x32xf32>
    %242 = arith.negf %241 : vector<2x32xf32>
    %243 = math.exp %242 : vector<2x32xf32>
    %cst_55 = arith.constant 1.000000e+00 : f32
    %244 = vector.broadcast %cst_55 : f32 to vector<2x32xf32>
    %245 = arith.addf %244, %243 : vector<2x32xf32>
    %246 = arith.divf %244, %245 : vector<2x32xf32>
    %247 = vector.extract_strided_slice %206 {offsets = [0, 32], sizes = [2, 32], strides = [1, 1]} : vector<2x96xf32> to vector<2x32xf32>
    %248 = vector.extract_strided_slice %212 {offsets = [0, 32], sizes = [2, 32], strides = [1, 1]} : vector<2x96xf32> to vector<2x32xf32>
    %249 = arith.addf %247, %248 : vector<2x32xf32>
    %250 = arith.negf %249 : vector<2x32xf32>
    %251 = math.exp %250 : vector<2x32xf32>
    %cst_56 = arith.constant 1.000000e+00 : f32
    %252 = vector.broadcast %cst_56 : f32 to vector<2x32xf32>
    %253 = arith.addf %252, %251 : vector<2x32xf32>
    %254 = arith.divf %252, %253 : vector<2x32xf32>
    %255 = vector.extract_strided_slice %206 {offsets = [0, 64], sizes = [2, 32], strides = [1, 1]} : vector<2x96xf32> to vector<2x32xf32>
    %256 = vector.extract_strided_slice %212 {offsets = [0, 64], sizes = [2, 32], strides = [1, 1]} : vector<2x96xf32> to vector<2x32xf32>
    %257 = arith.mulf %246, %256 : vector<2x32xf32>
    %258 = arith.addf %255, %257 : vector<2x32xf32>
    %259 = math.tanh %258 : vector<2x32xf32>
    %cst_57 = arith.constant 1.000000e+00 : f32
    %260 = vector.broadcast %cst_57 : f32 to vector<2x32xf32>
    %261 = arith.subf %260, %254 : vector<2x32xf32>
    %262 = arith.mulf %261, %259 : vector<2x32xf32>
    %263 = arith.mulf %254, %199 : vector<2x32xf32>
    %264 = arith.addf %262, %263 : vector<2x32xf32>
    %c4_i32 = arith.constant 4 : i32
    %265 = arith.index_cast %c4_i32 : i32 to index
    %c0_58 = arith.constant 0 : index
    %c0_59 = arith.constant 0 : index
    %266 = vector.load %arg0[%265, %c0_58, %c0_59] : memref<8x2x96xf32, #tpu.memory_space<vmem>>, vector<1x2x96xf32>
    %267 = vector.shape_cast %266 : vector<1x2x96xf32> to vector<2x96xf32>
    %c7_i32_60 = arith.constant 7 : i32
    %268 = arith.subi %c7_i32_60, %c4_i32 : i32
    %269 = arith.index_cast %268 : i32 to index
    %c0_61 = arith.constant 0 : index
    %c0_62 = arith.constant 0 : index
    %270 = vector.load %arg1[%269, %c0_61, %c0_62] : memref<8x2x96xf32, #tpu.memory_space<vmem>>, vector<1x2x96xf32>
    %271 = vector.shape_cast %270 : vector<1x2x96xf32> to vector<2x96xf32>
    %cst_63 = arith.constant dense<0.000000e+00> : vector<2x96xf32>
    %272 = tpu.matmul %238, %0, %cst_63 {dimension_numbers = #tpu.dot_dimension_numbers<[1], [0], [0], [1], [0, 0, 1, 1], [], []>} : vector<2x32xf32>, vector<32x96xf32>, vector<2x96xf32> -> vector<2x96xf32>
    %273 = vector.broadcast %1 : vector<1x96xf32> to vector<2x96xf32>
    %274 = arith.addf %272, %273 : vector<2x96xf32>
    %cst_64 = arith.constant dense<0.000000e+00> : vector<2x96xf32>
    %275 = tpu.matmul %264, %2, %cst_64 {dimension_numbers = #tpu.dot_dimension_numbers<[1], [0], [0], [1], [0, 0, 1, 1], [], []>} : vector<2x32xf32>, vector<32x96xf32>, vector<2x96xf32> -> vector<2x96xf32>
    %276 = vector.broadcast %3 : vector<1x96xf32> to vector<2x96xf32>
    %277 = arith.addf %275, %276 : vector<2x96xf32>
    %278 = vector.extract_strided_slice %267 {offsets = [0, 0], sizes = [2, 32], strides = [1, 1]} : vector<2x96xf32> to vector<2x32xf32>
    %279 = vector.extract_strided_slice %274 {offsets = [0, 0], sizes = [2, 32], strides = [1, 1]} : vector<2x96xf32> to vector<2x32xf32>
    %280 = arith.addf %278, %279 : vector<2x32xf32>
    %281 = arith.negf %280 : vector<2x32xf32>
    %282 = math.exp %281 : vector<2x32xf32>
    %cst_65 = arith.constant 1.000000e+00 : f32
    %283 = vector.broadcast %cst_65 : f32 to vector<2x32xf32>
    %284 = arith.addf %283, %282 : vector<2x32xf32>
    %285 = arith.divf %283, %284 : vector<2x32xf32>
    %286 = vector.extract_strided_slice %267 {offsets = [0, 32], sizes = [2, 32], strides = [1, 1]} : vector<2x96xf32> to vector<2x32xf32>
    %287 = vector.extract_strided_slice %274 {offsets = [0, 32], sizes = [2, 32], strides = [1, 1]} : vector<2x96xf32> to vector<2x32xf32>
    %288 = arith.addf %286, %287 : vector<2x32xf32>
    %289 = arith.negf %288 : vector<2x32xf32>
    %290 = math.exp %289 : vector<2x32xf32>
    %cst_66 = arith.constant 1.000000e+00 : f32
    %291 = vector.broadcast %cst_66 : f32 to vector<2x32xf32>
    %292 = arith.addf %291, %290 : vector<2x32xf32>
    %293 = arith.divf %291, %292 : vector<2x32xf32>
    %294 = vector.extract_strided_slice %267 {offsets = [0, 64], sizes = [2, 32], strides = [1, 1]} : vector<2x96xf32> to vector<2x32xf32>
    %295 = vector.extract_strided_slice %274 {offsets = [0, 64], sizes = [2, 32], strides = [1, 1]} : vector<2x96xf32> to vector<2x32xf32>
    %296 = arith.mulf %285, %295 : vector<2x32xf32>
    %297 = arith.addf %294, %296 : vector<2x32xf32>
    %298 = math.tanh %297 : vector<2x32xf32>
    %cst_67 = arith.constant 1.000000e+00 : f32
    %299 = vector.broadcast %cst_67 : f32 to vector<2x32xf32>
    %300 = arith.subf %299, %293 : vector<2x32xf32>
    %301 = arith.mulf %300, %298 : vector<2x32xf32>
    %302 = arith.mulf %293, %238 : vector<2x32xf32>
    %303 = arith.addf %301, %302 : vector<2x32xf32>
    %304 = vector.extract_strided_slice %271 {offsets = [0, 0], sizes = [2, 32], strides = [1, 1]} : vector<2x96xf32> to vector<2x32xf32>
    %305 = vector.extract_strided_slice %277 {offsets = [0, 0], sizes = [2, 32], strides = [1, 1]} : vector<2x96xf32> to vector<2x32xf32>
    %306 = arith.addf %304, %305 : vector<2x32xf32>
    %307 = arith.negf %306 : vector<2x32xf32>
    %308 = math.exp %307 : vector<2x32xf32>
    %cst_68 = arith.constant 1.000000e+00 : f32
    %309 = vector.broadcast %cst_68 : f32 to vector<2x32xf32>
    %310 = arith.addf %309, %308 : vector<2x32xf32>
    %311 = arith.divf %309, %310 : vector<2x32xf32>
    %312 = vector.extract_strided_slice %271 {offsets = [0, 32], sizes = [2, 32], strides = [1, 1]} : vector<2x96xf32> to vector<2x32xf32>
    %313 = vector.extract_strided_slice %277 {offsets = [0, 32], sizes = [2, 32], strides = [1, 1]} : vector<2x96xf32> to vector<2x32xf32>
    %314 = arith.addf %312, %313 : vector<2x32xf32>
    %315 = arith.negf %314 : vector<2x32xf32>
    %316 = math.exp %315 : vector<2x32xf32>
    %cst_69 = arith.constant 1.000000e+00 : f32
    %317 = vector.broadcast %cst_69 : f32 to vector<2x32xf32>
    %318 = arith.addf %317, %316 : vector<2x32xf32>
    %319 = arith.divf %317, %318 : vector<2x32xf32>
    %320 = vector.extract_strided_slice %271 {offsets = [0, 64], sizes = [2, 32], strides = [1, 1]} : vector<2x96xf32> to vector<2x32xf32>
    %321 = vector.extract_strided_slice %277 {offsets = [0, 64], sizes = [2, 32], strides = [1, 1]} : vector<2x96xf32> to vector<2x32xf32>
    %322 = arith.mulf %311, %321 : vector<2x32xf32>
    %323 = arith.addf %320, %322 : vector<2x32xf32>
    %324 = math.tanh %323 : vector<2x32xf32>
    %cst_70 = arith.constant 1.000000e+00 : f32
    %325 = vector.broadcast %cst_70 : f32 to vector<2x32xf32>
    %326 = arith.subf %325, %319 : vector<2x32xf32>
    %327 = arith.mulf %326, %324 : vector<2x32xf32>
    %328 = arith.mulf %319, %264 : vector<2x32xf32>
    %329 = arith.addf %327, %328 : vector<2x32xf32>
    %c5_i32 = arith.constant 5 : i32
    %330 = arith.index_cast %c5_i32 : i32 to index
    %c0_71 = arith.constant 0 : index
    %c0_72 = arith.constant 0 : index
    %331 = vector.load %arg0[%330, %c0_71, %c0_72] : memref<8x2x96xf32, #tpu.memory_space<vmem>>, vector<1x2x96xf32>
    %332 = vector.shape_cast %331 : vector<1x2x96xf32> to vector<2x96xf32>
    %c7_i32_73 = arith.constant 7 : i32
    %333 = arith.subi %c7_i32_73, %c5_i32 : i32
    %334 = arith.index_cast %333 : i32 to index
    %c0_74 = arith.constant 0 : index
    %c0_75 = arith.constant 0 : index
    %335 = vector.load %arg1[%334, %c0_74, %c0_75] : memref<8x2x96xf32, #tpu.memory_space<vmem>>, vector<1x2x96xf32>
    %336 = vector.shape_cast %335 : vector<1x2x96xf32> to vector<2x96xf32>
    %cst_76 = arith.constant dense<0.000000e+00> : vector<2x96xf32>
    %337 = tpu.matmul %303, %0, %cst_76 {dimension_numbers = #tpu.dot_dimension_numbers<[1], [0], [0], [1], [0, 0, 1, 1], [], []>} : vector<2x32xf32>, vector<32x96xf32>, vector<2x96xf32> -> vector<2x96xf32>
    %338 = vector.broadcast %1 : vector<1x96xf32> to vector<2x96xf32>
    %339 = arith.addf %337, %338 : vector<2x96xf32>
    %cst_77 = arith.constant dense<0.000000e+00> : vector<2x96xf32>
    %340 = tpu.matmul %329, %2, %cst_77 {dimension_numbers = #tpu.dot_dimension_numbers<[1], [0], [0], [1], [0, 0, 1, 1], [], []>} : vector<2x32xf32>, vector<32x96xf32>, vector<2x96xf32> -> vector<2x96xf32>
    %341 = vector.broadcast %3 : vector<1x96xf32> to vector<2x96xf32>
    %342 = arith.addf %340, %341 : vector<2x96xf32>
    %343 = vector.extract_strided_slice %332 {offsets = [0, 0], sizes = [2, 32], strides = [1, 1]} : vector<2x96xf32> to vector<2x32xf32>
    %344 = vector.extract_strided_slice %339 {offsets = [0, 0], sizes = [2, 32], strides = [1, 1]} : vector<2x96xf32> to vector<2x32xf32>
    %345 = arith.addf %343, %344 : vector<2x32xf32>
    %346 = arith.negf %345 : vector<2x32xf32>
    %347 = math.exp %346 : vector<2x32xf32>
    %cst_78 = arith.constant 1.000000e+00 : f32
    %348 = vector.broadcast %cst_78 : f32 to vector<2x32xf32>
    %349 = arith.addf %348, %347 : vector<2x32xf32>
    %350 = arith.divf %348, %349 : vector<2x32xf32>
    %351 = vector.extract_strided_slice %332 {offsets = [0, 32], sizes = [2, 32], strides = [1, 1]} : vector<2x96xf32> to vector<2x32xf32>
    %352 = vector.extract_strided_slice %339 {offsets = [0, 32], sizes = [2, 32], strides = [1, 1]} : vector<2x96xf32> to vector<2x32xf32>
    %353 = arith.addf %351, %352 : vector<2x32xf32>
    %354 = arith.negf %353 : vector<2x32xf32>
    %355 = math.exp %354 : vector<2x32xf32>
    %cst_79 = arith.constant 1.000000e+00 : f32
    %356 = vector.broadcast %cst_79 : f32 to vector<2x32xf32>
    %357 = arith.addf %356, %355 : vector<2x32xf32>
    %358 = arith.divf %356, %357 : vector<2x32xf32>
    %359 = vector.extract_strided_slice %332 {offsets = [0, 64], sizes = [2, 32], strides = [1, 1]} : vector<2x96xf32> to vector<2x32xf32>
    %360 = vector.extract_strided_slice %339 {offsets = [0, 64], sizes = [2, 32], strides = [1, 1]} : vector<2x96xf32> to vector<2x32xf32>
    %361 = arith.mulf %350, %360 : vector<2x32xf32>
    %362 = arith.addf %359, %361 : vector<2x32xf32>
    %363 = math.tanh %362 : vector<2x32xf32>
    %cst_80 = arith.constant 1.000000e+00 : f32
    %364 = vector.broadcast %cst_80 : f32 to vector<2x32xf32>
    %365 = arith.subf %364, %358 : vector<2x32xf32>
    %366 = arith.mulf %365, %363 : vector<2x32xf32>
    %367 = arith.mulf %358, %303 : vector<2x32xf32>
    %368 = arith.addf %366, %367 : vector<2x32xf32>
    %369 = vector.extract_strided_slice %336 {offsets = [0, 0], sizes = [2, 32], strides = [1, 1]} : vector<2x96xf32> to vector<2x32xf32>
    %370 = vector.extract_strided_slice %342 {offsets = [0, 0], sizes = [2, 32], strides = [1, 1]} : vector<2x96xf32> to vector<2x32xf32>
    %371 = arith.addf %369, %370 : vector<2x32xf32>
    %372 = arith.negf %371 : vector<2x32xf32>
    %373 = math.exp %372 : vector<2x32xf32>
    %cst_81 = arith.constant 1.000000e+00 : f32
    %374 = vector.broadcast %cst_81 : f32 to vector<2x32xf32>
    %375 = arith.addf %374, %373 : vector<2x32xf32>
    %376 = arith.divf %374, %375 : vector<2x32xf32>
    %377 = vector.extract_strided_slice %336 {offsets = [0, 32], sizes = [2, 32], strides = [1, 1]} : vector<2x96xf32> to vector<2x32xf32>
    %378 = vector.extract_strided_slice %342 {offsets = [0, 32], sizes = [2, 32], strides = [1, 1]} : vector<2x96xf32> to vector<2x32xf32>
    %379 = arith.addf %377, %378 : vector<2x32xf32>
    %380 = arith.negf %379 : vector<2x32xf32>
    %381 = math.exp %380 : vector<2x32xf32>
    %cst_82 = arith.constant 1.000000e+00 : f32
    %382 = vector.broadcast %cst_82 : f32 to vector<2x32xf32>
    %383 = arith.addf %382, %381 : vector<2x32xf32>
    %384 = arith.divf %382, %383 : vector<2x32xf32>
    %385 = vector.extract_strided_slice %336 {offsets = [0, 64], sizes = [2, 32], strides = [1, 1]} : vector<2x96xf32> to vector<2x32xf32>
    %386 = vector.extract_strided_slice %342 {offsets = [0, 64], sizes = [2, 32], strides = [1, 1]} : vector<2x96xf32> to vector<2x32xf32>
    %387 = arith.mulf %376, %386 : vector<2x32xf32>
    %388 = arith.addf %385, %387 : vector<2x32xf32>
    %389 = math.tanh %388 : vector<2x32xf32>
    %cst_83 = arith.constant 1.000000e+00 : f32
    %390 = vector.broadcast %cst_83 : f32 to vector<2x32xf32>
    %391 = arith.subf %390, %384 : vector<2x32xf32>
    %392 = arith.mulf %391, %389 : vector<2x32xf32>
    %393 = arith.mulf %384, %329 : vector<2x32xf32>
    %394 = arith.addf %392, %393 : vector<2x32xf32>
    %c6_i32 = arith.constant 6 : i32
    %395 = arith.index_cast %c6_i32 : i32 to index
    %c0_84 = arith.constant 0 : index
    %c0_85 = arith.constant 0 : index
    %396 = vector.load %arg0[%395, %c0_84, %c0_85] : memref<8x2x96xf32, #tpu.memory_space<vmem>>, vector<1x2x96xf32>
    %397 = vector.shape_cast %396 : vector<1x2x96xf32> to vector<2x96xf32>
    %c7_i32_86 = arith.constant 7 : i32
    %398 = arith.subi %c7_i32_86, %c6_i32 : i32
    %399 = arith.index_cast %398 : i32 to index
    %c0_87 = arith.constant 0 : index
    %c0_88 = arith.constant 0 : index
    %400 = vector.load %arg1[%399, %c0_87, %c0_88] : memref<8x2x96xf32, #tpu.memory_space<vmem>>, vector<1x2x96xf32>
    %401 = vector.shape_cast %400 : vector<1x2x96xf32> to vector<2x96xf32>
    %cst_89 = arith.constant dense<0.000000e+00> : vector<2x96xf32>
    %402 = tpu.matmul %368, %0, %cst_89 {dimension_numbers = #tpu.dot_dimension_numbers<[1], [0], [0], [1], [0, 0, 1, 1], [], []>} : vector<2x32xf32>, vector<32x96xf32>, vector<2x96xf32> -> vector<2x96xf32>
    %403 = vector.broadcast %1 : vector<1x96xf32> to vector<2x96xf32>
    %404 = arith.addf %402, %403 : vector<2x96xf32>
    %cst_90 = arith.constant dense<0.000000e+00> : vector<2x96xf32>
    %405 = tpu.matmul %394, %2, %cst_90 {dimension_numbers = #tpu.dot_dimension_numbers<[1], [0], [0], [1], [0, 0, 1, 1], [], []>} : vector<2x32xf32>, vector<32x96xf32>, vector<2x96xf32> -> vector<2x96xf32>
    %406 = vector.broadcast %3 : vector<1x96xf32> to vector<2x96xf32>
    %407 = arith.addf %405, %406 : vector<2x96xf32>
    %408 = vector.extract_strided_slice %397 {offsets = [0, 0], sizes = [2, 32], strides = [1, 1]} : vector<2x96xf32> to vector<2x32xf32>
    %409 = vector.extract_strided_slice %404 {offsets = [0, 0], sizes = [2, 32], strides = [1, 1]} : vector<2x96xf32> to vector<2x32xf32>
    %410 = arith.addf %408, %409 : vector<2x32xf32>
    %411 = arith.negf %410 : vector<2x32xf32>
    %412 = math.exp %411 : vector<2x32xf32>
    %cst_91 = arith.constant 1.000000e+00 : f32
    %413 = vector.broadcast %cst_91 : f32 to vector<2x32xf32>
    %414 = arith.addf %413, %412 : vector<2x32xf32>
    %415 = arith.divf %413, %414 : vector<2x32xf32>
    %416 = vector.extract_strided_slice %397 {offsets = [0, 32], sizes = [2, 32], strides = [1, 1]} : vector<2x96xf32> to vector<2x32xf32>
    %417 = vector.extract_strided_slice %404 {offsets = [0, 32], sizes = [2, 32], strides = [1, 1]} : vector<2x96xf32> to vector<2x32xf32>
    %418 = arith.addf %416, %417 : vector<2x32xf32>
    %419 = arith.negf %418 : vector<2x32xf32>
    %420 = math.exp %419 : vector<2x32xf32>
    %cst_92 = arith.constant 1.000000e+00 : f32
    %421 = vector.broadcast %cst_92 : f32 to vector<2x32xf32>
    %422 = arith.addf %421, %420 : vector<2x32xf32>
    %423 = arith.divf %421, %422 : vector<2x32xf32>
    %424 = vector.extract_strided_slice %397 {offsets = [0, 64], sizes = [2, 32], strides = [1, 1]} : vector<2x96xf32> to vector<2x32xf32>
    %425 = vector.extract_strided_slice %404 {offsets = [0, 64], sizes = [2, 32], strides = [1, 1]} : vector<2x96xf32> to vector<2x32xf32>
    %426 = arith.mulf %415, %425 : vector<2x32xf32>
    %427 = arith.addf %424, %426 : vector<2x32xf32>
    %428 = math.tanh %427 : vector<2x32xf32>
    %cst_93 = arith.constant 1.000000e+00 : f32
    %429 = vector.broadcast %cst_93 : f32 to vector<2x32xf32>
    %430 = arith.subf %429, %423 : vector<2x32xf32>
    %431 = arith.mulf %430, %428 : vector<2x32xf32>
    %432 = arith.mulf %423, %368 : vector<2x32xf32>
    %433 = arith.addf %431, %432 : vector<2x32xf32>
    %434 = vector.extract_strided_slice %401 {offsets = [0, 0], sizes = [2, 32], strides = [1, 1]} : vector<2x96xf32> to vector<2x32xf32>
    %435 = vector.extract_strided_slice %407 {offsets = [0, 0], sizes = [2, 32], strides = [1, 1]} : vector<2x96xf32> to vector<2x32xf32>
    %436 = arith.addf %434, %435 : vector<2x32xf32>
    %437 = arith.negf %436 : vector<2x32xf32>
    %438 = math.exp %437 : vector<2x32xf32>
    %cst_94 = arith.constant 1.000000e+00 : f32
    %439 = vector.broadcast %cst_94 : f32 to vector<2x32xf32>
    %440 = arith.addf %439, %438 : vector<2x32xf32>
    %441 = arith.divf %439, %440 : vector<2x32xf32>
    %442 = vector.extract_strided_slice %401 {offsets = [0, 32], sizes = [2, 32], strides = [1, 1]} : vector<2x96xf32> to vector<2x32xf32>
    %443 = vector.extract_strided_slice %407 {offsets = [0, 32], sizes = [2, 32], strides = [1, 1]} : vector<2x96xf32> to vector<2x32xf32>
    %444 = arith.addf %442, %443 : vector<2x32xf32>
    %445 = arith.negf %444 : vector<2x32xf32>
    %446 = math.exp %445 : vector<2x32xf32>
    %cst_95 = arith.constant 1.000000e+00 : f32
    %447 = vector.broadcast %cst_95 : f32 to vector<2x32xf32>
    %448 = arith.addf %447, %446 : vector<2x32xf32>
    %449 = arith.divf %447, %448 : vector<2x32xf32>
    %450 = vector.extract_strided_slice %401 {offsets = [0, 64], sizes = [2, 32], strides = [1, 1]} : vector<2x96xf32> to vector<2x32xf32>
    %451 = vector.extract_strided_slice %407 {offsets = [0, 64], sizes = [2, 32], strides = [1, 1]} : vector<2x96xf32> to vector<2x32xf32>
    %452 = arith.mulf %441, %451 : vector<2x32xf32>
    %453 = arith.addf %450, %452 : vector<2x32xf32>
    %454 = math.tanh %453 : vector<2x32xf32>
    %cst_96 = arith.constant 1.000000e+00 : f32
    %455 = vector.broadcast %cst_96 : f32 to vector<2x32xf32>
    %456 = arith.subf %455, %449 : vector<2x32xf32>
    %457 = arith.mulf %456, %454 : vector<2x32xf32>
    %458 = arith.mulf %449, %394 : vector<2x32xf32>
    %459 = arith.addf %457, %458 : vector<2x32xf32>
    %c7_i32_97 = arith.constant 7 : i32
    %460 = arith.index_cast %c7_i32_97 : i32 to index
    %c0_98 = arith.constant 0 : index
    %c0_99 = arith.constant 0 : index
    %461 = vector.load %arg0[%460, %c0_98, %c0_99] : memref<8x2x96xf32, #tpu.memory_space<vmem>>, vector<1x2x96xf32>
    %462 = vector.shape_cast %461 : vector<1x2x96xf32> to vector<2x96xf32>
    %c7_i32_100 = arith.constant 7 : i32
    %463 = arith.subi %c7_i32_100, %c7_i32_97 : i32
    %464 = arith.index_cast %463 : i32 to index
    %c0_101 = arith.constant 0 : index
    %c0_102 = arith.constant 0 : index
    %465 = vector.load %arg1[%464, %c0_101, %c0_102] : memref<8x2x96xf32, #tpu.memory_space<vmem>>, vector<1x2x96xf32>
    %466 = vector.shape_cast %465 : vector<1x2x96xf32> to vector<2x96xf32>
    %cst_103 = arith.constant dense<0.000000e+00> : vector<2x96xf32>
    %467 = tpu.matmul %433, %0, %cst_103 {dimension_numbers = #tpu.dot_dimension_numbers<[1], [0], [0], [1], [0, 0, 1, 1], [], []>} : vector<2x32xf32>, vector<32x96xf32>, vector<2x96xf32> -> vector<2x96xf32>
    %468 = vector.broadcast %1 : vector<1x96xf32> to vector<2x96xf32>
    %469 = arith.addf %467, %468 : vector<2x96xf32>
    %cst_104 = arith.constant dense<0.000000e+00> : vector<2x96xf32>
    %470 = tpu.matmul %459, %2, %cst_104 {dimension_numbers = #tpu.dot_dimension_numbers<[1], [0], [0], [1], [0, 0, 1, 1], [], []>} : vector<2x32xf32>, vector<32x96xf32>, vector<2x96xf32> -> vector<2x96xf32>
    %471 = vector.broadcast %3 : vector<1x96xf32> to vector<2x96xf32>
    %472 = arith.addf %470, %471 : vector<2x96xf32>
    %473 = vector.extract_strided_slice %462 {offsets = [0, 0], sizes = [2, 32], strides = [1, 1]} : vector<2x96xf32> to vector<2x32xf32>
    %474 = vector.extract_strided_slice %469 {offsets = [0, 0], sizes = [2, 32], strides = [1, 1]} : vector<2x96xf32> to vector<2x32xf32>
    %475 = arith.addf %473, %474 : vector<2x32xf32>
    %476 = arith.negf %475 : vector<2x32xf32>
    %477 = math.exp %476 : vector<2x32xf32>
    %cst_105 = arith.constant 1.000000e+00 : f32
    %478 = vector.broadcast %cst_105 : f32 to vector<2x32xf32>
    %479 = arith.addf %478, %477 : vector<2x32xf32>
    %480 = arith.divf %478, %479 : vector<2x32xf32>
    %481 = vector.extract_strided_slice %462 {offsets = [0, 32], sizes = [2, 32], strides = [1, 1]} : vector<2x96xf32> to vector<2x32xf32>
    %482 = vector.extract_strided_slice %469 {offsets = [0, 32], sizes = [2, 32], strides = [1, 1]} : vector<2x96xf32> to vector<2x32xf32>
    %483 = arith.addf %481, %482 : vector<2x32xf32>
    %484 = arith.negf %483 : vector<2x32xf32>
    %485 = math.exp %484 : vector<2x32xf32>
    %cst_106 = arith.constant 1.000000e+00 : f32
    %486 = vector.broadcast %cst_106 : f32 to vector<2x32xf32>
    %487 = arith.addf %486, %485 : vector<2x32xf32>
    %488 = arith.divf %486, %487 : vector<2x32xf32>
    %489 = vector.extract_strided_slice %462 {offsets = [0, 64], sizes = [2, 32], strides = [1, 1]} : vector<2x96xf32> to vector<2x32xf32>
    %490 = vector.extract_strided_slice %469 {offsets = [0, 64], sizes = [2, 32], strides = [1, 1]} : vector<2x96xf32> to vector<2x32xf32>
    %491 = arith.mulf %480, %490 : vector<2x32xf32>
    %492 = arith.addf %489, %491 : vector<2x32xf32>
    %493 = math.tanh %492 : vector<2x32xf32>
    %cst_107 = arith.constant 1.000000e+00 : f32
    %494 = vector.broadcast %cst_107 : f32 to vector<2x32xf32>
    %495 = arith.subf %494, %488 : vector<2x32xf32>
    %496 = arith.mulf %495, %493 : vector<2x32xf32>
    %497 = arith.mulf %488, %433 : vector<2x32xf32>
    %498 = arith.addf %496, %497 : vector<2x32xf32>
    %499 = vector.extract_strided_slice %466 {offsets = [0, 0], sizes = [2, 32], strides = [1, 1]} : vector<2x96xf32> to vector<2x32xf32>
    %500 = vector.extract_strided_slice %472 {offsets = [0, 0], sizes = [2, 32], strides = [1, 1]} : vector<2x96xf32> to vector<2x32xf32>
    %501 = arith.addf %499, %500 : vector<2x32xf32>
    %502 = arith.negf %501 : vector<2x32xf32>
    %503 = math.exp %502 : vector<2x32xf32>
    %cst_108 = arith.constant 1.000000e+00 : f32
    %504 = vector.broadcast %cst_108 : f32 to vector<2x32xf32>
    %505 = arith.addf %504, %503 : vector<2x32xf32>
    %506 = arith.divf %504, %505 : vector<2x32xf32>
    %507 = vector.extract_strided_slice %466 {offsets = [0, 32], sizes = [2, 32], strides = [1, 1]} : vector<2x96xf32> to vector<2x32xf32>
    %508 = vector.extract_strided_slice %472 {offsets = [0, 32], sizes = [2, 32], strides = [1, 1]} : vector<2x96xf32> to vector<2x32xf32>
    %509 = arith.addf %507, %508 : vector<2x32xf32>
    %510 = arith.negf %509 : vector<2x32xf32>
    %511 = math.exp %510 : vector<2x32xf32>
    %cst_109 = arith.constant 1.000000e+00 : f32
    %512 = vector.broadcast %cst_109 : f32 to vector<2x32xf32>
    %513 = arith.addf %512, %511 : vector<2x32xf32>
    %514 = arith.divf %512, %513 : vector<2x32xf32>
    %515 = vector.extract_strided_slice %466 {offsets = [0, 64], sizes = [2, 32], strides = [1, 1]} : vector<2x96xf32> to vector<2x32xf32>
    %516 = vector.extract_strided_slice %472 {offsets = [0, 64], sizes = [2, 32], strides = [1, 1]} : vector<2x96xf32> to vector<2x32xf32>
    %517 = arith.mulf %506, %516 : vector<2x32xf32>
    %518 = arith.addf %515, %517 : vector<2x32xf32>
    %519 = math.tanh %518 : vector<2x32xf32>
    %cst_110 = arith.constant 1.000000e+00 : f32
    %520 = vector.broadcast %cst_110 : f32 to vector<2x32xf32>
    %521 = arith.subf %520, %514 : vector<2x32xf32>
    %522 = arith.mulf %521, %519 : vector<2x32xf32>
    %523 = arith.mulf %514, %459 : vector<2x32xf32>
    %524 = arith.addf %522, %523 : vector<2x32xf32>
    %c8_i32 = arith.constant 8 : i32
    %c0_111 = arith.constant 0 : index
    %c0_112 = arith.constant 0 : index
    %525 = vector.load %arg10[%c0_111, %c0_112] : memref<2x32xf32, #tpu.memory_space<vmem>>, vector<2x32xf32>
    tpu.vector_store %arg10[%c0_111, %c0_112], %498 {strides = array<i32>} : memref<2x32xf32, #tpu.memory_space<vmem>>, vector<2x32xf32>,
    %c0_113 = arith.constant 0 : index
    %c0_114 = arith.constant 0 : index
    %526 = vector.load %arg6[%c0_113, %c0_114] : memref<64x32xf32, #tpu.memory_space<vmem>>, vector<32x32xf32>
    %cst_115 = arith.constant dense<0.000000e+00> : vector<2x32xf32>
    %527 = tpu.matmul %498, %526, %cst_115 {dimension_numbers = #tpu.dot_dimension_numbers<[1], [0], [0], [1], [0, 0, 1, 1], [], []>} : vector<2x32xf32>, vector<32x32xf32>, vector<2x32xf32> -> vector<2x32xf32>
    %c32 = arith.constant 32 : index
    %c0_116 = arith.constant 0 : index
    %528 = vector.load %arg6[%c32, %c0_116] : memref<64x32xf32, #tpu.memory_space<vmem>>, vector<32x32xf32>
    %cst_117 = arith.constant dense<0.000000e+00> : vector<2x32xf32>
    %529 = tpu.matmul %524, %528, %cst_117 {dimension_numbers = #tpu.dot_dimension_numbers<[1], [0], [0], [1], [0, 0, 1, 1], [], []>} : vector<2x32xf32>, vector<32x32xf32>, vector<2x32xf32> -> vector<2x32xf32>
    %530 = arith.addf %527, %529 : vector<2x32xf32>
    %c0_118 = arith.constant 0 : index
    %c0_119 = arith.constant 0 : index
    %531 = vector.load %arg7[%c0_118, %c0_119] : memref<1x32xf32, #tpu.memory_space<vmem>>, vector<1x32xf32>
    %532 = vector.broadcast %531 : vector<1x32xf32> to vector<2x32xf32>
    %533 = arith.addf %530, %532 : vector<2x32xf32>
    %534 = vector.extract_strided_slice %533 {offsets = [0, 0], sizes = [2, 16], strides = [1, 1]} : vector<2x32xf32> to vector<2x16xf32>
    %535 = vector.extract_strided_slice %533 {offsets = [0, 16], sizes = [2, 16], strides = [1, 1]} : vector<2x32xf32> to vector<2x16xf32>
    %c0_120 = arith.constant 0 : index
    %c0_121 = arith.constant 0 : index
    %536 = vector.load %arg8[%c0_120, %c0_121] : memref<2x16xf32, #tpu.memory_space<vmem>>, vector<2x16xf32>
    %cst_122 = arith.constant 5.000000e-01 : f32
    %537 = vector.broadcast %cst_122 : f32 to vector<2x16xf32>
    %538 = arith.mulf %537, %535 : vector<2x16xf32>
    %539 = math.exp %538 : vector<2x16xf32>
    %540 = arith.mulf %536, %539 : vector<2x16xf32>
    %541 = arith.addf %534, %540 : vector<2x16xf32>
    %c0_123 = arith.constant 0 : index
    %c0_124 = arith.constant 0 : index
    %542 = vector.load %arg9[%c0_123, %c0_124] : memref<2x16xf32, #tpu.memory_space<vmem>>, vector<2x16xf32>
    tpu.vector_store %arg9[%c0_123, %c0_124], %541 {strides = array<i32>} : memref<2x16xf32, #tpu.memory_space<vmem>>, vector<2x16xf32>,
    return
  }
}

</mosaic_0001>

<bundles_post_ra>
// kernel: rnnvae_forward.3
= control target key start
LH: loop header
LB: loop body
LE: loop exit
PB: predicated region body
PF: predicated region fallthrough
CT: control target
= control target key end

     0   :  { %v2417_v3 = vmov 0.0|0.0   ;;  %vm2418_vm0 = vmmov 0   ;;  %v2419_v6 = vmov 0.0   ;;  %s2849_s0 = inlined_call_operand.vmem [shape: f32[2,16], index: 0, kind: input, shape index: {}]   ;;  %s2850_s1 = inlined_call_operand.vmem [shape: f32[2,32], index: 1, kind: input, shape index: {}]   ;;  %s2851_s2 = inlined_call_operand.vmem [shape: f32[48,96], index: 2, kind: input, shape index: {}]   ;;  %s2852_s3 = inlined_call_operand.vmem [shape: f32[1,96], index: 3, kind: input, shape index: {}]   ;;  %s2853_s4 = inlined_call_operand.vmem [shape: f32[32,96], index: 4, kind: input, shape index: {}]   ;;  %s2854_s5 = inlined_call_operand.vmem [shape: f32[1,96], index: 5, kind: input, shape index: {}]   ;;  %s2855_s6 = inlined_call_operand.vmem [shape: f32[32,20], index: 6, kind: input, shape index: {}]   ;;  %s2856_s7 = inlined_call_operand.vmem [shape: f32[1,20], index: 7, kind: input, shape index: {}]   ;;  %s2857_s8 = inlined_call_operand.vmem [shape: f32[20,32], index: 8, kind: input, shape index: {}]   ;;  %s2858_s9 = inlined_call_operand.hbm [shape: f32[6,2,20], index: 9, kind: output, shape index: {0}]   ;;  %s2859_s10 = inlined_call_operand.vmem [shape: s32[6,2,1], index: 10, kind: output, shape index: {1}]  }
   0x1   :  { %v48_v0 = vld [vmem:[%s2851_s2] sm:$0xff]  ;;  %v49_v1 = vld [vmem:[%s2851_s2 + $0x8] sm:$0xff]  ;;  %v50_v2 = vld [vmem:[%s2851_s2 + $0x10] sm:$0xff]  ;;  %2250 = vmatprep.subr.bf16.mxu0 %v2417_v3  ;;  %2048 = vmatprep.mubr.msk.f32.mxu0 %vm2418_vm0, %v2419_v6 }
   0x2   :  { %v2251_v4 = vpack.c.bf16 %v49_v1, %v48_v0  ;;  %v51_v5 = vld [vmem:[%s2851_s2 + $0x18] sm:$0xff]  ;;  %2256 = vmatprep.subr.bf16.mxu1 %v2417_v3  ;;  %2061 = vmatprep.mubr.msk.f32.mxu1 %vm2418_vm0, %v2419_v6 }
   0x3   :  { %16 = vsyncpa [#allocation3], 0  ;;  %v2254_v7 = vpack.c.bf16 %v51_v5, %v50_v2  ;;  %v45_v8 = vld [vmem:[%s2857_s8] sm:$0xff]  ;;  %vm52_vm1 = vcmask 261120   ;;  %v46_v9 = vld [vmem:[%s2857_s8 + $0x8] sm:$0xff]  ;;  %vm152_vm2 = vcmask 130048   ;;  %v226_v15 = vlaneseq }
   0x4   :  { %2252 = vmatpush3.bf16.msra.mxu0 %v2251_v4  ;;  %v47_v10 = vld [vmem:[%s2857_s8 + $0x10] sm:$0xf]  ;;  %v143_v11 = vld [vmem:[%s2851_s2 + $0x20] sm:$0xff]  ;;  %v144_v12 = vld [vmem:[%s2851_s2 + $0x28] sm:$0xff]  ;;  %vm235_vm4 = vcmask 1043456   ;;  %vm231_vm5 = vcmask 162816  }
   0x5   :  { %2253 = vmatprep.subr.bf16.mxu0 %v2417_v3  ;;  %v2257_v13 = vpack.c.bf16 %v144_v12, %v143_v11  ;;  %v142_v14 = vld [vmem:[%s2849_s0] sm:$0x3]  ;;  %v2530_v18 = vand.u32 127, %v226_v15  ;;  %v36_v23 = vld [vmem:[%s2853_s4 + $0x8] sm:$0xff]  ;;  %v37_v28 = vld [vmem:[%s2853_s4 + $0x10] sm:$0xff]  ;;  %s2420_s20 = smov 64  }
   0x6   :  { %v35_v22 = vld [vmem:[%s2853_s4] sm:$0xff]  ;;  %v38_v29 = vld [vmem:[%s2853_s4 + $0x18] sm:$0xff]  ;;  %v41_v53 = vld [vmem:[%s2855_s6 + $0x8] sm:$0xff]  ;;  %s2421_s29 = smov 96   ;;  %s2422_s30 = smov 32   ;;  %vm499_vm6 = vcmask 156672  }
   0x7   :  { %2258 = vmatpush3.bf16.msra.mxu1 %v2257_v13  ;;  %vm228_vm3 = vcmp.eq.s32.totalorder %v2530_v18, 1  ;;  %v2546_v27 = vpack.c.bf16 %v36_v23, %v35_v22  ;;  %v2559_v30 = vpack.c.bf16 %v38_v29, %v37_v28  ;;  %v309_v31 = vld [vmem:[%s2850_s1] sm:$0x3]  ;;  %v42_v54 = vld [vmem:[%s2855_s6 + $0x10] sm:$0xff]  ;;  %v43_v56 = vld [vmem:[%s2855_s6 + $0x18] sm:$0xff]  ;;  %vm521_vm9 = vcmask 1024  }
   0x8   :  { %2255 = vmatpush3.bf16.msra.mxu0 %v2254_v7  ;;  %2259 = vmatprep.subr.bf16.mxu1 %v2417_v3  ;;  %v1903_v26 = vsel %vm228_vm3, 1.0, %v2419_v6  ;;  %v2580_v36 = vld [vmem:[%s2854_s5] ss:$0 sm:$0xff]  ;;  %v2606_v57 = vpack.c.bf16 %v43_v56, %v42_v54  ;;  %s2423_s18 = smov [#allocation2]  }
   0x9   :  { %2268 = vmatprep.subr.bf16.mxu0 %v2417_v3  ;;  %v1901_v40 = vld [vmem:[%s2852_s3] ss:$0 sm:$0xff]  ;;  %s1883_s4 = sshll.u32 %s2423_s18, 4  ;;  %s1884_s4 = int_to_ptr.vmem [resolvable:$true] %s1883_s4 }
   0xa   :  { %2062 = vmatmul.mubr.msk.f32.vlgmr.msra.gmra.mrb[0].mxu1 %vm152_vm2, %v142_v14  ;;  %v40_v52 = vld [vmem:[%s2855_s6] sm:$0xff]  ;;  %s2393_s1 = scalar_lea.vmem %s1884_s4, 192  ;;  %p2398_p1 = scmp.lt.s32.totalorder %s1884_s4, %s1884_s4 }
   0xb   :  { %2049 = vmatmul.mubr.msk.f32.vlgmr.msra.gmra.mrb[0].mxu0 %vm52_vm1, %v45_v8  ;;  %2070 = vmatprep.mubr.msk.f32.mxu1 %vm2418_vm0, %v2419_v6  ;;  %v2600_v55 = vpack.c.bf16 %v41_v53, %v40_v52  ;;  %v2635_v2 = vld [vmem:[%s2856_s7] ss:$0 sm:$0xff]  ;;  %p2394_p0 = scmp.ne.s32.totalorder %s1884_s4, %s2393_s1  ;;  %p2399_p2 = scmp.lt.s32.totalorder %s2393_s1, %s2393_s1 }
   0xc   :  { %2051 = vmatprep.mubr.msk.f32.mxu0 %vm2418_vm0, %v2419_v6 }
   0xd   :  { %2270 = vmatpush3.bf16.msra.mxu0 %v2600_v55  ;;  %p2400_p3 = por %p2399_p2, %p2398_p1 }
   0xe   :  { %2271 = vmatprep.subr.bf16.mxu0 %v2417_v3 }
   0xf   :  { %2052 = vmatmul.mubr.msk.f32.gmra.mrb[2].mxu0 %vm52_vm1, %v46_v9  ;;  %p2401_p4 = pnand %p2400_p3, %p2394_p0 }
  0x10   :  { %2054 = vmatprep.mubr.msk.f32.mxu0 %vm2418_vm0, %v2419_v6 }
  0x11   :  { %2273 = vmatpush3.bf16.msra.mxu0 %v2606_v57 }
  0x12   :  { %2277 = vmatprep.subr.bf16.mxu0 %v2417_v3 }
  0x13   :  { %2055 = vmatmul.mubr.msk.f32.gmra.mrb[4].mxu0 %vm52_vm1, %v47_v10 }
  0x14   :  { %2092 = vmatprep.mubr.msk.f32.mxu0 %vm2418_vm0, %v2419_v6 }
  0xdd   :  { %v222_v32 = vpop.f32.mrb[0].mxu1 }
  0xde   :  { %v128_v16 = vpop.f32.mrb[0].mxu0  ;;  %v2063_v33 = vpop.f32.mrb[1].mxu1  ;;  %v2587_v41 = vadd.f32 %v1901_v40, %v222_v32 }
  0xdf   :  { %v2050_v17 = vpop.f32.mrb[1].mxu0 }
  0xe2   :  { %v133_v19 = vpop.f32.mrb[2].mxu0 }
  0xe3   :  { %v2532_v20 = vpack.c.bf16 %v133_v19, %v128_v16  ;;  %v2053_v21 = vpop.f32.mrb[3].mxu0 }
  0xe5   :  { %2261 = vmatpush3.bf16.msra.mxu1 %v2532_v20 }
  0xe6   :  { %v2542_v24 = vpop.f32.mrb[4].mxu0  ;;  %2068 = vmatprep.subr.mxu1 %v2419_v6 }
  0xe7   :  { %v2056_v25 = vpop.f32.mrb[5].mxu0 }
  0xe9   :  { %2069 = vmatpush3.msk.msra.mxu1 %vm235_vm4, %v2542_v24 }
  0xea   :  { %2071 = vmatmul.mubr.msk.f32.vlgmr.msra.gmra.mrb[2].mxu1 %vm231_vm5, %v1903_v26  ;;  %2262 = vmatprep.subr.bf16.mxu1 %v2417_v3 }
  0xeb   :  { %2264 = vmatpush3.bf16.msra.mxu1 %v2546_v27  ;;  %2081 = vmatprep.mubr.msk.f32.mxu1 %vm2418_vm0, %v2419_v6 }
  0xec   :  { %2265 = vmatprep.subr.bf16.mxu1 %v2417_v3 }
  0xef   :  { %2267 = vmatpush3.bf16.msra.mxu1 %v2559_v30 }
  0xf0   :  { %2274 = vmatprep.subr.bf16.mxu1 %v2417_v3 }
  0xf2   :  { %2082 = vmatmul.mubr.msk.f32.vlgmr.msra.gmra.mrb[4].mxu1 %vm52_vm1, %v309_v31 }
  0xf3   :  { %2276 = vmatpush3.bf16.msra.mxu1 %v2532_v20  ;;  %2101 = vmatprep.mubr.msk.f32.mxu1 %vm2418_vm0, %v2419_v6 }
  0xf4   :  { %2099 = vmatprep.subr.mxu1 %v2419_v6 }
  0xf7   :  { %2100 = vmatpush3.msk.msra.mxu1 %vm235_vm4, %v2542_v24 }
  0xf8   :  { %2283 = vmatprep.subr.bf16.mxu1 %v2417_v3 }
 0x1bd   :  { %v305_v34 = vpop.f32.mrb[2].mxu1 }
 0x1be   :  { %v2072_v35 = vpop.f32.mrb[3].mxu1  ;;  %v306_v42 = vadd.f32 %v305_v34, %v2587_v41 }
 0x1c5   :  { %v385_v37 = vpop.f32.mrb[4].mxu1 }
 0x1c6   :  { %v386_v38 = vadd.f32 %v2580_v36, %v385_v37  ;;  %v2083_v39 = vpop.f32.mrb[5].mxu1 }
 0x1c8   :  { %397 = vrot.lane.b32.xlu0 %v386_v38, %s2420_s20  ;;  %v389_v43 = vadd.f32 %v386_v38, %v306_v42 }
 0x1ca   :  { %v1908_v44 = vmul.f32 -1.442695, %v389_v43 }
 0x1cc   :  { %2357 = vpow2.f32 %v1908_v44 }
 0x1d6   :  { %v2358_v45 = vpop.eup %2357 }
 0x1d7   :  { %v393_v46 = vadd.f32 1.0, %v2358_v45 }
 0x1d9   :  { %2359 = vrcp.f32 %v393_v46 }
 0x1e3   :  { %v2360_v47 = vpop.eup %2359 }
 0x1e4   :  { %v407_v60 = vsub.f32 1.0, %v2360_v47 }
 0x23a   :  { %v398_v48 = vpop.permute.xlu0 %397 }
 0x23b   :  { %v400_v49 = vmul.f32 %v2360_v47, %v398_v48 }
 0x23d   :  { %402 = vrot.lane.b32.xlu0 %v400_v49, %s2420_s20 }
 0x2af   :  { %v403_v50 = vpop.permute.xlu0 %402 }
 0x2b0   :  { %v405_v51 = vadd.f32 %v403_v50, %v306_v42 }
 0x2b2   :  { %2361 = vtanh.f32 %v405_v51 }
 0x2bc   :  { %v2362_v58 = vpop.eup %2361 }
 0x2bd   :  { %409 = vrot.lane.b32.xlu1 %v2362_v58, %s2421_s29 }
 0x2c1   :  { %413 = vrot.lane.b32.xlu1 %v309_v31, %s2422_s30 }
 0x32f   :  { %v410_v59 = vpop.permute.xlu1 %409 }
 0x330   :  { %v412_v62 = vmul.f32 %v410_v59, %v407_v60 }
 0x333   :  { %v414_v61 = vpop.permute.xlu1 %413 }
 0x334   :  { %v416_v63 = vmul.f32 %v2360_v47, %v414_v61 }
 0x336   :  { %v2613_v0 = vadd.f32 %v416_v63, %v412_v62 }
 0x338   :  { %425 = vrot.lane.b32.xlu0 %v2613_v0, %s2421_s29 }
 0x3aa   :  { %v426_v1 = vpop.permute.xlu0 %425 }
 0x3ab   :  { %2093 = vmatmul.mubr.msk.f32.vlgmr.msra.gmra.mrb[6].mxu0 %vm52_vm1, %v426_v1 }
 0x3ac   :  { %2279 = vmatpush3.bf16.msra.mxu0 %v2546_v27  ;;  %2112 = vmatprep.mubr.msk.f32.mxu0 %vm2418_vm0, %v2419_v6 }
 0x3ad   :  { %2280 = vmatprep.subr.bf16.mxu0 %v2417_v3 }
 0x3b0   :  { %2282 = vmatpush3.bf16.msra.mxu0 %v2559_v30 }
 0x3b1   :  { %2289 = vmatprep.subr.bf16.mxu0 %v2417_v3 }
 0x3b3   :  { %2113 = vmatmul.mubr.msk.f32.vlgmr.msra.gmra.mrb[8].mxu0 %vm52_vm1, %v426_v1 }
 0x3b4   :  { %2291 = vmatpush3.bf16.msra.mxu0 %v2532_v20  ;;  %2132 = vmatprep.mubr.msk.f32.mxu0 %vm2418_vm0, %v2419_v6 }
 0x3b5   :  { %2130 = vmatprep.subr.mxu0 %v2419_v6 }
 0x3b8   :  { %2131 = vmatpush3.msk.msra.mxu0 %vm235_vm4, %v2542_v24 }
 0x3b9   :  { %2298 = vmatprep.subr.bf16.mxu0 %v2417_v3 }
 0x47e   :  { %v495_v4 = vpop.f32.mrb[6].mxu0 }
 0x47f   :  { %v496_v5 = vadd.f32 %v2635_v2, %v495_v4  ;;  %v2094_v7 = vpop.f32.mrb[7].mxu0 }
 0x481   :  { %500 = vst.msk [vmem:[#allocation2] sm:$0x3] %vm499_vm6, %v496_v5  ;;  %v501_v8 = vsel %vm499_vm6, %v496_v5, -inf }
 0x482   :  { %502 = vmax.xlane.f32.xlu1 %v501_v8 }
 0x486   :  { %v665_v9 = vpop.f32.mrb[8].mxu0 }
 0x487   :  { %v2114_v10 = vpop.f32.mrb[9].mxu0  ;;  %v666_v11 = vadd.f32 %v2580_v36, %v665_v9 }
 0x493   :  { %677 = vrot.lane.b32.xlu1 %v666_v11, %s2420_s20 }
 0x50f   :  { %v503_v12 = vpop.xlane.xlu1 %502 }
 0x510   :  { %vm504_vm7 = vcmp.eq.f32.partialorder %v496_v5, %v503_v12 }
 0x511   :  { %v505_v13 = vsel %vm504_vm7, %v2530_v18, 20 }
 0x512   :  { %v506_v14 = vsel %vm499_vm6, %v505_v13, 2147483647 }
 0x513   :  { %v508_v15 = vshra.s32 %v506_v14, 16  ;;  %v507_v17 = vand.u32 65535, %v506_v14  ;;  %v678_v42 = vpop.permute.xlu1 %677 }
 0x515   :  { %v510_v16 = vcvt.s32.f32 %v508_v15  ;;  %v509_v21 = vcvt.s32.f32 %v507_v17 }
 0x517   :  { %511 = vmin.xlane.f32.xlu0 %v510_v16 }
 0x5a4   :  { %v512_v19 = vpop.xlane.xlu0 %511 }
 0x5a5   :  { %vm513_vm8 = vcmp.eq.f32.partialorder %v510_v16, %v512_v19  ;;  %v518_v23 = vcvt.f32.s32 %v512_v19 }
 0x5a6   :  { %v514_v22 = vsel %vm513_vm8, %v509_v21, inf }
 0x5a7   :  { %515 = vmin.xlane.f32.xlu0 %v514_v22  ;;  %v519_v26 = vshll.u32 %v518_v23, 16 }
 0x634   :  { %v516_v25 = vpop.xlane.xlu0 %515 }
 0x635   :  { %v517_v28 = vcvt.f32.s32 %v516_v25 }
 0x637   :  { %v520_v29 = vadd.s32 %v519_v26, %v517_v28 }
 0x639   :  { %522 = vst.msk [vmem:[%s2859_s10] sm:$0x3] %vm521_vm9, %v520_v29  ;;  %vm523_vm10 = vcmp.eq.s32.totalorder %v2530_v18, %v520_v29 }
 0x63a   :  { %v1911_v31 = vsel %vm523_vm10, 1.0, %v2419_v6 }
 0x63b   :  { %2102 = vmatmul.mubr.msk.f32.vlgmr.msra.gmra.mrb[6].mxu1 %vm231_vm5, %v1911_v31 }
 0x63c   :  { %2285 = vmatpush3.bf16.msra.mxu1 %v2600_v55  ;;  %2123 = vmatprep.mubr.msk.f32.mxu1 %vm2418_vm0, %v2419_v6 }
 0x63d   :  { %2286 = vmatprep.subr.bf16.mxu1 %v2417_v3 }
 0x640   :  { %2288 = vmatpush3.bf16.msra.mxu1 %v2606_v57 }
 0x641   :  { %2292 = vmatprep.subr.bf16.mxu1 %v2417_v3 }
 0x70e   :  { %v595_v32 = vpop.f32.mrb[6].mxu1 }
 0x70f   :  { %v596_v33 = vadd.f32 %v595_v32, %v2587_v41  ;;  %v2103_v34 = vpop.f32.mrb[7].mxu1 }
 0x711   :  { %v669_v35 = vadd.f32 %v666_v11, %v596_v33 }
 0x713   :  { %v1915_v37 = vmul.f32 -1.442695, %v669_v35 }
 0x715   :  { %2363 = vpow2.f32 %v1915_v37 }
 0x71f   :  { %v2364_v38 = vpop.eup %2363 }
 0x720   :  { %v673_v39 = vadd.f32 1.0, %v2364_v38 }
 0x722   :  { %2365 = vrcp.f32 %v673_v39 }
 0x72c   :  { %v2366_v40 = vpop.eup %2365 }
 0x72d   :  { %v680_v43 = vmul.f32 %v2366_v40, %v678_v42  ;;  %v687_v47 = vsub.f32 1.0, %v2366_v40  ;;  %v693_v49 = vmul.f32 %v2366_v40, %v2613_v0 }
 0x72f   :  { %682 = vrot.lane.b32.xlu0 %v680_v43, %s2420_s20 }
 0x7a1   :  { %v683_v44 = vpop.permute.xlu0 %682 }
 0x7a2   :  { %v685_v45 = vadd.f32 %v683_v44, %v596_v33 }
 0x7a4   :  { %2367 = vtanh.f32 %v685_v45 }
 0x7ae   :  { %v2368_v46 = vpop.eup %2367 }
 0x7af   :  { %689 = vrot.lane.b32.xlu1 %v2368_v46, %s2421_s29 }
 0x821   :  { %v690_v48 = vpop.permute.xlu1 %689 }
 0x822   :  { %v692_v50 = vmul.f32 %v690_v48, %v687_v47 }
 0x824   :  { %v2661_v51 = vadd.f32 %v693_v49, %v692_v50 }
 0x826   :  { %696 = vrot.lane.b32.xlu1 %v2661_v51, %s2421_s29 }
 0x898   :  { %v697_v52 = vpop.permute.xlu1 %696 }
 0x899   :  { %2124 = vmatmul.mubr.msk.f32.vlgmr.msra.gmra.mrb[8].mxu1 %vm52_vm1, %v697_v52 }
 0x89a   :  { %2294 = vmatpush3.bf16.msra.mxu1 %v2546_v27  ;;  %2143 = vmatprep.mubr.msk.f32.mxu1 %vm2418_vm0, %v2419_v6 }
 0x89b   :  { %2295 = vmatprep.subr.bf16.mxu1 %v2417_v3 }
 0x89e   :  { %2297 = vmatpush3.bf16.msra.mxu1 %v2559_v30 }
 0x89f   :  { %2304 = vmatprep.subr.bf16.mxu1 %v2417_v3 }
 0x8a1   :  { %2144 = vmatmul.mubr.msk.f32.vlgmr.msra.gmra.mrb[10].mxu1 %vm52_vm1, %v697_v52 }
 0x8a2   :  { %2306 = vmatpush3.bf16.msra.mxu1 %v2532_v20  ;;  %2163 = vmatprep.mubr.msk.f32.mxu1 %vm2418_vm0, %v2419_v6 }
 0x8a3   :  { %2161 = vmatprep.subr.mxu1 %v2419_v6 }
 0x8a6   :  { %2162 = vmatpush3.msk.msra.mxu1 %vm235_vm4, %v2542_v24 }
 0x8a7   :  { %2313 = vmatprep.subr.bf16.mxu1 %v2417_v3 }
 0x96c   :  { %v766_v53 = vpop.f32.mrb[8].mxu1 }
 0x96d   :  { %v767_v54 = vadd.f32 %v2635_v2, %v766_v53  ;;  %v2125_v56 = vpop.f32.mrb[9].mxu1 }
 0x96f   :  { %771 = vst.msk [vmem:[#allocation2 + $0x2] sm:$0x3] %vm499_vm6, %v767_v54  ;;  %v772_v58 = vsel %vm499_vm6, %v767_v54, -inf }
 0x970   :  { %773 = vmax.xlane.f32.xlu0 %v772_v58 }
 0x974   :  { %v936_v59 = vpop.f32.mrb[10].mxu1 }
 0x975   :  { %v2145_v60 = vpop.f32.mrb[11].mxu1  ;;  %v937_v9 = vadd.f32 %v2580_v36, %v936_v59 }
 0x9fd   :  { %v774_v61 = vpop.xlane.xlu0 %773 }
 0x9fe   :  { %vm775_vm11 = vcmp.eq.f32.partialorder %v767_v54, %v774_v61 }
 0x9ff   :  { %v776_v62 = vsel %vm775_vm11, %v2530_v18, 20 }
 0xa00   :  { %v777_v63 = vsel %vm499_vm6, %v776_v62, 2147483647 }
 0xa01   :  { %v779_v0 = vshra.s32 %v777_v63, 16  ;;  %v778_v4 = vand.u32 65535, %v777_v63 }
 0xa03   :  { %v781_v1 = vcvt.s32.f32 %v779_v0  ;;  %v780_v7 = vcvt.s32.f32 %v778_v4 }
 0xa05   :  { %782 = vmin.xlane.f32.xlu1 %v781_v1 }
 0xa92   :  { %v783_v5 = vpop.xlane.xlu1 %782 }
 0xa93   :  { %vm784_vm12 = vcmp.eq.f32.partialorder %v781_v1, %v783_v5  ;;  %v789_v10 = vcvt.f32.s32 %v783_v5 }
 0xa94   :  { %v785_v8 = vsel %vm784_vm12, %v780_v7, inf }
 0xa95   :  { %786 = vmin.xlane.f32.xlu0 %v785_v8  ;;  %v790_v12 = vshll.u32 %v789_v10, 16 }
 0xaab   :  { %948 = vrot.lane.b32.xlu0 %v937_v9, %s2420_s20 }
 0xb22   :  { %v787_v11 = vpop.xlane.xlu0 %786 }
 0xb23   :  { %v788_v13 = vcvt.f32.s32 %v787_v11 }
 0xb25   :  { %v791_v14 = vadd.s32 %v790_v12, %v788_v13 }
 0xb26   :  { %v949_v28 = vpop.permute.xlu0 %948 }
 0xb27   :  { %1917 = vst.msk [vmem:[%s2859_s10 + $0x2] sm:$0x3] %vm521_vm9, %v791_v14  ;;  %vm794_vm13 = vcmp.eq.s32.totalorder %v2530_v18, %v791_v14 }
 0xb28   :  { %v1918_v15 = vsel %vm794_vm13, 1.0, %v2419_v6 }
 0xb29   :  { %2133 = vmatmul.mubr.msk.f32.vlgmr.msra.gmra.mrb[10].mxu0 %vm231_vm5, %v1918_v15 }
 0xb2a   :  { %2300 = vmatpush3.bf16.msra.mxu0 %v2600_v55  ;;  %2154 = vmatprep.mubr.msk.f32.mxu0 %vm2418_vm0, %v2419_v6 }
 0xb2b   :  { %2301 = vmatprep.subr.bf16.mxu0 %v2417_v3 }
 0xb2e   :  { %2303 = vmatpush3.bf16.msra.mxu0 %v2606_v57 }
 0xb2f   :  { %2307 = vmatprep.subr.bf16.mxu0 %v2417_v3 }
 0xbfc   :  { %v866_v16 = vpop.f32.mrb[10].mxu0 }
 0xbfd   :  { %v867_v17 = vadd.f32 %v866_v16, %v2587_v41  ;;  %v2134_v19 = vpop.f32.mrb[11].mxu0 }
 0xbff   :  { %v940_v21 = vadd.f32 %v937_v9, %v867_v17 }
 0xc01   :  { %v1922_v22 = vmul.f32 -1.442695, %v940_v21 }
 0xc03   :  { %2369 = vpow2.f32 %v1922_v22 }
 0xc0d   :  { %v2370_v23 = vpop.eup %2369 }
 0xc0e   :  { %v944_v25 = vadd.f32 1.0, %v2370_v23 }
 0xc10   :  { %2371 = vrcp.f32 %v944_v25 }
 0xc1a   :  { %v2372_v26 = vpop.eup %2371 }
 0xc1b   :  { %v951_v29 = vmul.f32 %v2372_v26, %v949_v28  ;;  %v958_v34 = vsub.f32 1.0, %v2372_v26  ;;  %v964_v37 = vmul.f32 %v2372_v26, %v2661_v51 }
 0xc1d   :  { %953 = vrot.lane.b32.xlu1 %v951_v29, %s2420_s20 }
 0xc8f   :  { %v954_v31 = vpop.permute.xlu1 %953 }
 0xc90   :  { %v956_v32 = vadd.f32 %v954_v31, %v867_v17 }
 0xc92   :  { %2373 = vtanh.f32 %v956_v32 }
 0xc9c   :  { %v2374_v33 = vpop.eup %2373 }
 0xc9d   :  { %960 = vrot.lane.b32.xlu1 %v2374_v33, %s2421_s29 }
 0xd0f   :  { %v961_v35 = vpop.permute.xlu1 %960 }
 0xd10   :  { %v963_v38 = vmul.f32 %v961_v35, %v958_v34 }
 0xd12   :  { %v2704_v39 = vadd.f32 %v964_v37, %v963_v38 }
 0xd14   :  { %967 = vrot.lane.b32.xlu0 %v2704_v39, %s2421_s29 }
 0xd86   :  { %v968_v40 = vpop.permute.xlu0 %967 }
 0xd87   :  { %2155 = vmatmul.mubr.msk.f32.vlgmr.msra.gmra.mrb[12].mxu0 %vm52_vm1, %v968_v40 }
 0xd88   :  { %2309 = vmatpush3.bf16.msra.mxu0 %v2546_v27  ;;  %2174 = vmatprep.mubr.msk.f32.mxu0 %vm2418_vm0, %v2419_v6 }
 0xd89   :  { %2310 = vmatprep.subr.bf16.mxu0 %v2417_v3 }
 0xd8c   :  { %2312 = vmatpush3.bf16.msra.mxu0 %v2559_v30 }
 0xd8d   :  { %2319 = vmatprep.subr.bf16.mxu0 %v2417_v3 }
 0xd8f   :  { %2175 = vmatmul.mubr.msk.f32.vlgmr.msra.gmra.mrb[14].mxu0 %vm52_vm1, %v968_v40 }
 0xd90   :  { %2321 = vmatpush3.bf16.msra.mxu0 %v2532_v20  ;;  %2194 = vmatprep.mubr.msk.f32.mxu0 %vm2418_vm0, %v2419_v6 }
 0xd91   :  { %2192 = vmatprep.subr.mxu0 %v2419_v6 }
 0xd94   :  { %2193 = vmatpush3.msk.msra.mxu0 %vm235_vm4, %v2542_v24 }
 0xd95   :  { %2328 = vmatprep.subr.bf16.mxu0 %v2417_v3 }
 0xe5a   :  { %v1037_v42 = vpop.f32.mrb[12].mxu0 }
 0xe5b   :  { %v1038_v43 = vadd.f32 %v2635_v2, %v1037_v42  ;;  %v2156_v44 = vpop.f32.mrb[13].mxu0 }
 0xe5d   :  { %1042 = vst.msk [vmem:[#allocation2 + $0x4] sm:$0x3] %vm499_vm6, %v1038_v43  ;;  %v1043_v45 = vsel %vm499_vm6, %v1038_v43, -inf }
 0xe5e   :  { %1044 = vmax.xlane.f32.xlu1 %v1043_v45 }
 0xe62   :  { %v1207_v46 = vpop.f32.mrb[14].mxu0 }
 0xe63   :  { %v2176_v47 = vpop.f32.mrb[15].mxu0  ;;  %v1208_v48 = vadd.f32 %v2580_v36, %v1207_v46 }
 0xe6f   :  { %1219 = vrot.lane.b32.xlu1 %v1208_v48, %s2420_s20 }
 0xeeb   :  { %v1045_v49 = vpop.xlane.xlu1 %1044 }
 0xeec   :  { %vm1046_vm14 = vcmp.eq.f32.partialorder %v1038_v43, %v1045_v49 }
 0xeed   :  { %v1047_v50 = vsel %vm1046_vm14, %v2530_v18, 20 }
 0xeee   :  { %v1048_v51 = vsel %vm499_vm6, %v1047_v50, 2147483647 }
 0xeef   :  { %v1050_v52 = vshra.s32 %v1048_v51, 16  ;;  %v1049_v54 = vand.u32 65535, %v1048_v51  ;;  %v1220_v13 = vpop.permute.xlu1 %1219 }
 0xef1   :  { %v1052_v53 = vcvt.s32.f32 %v1050_v52  ;;  %v1051_v58 = vcvt.s32.f32 %v1049_v54 }
 0xef3   :  { %1053 = vmin.xlane.f32.xlu0 %v1052_v53 }
 0xf80   :  { %v1054_v56 = vpop.xlane.xlu0 %1053 }
 0xf81   :  { %vm1055_vm15 = vcmp.eq.f32.partialorder %v1052_v53, %v1054_v56  ;;  %v1060_v60 = vcvt.f32.s32 %v1054_v56 }
 0xf82   :  { %v1056_v59 = vsel %vm1055_vm15, %v1051_v58, inf }
 0xf83   :  { %1057 = vmin.xlane.f32.xlu0 %v1056_v59  ;;  %v1061_v62 = vshll.u32 %v1060_v60, 16 }
0x1010   :  { %v1058_v61 = vpop.xlane.xlu0 %1057 }
0x1011   :  { %v1059_v63 = vcvt.f32.s32 %v1058_v61 }
0x1013   :  { %v1062_v0 = vadd.s32 %v1061_v62, %v1059_v63 }
0x1015   :  { %1924 = vst.msk [vmem:[%s2859_s10 + $0x4] sm:$0x3] %vm521_vm9, %v1062_v0  ;;  %vm1065_vm2 = vcmp.eq.s32.totalorder %v2530_v18, %v1062_v0 }
0x1016   :  { %v1925_v1 = vsel %vm1065_vm2, 1.0, %v2419_v6 }
0x1017   :  { %2164 = vmatmul.mubr.msk.f32.vlgmr.msra.gmra.mrb[12].mxu1 %vm231_vm5, %v1925_v1 }
0x1018   :  { %2315 = vmatpush3.bf16.msra.mxu1 %v2600_v55  ;;  %2185 = vmatprep.mubr.msk.f32.mxu1 %vm2418_vm0, %v2419_v6 }
0x1019   :  { %2316 = vmatprep.subr.bf16.mxu1 %v2417_v3 }
0x101c   :  { %2318 = vmatpush3.bf16.msra.mxu1 %v2606_v57 }
0x101d   :  { %2322 = vmatprep.subr.bf16.mxu1 %v2417_v3 }
0x10ea   :  { %v1137_v4 = vpop.f32.mrb[12].mxu1 }
0x10eb   :  { %v1138_v5 = vadd.f32 %v1137_v4, %v2587_v41  ;;  %v2165_v7 = vpop.f32.mrb[13].mxu1 }
0x10ed   :  { %v1211_v8 = vadd.f32 %v1208_v48, %v1138_v5 }
0x10ef   :  { %v1929_v9 = vmul.f32 -1.442695, %v1211_v8 }
0x10f1   :  { %2375 = vpow2.f32 %v1929_v9 }
0x10fb   :  { %v2376_v10 = vpop.eup %2375 }
0x10fc   :  { %v1215_v11 = vadd.f32 1.0, %v2376_v10 }
0x10fe   :  { %2377 = vrcp.f32 %v1215_v11 }
0x1108   :  { %v2378_v12 = vpop.eup %2377 }
0x1109   :  { %v1222_v14 = vmul.f32 %v2378_v12, %v1220_v13  ;;  %v1229_v19 = vsub.f32 1.0, %v2378_v12  ;;  %v1235_v22 = vmul.f32 %v2378_v12, %v2704_v39 }
0x110b   :  { %1224 = vrot.lane.b32.xlu0 %v1222_v14, %s2420_s20 }
0x117d   :  { %v1225_v15 = vpop.permute.xlu0 %1224 }
0x117e   :  { %v1227_v16 = vadd.f32 %v1225_v15, %v1138_v5 }
0x1180   :  { %2379 = vtanh.f32 %v1227_v16 }
0x118a   :  { %v2380_v17 = vpop.eup %2379 }
0x118b   :  { %1231 = vrot.lane.b32.xlu1 %v2380_v17, %s2421_s29 }
0x11fd   :  { %v1232_v21 = vpop.permute.xlu1 %1231 }
0x11fe   :  { %v1234_v23 = vmul.f32 %v1232_v21, %v1229_v19 }
0x1200   :  { %v2747_v25 = vadd.f32 %v1235_v22, %v1234_v23 }
0x1202   :  { %1238 = vrot.lane.b32.xlu1 %v2747_v25, %s2421_s29 }
0x1274   :  { %v1239_v26 = vpop.permute.xlu1 %1238 }
0x1275   :  { %2186 = vmatmul.mubr.msk.f32.vlgmr.msra.gmra.mrb[14].mxu1 %vm52_vm1, %v1239_v26 }
0x1276   :  { %2324 = vmatpush3.bf16.msra.mxu1 %v2546_v27  ;;  %2205 = vmatprep.mubr.msk.f32.mxu1 %vm2418_vm0, %v2419_v6 }
0x1277   :  { %2325 = vmatprep.subr.bf16.mxu1 %v2417_v3 }
0x127a   :  { %2327 = vmatpush3.bf16.msra.mxu1 %v2559_v30 }
0x127b   :  { %2334 = vmatprep.subr.bf16.mxu1 %v2417_v3 }
0x127d   :  { %2206 = vmatmul.mubr.msk.f32.vlgmr.msra.gmra.mrb[16].mxu1 %vm52_vm1, %v1239_v26 }
0x127e   :  { %2336 = vmatpush3.bf16.msra.mxu1 %v2532_v20  ;;  %2225 = vmatprep.mubr.msk.f32.mxu1 %vm2418_vm0, %v2419_v6 }
0x127f   :  { %2223 = vmatprep.subr.mxu1 %v2419_v6 }
0x1282   :  { %2224 = vmatpush3.msk.msra.mxu1 %vm235_vm4, %v2542_v24 }
0x1283   :  { %2343 = vmatprep.subr.bf16.mxu1 %v2417_v3 }
0x1348   :  { %v1308_v28 = vpop.f32.mrb[14].mxu1 }
0x1349   :  { %v1309_v29 = vadd.f32 %v2635_v2, %v1308_v28  ;;  %v2187_v31 = vpop.f32.mrb[15].mxu1 }
0x134b   :  { %1313 = vst.msk [vmem:[#allocation2 + $0x6] sm:$0x3] %vm499_vm6, %v1309_v29  ;;  %v1314_v32 = vsel %vm499_vm6, %v1309_v29, -inf }
0x134c   :  { %1315 = vmax.xlane.f32.xlu0 %v1314_v32 }
0x1350   :  { %v1478_v20 = vpop.f32.mrb[16].mxu1 }
0x1351   :  { %v2207_v33 = vpop.f32.mrb[17].mxu1  ;;  %v1479_v44 = vadd.f32 %v2580_v36, %v1478_v20 }
0x13d9   :  { %v1316_v34 = vpop.xlane.xlu0 %1315 }
0x13da   :  { %vm1317_vm3 = vcmp.eq.f32.partialorder %v1309_v29, %v1316_v34 }
0x13db   :  { %v1318_v35 = vsel %vm1317_vm3, %v2530_v18, 20 }
0x13dc   :  { %v1319_v37 = vsel %vm499_vm6, %v1318_v35, 2147483647 }
0x13dd   :  { %v1321_v24 = vshra.s32 %v1319_v37, 16  ;;  %v1320_v39 = vand.u32 65535, %v1319_v37 }
0x13df   :  { %v1323_v38 = vcvt.s32.f32 %v1321_v24  ;;  %v1322_v42 = vcvt.s32.f32 %v1320_v39 }
0x13e1   :  { %1324 = vmin.xlane.f32.xlu1 %v1323_v38 }
0x146e   :  { %v1325_v40 = vpop.xlane.xlu1 %1324 }
0x146f   :  { %vm1326_vm4 = vcmp.eq.f32.partialorder %v1323_v38, %v1325_v40  ;;  %v1331_v45 = vcvt.f32.s32 %v1325_v40 }
0x1470   :  { %v1327_v43 = vsel %vm1326_vm4, %v1322_v42, inf }
0x1471   :  { %1328 = vmin.xlane.f32.xlu0 %v1327_v43  ;;  %v1332_v47 = vshll.u32 %v1331_v45, 16 }
0x1487   :  { %1490 = vrot.lane.b32.xlu0 %v1479_v44, %s2420_s20 }
0x14fe   :  { %v1329_v46 = vpop.xlane.xlu0 %1328 }
0x14ff   :  { %v1330_v48 = vcvt.f32.s32 %v1329_v46 }
0x1501   :  { %v1333_v49 = vadd.s32 %v1332_v47, %v1330_v48 }
0x1502   :  { %v1491_v61 = vpop.permute.xlu0 %1490 }
0x1503   :  { %1931 = vst.msk [vmem:[%s2859_s10 + $0x6] sm:$0x3] %vm521_vm9, %v1333_v49  ;;  %vm1336_vm7 = vcmp.eq.s32.totalorder %v2530_v18, %v1333_v49 }
0x1504   :  { %v1932_v50 = vsel %vm1336_vm7, 1.0, %v2419_v6 }
0x1505   :  { %2195 = vmatmul.mubr.msk.f32.vlgmr.msra.gmra.mrb[16].mxu0 %vm231_vm5, %v1932_v50 }
0x1506   :  { %2330 = vmatpush3.bf16.msra.mxu0 %v2600_v55  ;;  %2216 = vmatprep.mubr.msk.f32.mxu0 %vm2418_vm0, %v2419_v6 }
0x1507   :  { %2331 = vmatprep.subr.bf16.mxu0 %v2417_v3 }
0x150a   :  { %2333 = vmatpush3.bf16.msra.mxu0 %v2606_v57 }
0x150b   :  { %2337 = vmatprep.subr.bf16.mxu0 %v2417_v3 }
0x15d8   :  { %v1408_v51 = vpop.f32.mrb[16].mxu0 }
0x15d9   :  { %v1409_v52 = vadd.f32 %v1408_v51, %v2587_v41  ;;  %v2196_v53 = vpop.f32.mrb[17].mxu0 }
0x15db   :  { %v1482_v54 = vadd.f32 %v1479_v44, %v1409_v52 }
0x15dd   :  { %v1936_v56 = vmul.f32 -1.442695, %v1482_v54 }
0x15df   :  { %2381 = vpow2.f32 %v1936_v56 }
0x15e9   :  { %v2382_v58 = vpop.eup %2381 }
0x15ea   :  { %v1486_v59 = vadd.f32 1.0, %v2382_v58 }
0x15ec   :  { %2383 = vrcp.f32 %v1486_v59 }
0x15f6   :  { %v2384_v60 = vpop.eup %2383 }
0x15f7   :  { %v1493_v62 = vmul.f32 %v2384_v60, %v1491_v61  ;;  %v1500_v4 = vsub.f32 1.0, %v2384_v60  ;;  %v1506_v7 = vmul.f32 %v2384_v60, %v2747_v25 }
0x15f9   :  { %1495 = vrot.lane.b32.xlu1 %v1493_v62, %s2420_s20 }
0x166b   :  { %v1496_v63 = vpop.permute.xlu1 %1495 }
0x166c   :  { %v1498_v0 = vadd.f32 %v1496_v63, %v1409_v52 }
0x166e   :  { %2385 = vtanh.f32 %v1498_v0 }
0x1678   :  { %v2386_v1 = vpop.eup %2385 }
0x1679   :  { %1502 = vrot.lane.b32.xlu1 %v2386_v1, %s2421_s29 }
0x16eb   :  { %v1503_v5 = vpop.permute.xlu1 %1502 }
0x16ec   :  { %v1505_v8 = vmul.f32 %v1503_v5, %v1500_v4 }
0x16ee   :  { %v2790_v9 = vadd.f32 %v1506_v7, %v1505_v8 }
0x16f0   :  { %1509 = vrot.lane.b32.xlu0 %v2790_v9, %s2421_s29 }
0x1762   :  { %v1510_v10 = vpop.permute.xlu0 %1509 }
0x1763   :  { %2217 = vmatmul.mubr.msk.f32.vlgmr.msra.gmra.mrb[18].mxu0 %vm52_vm1, %v1510_v10 }
0x1764   :  { %2339 = vmatpush3.bf16.msra.mxu0 %v2546_v27  ;;  %2236 = vmatprep.mubr.msk.f32.mxu0 %vm2418_vm0, %v2419_v6 }
0x1765   :  { %2340 = vmatprep.subr.bf16.mxu0 %v2417_v3 }
0x1768   :  { %2342 = vmatpush3.bf16.msra.mxu0 %v2559_v30 }
0x176b   :  { %2237 = vmatmul.mubr.msk.f32.vlgmr.msra.gmra.mrb[20].mxu0 %vm52_vm1, %v1510_v10 }
0x1836   :  { %v1579_v11 = vpop.f32.mrb[18].mxu0 }
0x1837   :  { %v1580_v12 = vadd.f32 %v2635_v2, %v1579_v11  ;;  %v2218_v13 = vpop.f32.mrb[19].mxu0 }
0x1839   :  { %1584 = vst.msk [vmem:[#allocation2 + $0x8] sm:$0x3] %vm499_vm6, %v1580_v12  ;;  %v1585_v14 = vsel %vm499_vm6, %v1580_v12, -inf }
0x183a   :  { %1586 = vmax.xlane.f32.xlu1 %v1585_v14 }
0x183e   :  { %v1749_v15 = vpop.f32.mrb[20].mxu0 }
0x183f   :  { %v2238_v27 = vpop.f32.mrb[21].mxu0  ;;  %v1750_v16 = vadd.f32 %v2580_v36, %v1749_v15 }
0x184b   :  { %1761 = vrot.lane.b32.xlu1 %v1750_v16, %s2420_s20 }
0x18c7   :  { %v1587_v17 = vpop.xlane.xlu1 %1586 }
0x18c8   :  { %vm1588_vm8 = vcmp.eq.f32.partialorder %v1580_v12, %v1587_v17 }
0x18c9   :  { %v1589_v30 = vsel %vm1588_vm8, %v2530_v18, 20 }
0x18ca   :  { %v1590_v19 = vsel %vm499_vm6, %v1589_v30, 2147483647 }
0x18cb   :  { %v1592_v21 = vshra.s32 %v1590_v19, 16  ;;  %v1591_v23 = vand.u32 65535, %v1590_v19  ;;  %v1762_v43 = vpop.permute.xlu1 %1761 }
0x18cd   :  { %v1594_v22 = vcvt.s32.f32 %v1592_v21  ;;  %v1593_v26 = vcvt.s32.f32 %v1591_v23 }
0x18cf   :  { %1595 = vmin.xlane.f32.xlu0 %v1594_v22 }
0x195c   :  { %v1596_v25 = vpop.xlane.xlu0 %1595 }
0x195d   :  { %vm1597_vm10 = vcmp.eq.f32.partialorder %v1594_v22, %v1596_v25  ;;  %v1602_v29 = vcvt.f32.s32 %v1596_v25 }
0x195e   :  { %v1598_v28 = vsel %vm1597_vm10, %v1593_v26, inf }
0x195f   :  { %1599 = vmin.xlane.f32.xlu0 %v1598_v28  ;;  %v1603_v36 = vshll.u32 %v1602_v29, 16 }
0x19ec   :  { %v1600_v31 = vpop.xlane.xlu0 %1599 }
0x19ed   :  { %v1601_v32 = vcvt.f32.s32 %v1600_v31 }
0x19ef   :  { %v1604_v20 = vadd.s32 %v1603_v36, %v1601_v32 }
0x19f1   :  { %1938 = vst.msk [vmem:[%s2859_s10 + $0x8] sm:$0x3] %vm521_vm9, %v1604_v20  ;;  %vm1607_vm11 = vcmp.eq.s32.totalorder %v2530_v18, %v1604_v20 }
0x19f2   :  { %v1939_v33 = vsel %vm1607_vm11, 1.0, %v2419_v6 }
0x19f3   :  { %2226 = vmatmul.mubr.msk.f32.vlgmr.msra.gmra.mrb[18].mxu1 %vm231_vm5, %v1939_v33 }
0x19f4   :  { %2345 = vmatpush3.bf16.msra.mxu1 %v2600_v55  ;;  %2247 = vmatprep.mubr.msk.f32.mxu1 %vm2418_vm0, %v2419_v6 }
0x19f5   :  { %2346 = vmatprep.subr.bf16.mxu1 %v2417_v3 }
0x19f8   :  { %2348 = vmatpush3.bf16.msra.mxu1 %v2606_v57 }
0x1ac6   :  { %v1679_v34 = vpop.f32.mrb[18].mxu1 }
0x1ac7   :  { %v1680_v35 = vadd.f32 %v1679_v34, %v2587_v41  ;;  %v2227_v37 = vpop.f32.mrb[19].mxu1 }
0x1ac9   :  { %v1753_v24 = vadd.f32 %v1750_v16, %v1680_v35 }
0x1acb   :  { %v1943_v38 = vmul.f32 -1.442695, %v1753_v24 }
0x1acd   :  { %2387 = vpow2.f32 %v1943_v38 }
0x1ad7   :  { %v2388_v39 = vpop.eup %2387 }
0x1ad8   :  { %v1757_v40 = vadd.f32 1.0, %v2388_v39 }
0x1ada   :  { %2389 = vrcp.f32 %v1757_v40 }
0x1ae4   :  { %v2390_v42 = vpop.eup %2389 }
0x1ae5   :  { %v1764_v55 = vmul.f32 %v2390_v42, %v1762_v43  ;;  %v1771_v57 = vsub.f32 1.0, %v2390_v42  ;;  %v1777_v45 = vmul.f32 %v2390_v42, %v2790_v9 }
0x1ae7   :  { %1766 = vrot.lane.b32.xlu0 %v1764_v55, %s2420_s20 }
0x1b59   :  { %v1767_v6 = vpop.permute.xlu0 %1766 }
0x1b5a   :  { %v1769_v44 = vadd.f32 %v1767_v6, %v1680_v35 }
0x1b5c   :  { %2391 = vtanh.f32 %v1769_v44 }
0x1b66   :  { %v2392_v3 = vpop.eup %2391 }
0x1b67   :  { %1773 = vrot.lane.b32.xlu1 %v2392_v3, %s2421_s29 }
0x1bd9   :  { %v1774_v41 = vpop.permute.xlu1 %1773 }
0x1bda   :  { %v1776_v46 = vmul.f32 %v1774_v41, %v1771_v57 }
0x1bdc   :  { %v1778_v47 = vadd.f32 %v1777_v45, %v1776_v46 }
0x1bde   :  { %1780 = vrot.lane.b32.xlu1 %v1778_v47, %s2421_s29 }
0x1c50   :  { %v1781_v48 = vpop.permute.xlu1 %1780 }
0x1c51   :  { %2248 = vmatmul.mubr.msk.f32.vlgmr.msra.gmra.mrb[20].mxu1 %vm52_vm1, %v1781_v48 }
0x1d24   :  { %v1850_v49 = vpop.f32.mrb[20].mxu1 }
0x1d25   :  { %v1851_v50 = vadd.f32 %v2635_v2, %v1850_v49  ;;  %v2249_v51 = vpop.f32.mrb[21].mxu1 }
0x1d27   :  { %1855 = vst.msk [vmem:[#allocation2 + $0xa] sm:$0x3] %vm499_vm6, %v1851_v50  ;;  %v1856_v52 = vsel %vm499_vm6, %v1851_v50, -inf }
0x1d28   :  { %1857 = vmax.xlane.f32.xlu0 %v1856_v52 }
0x1db5   :  { %v1858_v53 = vpop.xlane.xlu0 %1857 }
0x1db6   :  { %vm1859_vm0 = vcmp.eq.f32.partialorder %v1851_v50, %v1858_v53 }
0x1db7   :  { %v1860_v54 = vsel %vm1859_vm0, %v2530_v18, 20 }
0x1db8   :  { %v1861_v56 = vsel %vm499_vm6, %v1860_v54, 2147483647 }
0x1db9   :  { %v1863_v58 = vshra.s32 %v1861_v56, 16  ;;  %v1862_v60 = vand.u32 65535, %v1861_v56 }
0x1dbb   :  { %v1865_v59 = vcvt.s32.f32 %v1863_v58  ;;  %v1864_v62 = vcvt.s32.f32 %v1862_v60 }
0x1dbd   :  { %1866 = vmin.xlane.f32.xlu1 %v1865_v59 }
0x1e4a   :  { %v1867_v61 = vpop.xlane.xlu1 %1866 }
0x1e4b   :  { %vm1868_vm1 = vcmp.eq.f32.partialorder %v1865_v59, %v1867_v61 }
0x1e4c   :  { %v1869_v2 = vsel %vm1868_vm1, %v1864_v62, inf }
0x1e4d   :  { %1870 = vmin.xlane.f32.xlu0 %v1869_v2 }
0x1e4e   :  { %2404 = shalt.err (!%p2401_p4)
}
0x1e4f   :  { %s2405_s21 = scalar_lea.hbm %s2858_s9, 192 }
0x1e50   :  { %p2406_p5 = scmp.ne.s32.totalorder %s2858_s9, %s2405_s21  ;;  %p2409_p6 = scmp.lt.u32.totalorder %s2405_s21, %s2858_s9 }
0x1e52   :  { %p2411_p7 = pnand %p2409_p6, %p2406_p5 }
0x1e54   :  { %2414 = shalt.err (!%p2411_p7)
}
0x1e55   :  { %s2424_s24 = smov 2   ;;  %v1873_v18 = vcvt.f32.s32 %v1867_v61 }
0x1e56   :  { %1889 = dma.vmem_to_hbm [thread:$0]  %s1884_s4, 192, %s2858_s9, [#allocation3], %s2422_s30, %s2422_s30, %s2424_s24  }
0x1e57   :  { %v1874_v0 = vshll.u32 %v1873_v18, 16 }
0x1eda   :  { %v1871_v63 = vpop.xlane.xlu0 %1870 }
0x1edb   :  { %v1872_v1 = vcvt.f32.s32 %v1871_v63 }
0x1edd   :  { %v1875_v4 = vadd.s32 %v1874_v0, %v1872_v1 }
0x1edf   :  { %1945 = vst.msk [vmem:[%s2859_s10 + $0xa] sm:$0x3] %vm521_vm9, %v1875_v4 }
0x1ee0   :  { %2415 = dma.done.wait [#allocation3], 192  }
0x1ee1   :  { %2416 = vsyncadd [#allocation3], 4294967104 }
0x1ee2   :  { %1897 = vsyncpa [#allocation3], 1 }

// kernel: rnnvae_forward.2
= control target key start
LH: loop header
LB: loop body
LE: loop exit
PB: predicated region body
PF: predicated region fallthrough
CT: control target
= control target key end

     0   :  { %v2434_v0 = vmov 0.0|0.0   ;;  %vm2435_vm0 = vmmov 0   ;;  %v2436_v8 = vmov 0.0   ;;  %s2437_s11 = smov 64   ;;  %s2438_s14 = smov 96   ;;  %vm53_vm1 = vcmask 261120   ;;  %s2879_s2 = inlined_call_operand.vmem [shape: f32[32,96], index: 2, kind: input, shape index: {}]   ;;  %s2880_s4 = inlined_call_operand.vmem [shape: f32[32,96], index: 4, kind: input, shape index: {}]   ;;  %s2881_s3 = inlined_call_operand.vmem [shape: f32[1,96], index: 3, kind: input, shape index: {}]   ;;  %s2882_s5 = inlined_call_operand.vmem [shape: f32[1,96], index: 5, kind: input, shape index: {}]   ;;  %s2883_s0 = inlined_call_operand.vmem [shape: f32[8,2,96], index: 0, kind: input, shape index: {}]   ;;  %s2884_s1 = inlined_call_operand.vmem [shape: f32[8,2,96], index: 1, kind: input, shape index: {}]   ;;  %s2885_s6 = inlined_call_operand.vmem [shape: f32[64,32], index: 6, kind: input, shape index: {}]   ;;  %s2886_s10 = inlined_call_operand.vmem [shape: f32[2,32], index: 10, kind: output, shape index: {1}]   ;;  %s2887_s7 = inlined_call_operand.vmem [shape: f32[1,32], index: 7, kind: input, shape index: {}]   ;;  %s2888_s8 = inlined_call_operand.vmem [shape: f32[2,16], index: 8, kind: input, shape index: {}]   ;;  %s2889_s9 = inlined_call_operand.vmem [shape: f32[2,16], index: 9, kind: output, shape index: {0}]  }
   0x1   :  { %2222 = vmatprep.subr.bf16.mxu0 %v2434_v0  ;;  %v34_v1 = vld [vmem:[%s2879_s2] sm:$0xff]  ;;  %v35_v2 = vld [vmem:[%s2879_s2 + $0x8] sm:$0xff]  ;;  %2228 = vmatprep.subr.bf16.mxu1 %v2434_v0  ;;  %v36_v6 = vld [vmem:[%s2879_s2 + $0x10] sm:$0xff]  ;;  %vm1700_vm2 = vcmask 254976   ;;  %vm1875_vm3 = vcmask 123904  }
   0x2   :  { %v39_v3 = vld [vmem:[%s2880_s4] sm:$0xff]  ;;  %v2506_v4 = vpack.c.bf16 %v35_v2, %v34_v1  ;;  %v40_v5 = vld [vmem:[%s2880_s4 + $0x8] sm:$0xff]  ;;  %v37_v7 = vld [vmem:[%s2879_s2 + $0x18] sm:$0xff]  ;;  %2032 = vmatprep.mubr.msk.f32.mxu0 %vm2435_vm0, %v2436_v8  ;;  %2043 = vmatprep.mubr.msk.f32.mxu1 %vm2435_vm0, %v2436_v8 }
   0x3   :  { %v2521_v9 = vpack.c.bf16 %v40_v5, %v39_v3  ;;  %v41_v10 = vld [vmem:[%s2880_s4 + $0x10] sm:$0xff]  ;;  %v42_v11 = vld [vmem:[%s2880_s4 + $0x18] sm:$0xff]  ;;  %v2530_v12 = vpack.c.bf16 %v37_v7, %v36_v6  ;;  %v2558_v14 = vld [vmem:[%s2881_s3] ss:$0 sm:$0xff] }
   0x4   :  { %2224 = vmatpush3.bf16.msra.mxu0 %v2506_v4  ;;  %v2534_v13 = vpack.c.bf16 %v42_v11, %v41_v10  ;;  %v2563_v16 = vld [vmem:[%s2882_s5] ss:$0 sm:$0xff]  ;;  %v1885_v24 = vld [vmem:[%s2884_s1 + $0xe] sm:$0x3]  ;;  %v1890_v62 = vld [vmem:[%s2883_s0 + $0x2] sm:$0x3] }
   0x5   :  { %2225 = vmatprep.subr.bf16.mxu0 %v2434_v0  ;;  %2230 = vmatpush3.bf16.msra.mxu1 %v2521_v9  ;;  %v44_v22 = vld [vmem:[%s2883_s0] sm:$0x3]  ;;  %v1891_v1 = vld [vmem:[%s2884_s1 + $0xc] sm:$0x3] }
   0x6   :  { %2231 = vmatprep.subr.bf16.mxu1 %v2434_v0 }
   0x8   :  { %2227 = vmatpush3.bf16.msra.mxu0 %v2530_v12 }
   0x9   :  { %2233 = vmatpush3.bf16.msra.mxu1 %v2534_v13  ;;  %2234 = vmatprep.subr.bf16.mxu0 %v2434_v0 }
   0xa   :  { %2240 = vmatprep.subr.bf16.mxu1 %v2434_v0 }
   0xb   :  { %2033 = vmatmul.mubr.f32.vlgmr.msra.gmra.mrb[0].mxu0 %v2436_v8 }
   0xc   :  { %2044 = vmatmul.mubr.f32.vlgmr.msra.gmra.mrb[0].mxu1 %v2436_v8  ;;  %2236 = vmatpush3.bf16.msra.mxu0 %v2506_v4 }
   0xd   :  { %2237 = vmatprep.subr.bf16.mxu0 %v2434_v0  ;;  %2242 = vmatpush3.bf16.msra.mxu1 %v2521_v9 }
   0xe   :  { %2054 = vmatprep.mubr.msk.f32.mxu0 %vm2435_vm0, %v2436_v8  ;;  %2243 = vmatprep.subr.bf16.mxu1 %v2434_v0 }
   0xf   :  { %2065 = vmatprep.mubr.msk.f32.mxu1 %vm2435_vm0, %v2436_v8 }
  0x10   :  { %2239 = vmatpush3.bf16.msra.mxu0 %v2530_v12 }
  0x11   :  { %2245 = vmatpush3.bf16.msra.mxu1 %v2534_v13  ;;  %2246 = vmatprep.subr.bf16.mxu0 %v2434_v0 }
  0x12   :  { %2252 = vmatprep.subr.bf16.mxu1 %v2434_v0 }
  0xde   :  { %v123_v15 = vpop.f32.mrb[0].mxu0 }
  0xdf   :  { %v124_v17 = vadd.f32 %v2558_v14, %v123_v15  ;;  %v2034_v18 = vpop.f32.mrb[1].mxu0  ;;  %v199_v19 = vpop.f32.mrb[0].mxu1 }
  0xe0   :  { %v2045_v20 = vpop.f32.mrb[1].mxu1  ;;  %v200_v21 = vadd.f32 %v2563_v16, %v199_v19 }
  0xe1   :  { %211 = vrot.lane.b32.xlu0 %v124_v17, %s2437_s11  ;;  %v203_v23 = vadd.f32 %v124_v17, %v44_v22 }
  0xe2   :  { %v229_v26 = vadd.f32 %v1885_v24, %v200_v21 }
  0xe3   :  { %v1888_v25 = vmul.f32 -1.442695, %v203_v23 }
  0xe4   :  { %v1889_v27 = vmul.f32 -1.442695, %v229_v26 }
  0xe5   :  { %237 = vrot.lane.b32.xlu0 %v200_v21, %s2437_s11  ;;  %2336 = vpow2.f32 %v1888_v25 }
  0xe6   :  { %2338 = vpow2.f32 %v1889_v27 }
  0xef   :  { %v2337_v28 = vpop.eup %2336 }
  0xf0   :  { %v207_v29 = vadd.f32 1.0, %v2337_v28  ;;  %v2339_v30 = vpop.eup %2338 }
  0xf1   :  { %v233_v31 = vadd.f32 1.0, %v2339_v30 }
  0xf2   :  { %2340 = vrcp.f32 %v207_v29 }
  0xf3   :  { %2342 = vrcp.f32 %v233_v31 }
  0xfc   :  { %v2341_v32 = vpop.eup %2340 }
  0xfd   :  { %v2343_v35 = vpop.eup %2342  ;;  %v221_v44 = vsub.f32 1.0, %v2341_v32  ;;  %v227_v46 = vmul.f32 0.0, %v2341_v32 }
  0xfe   :  { %v247_v49 = vsub.f32 1.0, %v2343_v35  ;;  %v253_v51 = vmul.f32 0.0, %v2343_v35 }
 0x153   :  { %v212_v33 = vpop.permute.xlu0 %211 }
 0x154   :  { %v214_v34 = vmul.f32 %v2341_v32, %v212_v33 }
 0x156   :  { %216 = vrot.lane.b32.xlu1 %v214_v34, %s2437_s11 }
 0x157   :  { %v238_v36 = vpop.permute.xlu0 %237 }
 0x158   :  { %v240_v37 = vmul.f32 %v2343_v35, %v238_v36 }
 0x15a   :  { %242 = vrot.lane.b32.xlu1 %v240_v37, %s2437_s11 }
 0x1c8   :  { %v217_v38 = vpop.permute.xlu1 %216 }
 0x1c9   :  { %v219_v39 = vadd.f32 %v217_v38, %v44_v22 }
 0x1cb   :  { %2344 = vtanh.f32 %v219_v39 }
 0x1cc   :  { %v243_v40 = vpop.permute.xlu1 %242 }
 0x1cd   :  { %v245_v41 = vadd.f32 %v1885_v24, %v243_v40 }
 0x1cf   :  { %2346 = vtanh.f32 %v245_v41 }
 0x1d5   :  { %v2345_v42 = vpop.eup %2344 }
 0x1d6   :  { %223 = vrot.lane.b32.xlu0 %v2345_v42, %s2438_s14 }
 0x1d9   :  { %v2347_v43 = vpop.eup %2346 }
 0x1da   :  { %249 = vrot.lane.b32.xlu1 %v2347_v43, %s2438_s14 }
 0x248   :  { %v224_v45 = vpop.permute.xlu0 %223 }
 0x249   :  { %v226_v47 = vmul.f32 %v224_v45, %v221_v44 }
 0x24b   :  { %v2579_v48 = vadd.f32 %v227_v46, %v226_v47  ;;  %v1896_v46 = vld [vmem:[%s2883_s0 + $0x4] sm:$0x3] }
 0x24c   :  { %v250_v50 = vpop.permute.xlu1 %249 }
 0x24d   :  { %v252_v52 = vmul.f32 %v250_v50, %v247_v49  ;;  %260 = vrot.lane.b32.xlu0 %v2579_v48, %s2438_s14 }
 0x24f   :  { %v2583_v53 = vadd.f32 %v253_v51, %v252_v52 }
 0x251   :  { %335 = vrot.lane.b32.xlu1 %v2583_v53, %s2438_s14 }
 0x2bf   :  { %v261_v54 = vpop.permute.xlu0 %260 }
 0x2c0   :  { %2055 = vmatmul.mubr.msk.f32.vlgmr.msra.gmra.mrb[2].mxu0 %vm53_vm1, %v261_v54 }
 0x2c1   :  { %2248 = vmatpush3.bf16.msra.mxu0 %v2506_v4  ;;  %2076 = vmatprep.mubr.msk.f32.mxu0 %vm2435_vm0, %v2436_v8 }
 0x2c2   :  { %2249 = vmatprep.subr.bf16.mxu0 %v2434_v0 }
 0x2c3   :  { %v336_v55 = vpop.permute.xlu1 %335 }
 0x2c4   :  { %2066 = vmatmul.mubr.msk.f32.vlgmr.msra.gmra.mrb[2].mxu1 %vm53_vm1, %v336_v55 }
 0x2c5   :  { %2251 = vmatpush3.bf16.msra.mxu0 %v2530_v12  ;;  %2254 = vmatpush3.bf16.msra.mxu1 %v2521_v9 }
 0x2c6   :  { %2255 = vmatprep.subr.bf16.mxu1 %v2434_v0  ;;  %2087 = vmatprep.mubr.msk.f32.mxu1 %vm2435_vm0, %v2436_v8 }
 0x2c7   :  { %2258 = vmatprep.subr.bf16.mxu0 %v2434_v0 }
 0x2c9   :  { %2257 = vmatpush3.bf16.msra.mxu1 %v2534_v13 }
 0x2ca   :  { %2264 = vmatprep.subr.bf16.mxu1 %v2434_v0 }
 0x393   :  { %v330_v56 = vpop.f32.mrb[2].mxu0 }
 0x394   :  { %v331_v57 = vadd.f32 %v2558_v14, %v330_v56  ;;  %v2056_v58 = vpop.f32.mrb[3].mxu0 }
 0x396   :  { %417 = vrot.lane.b32.xlu0 %v331_v57, %s2437_s11  ;;  %v409_v63 = vadd.f32 %v1890_v62, %v331_v57 }
 0x397   :  { %v405_v59 = vpop.f32.mrb[2].mxu1 }
 0x398   :  { %v406_v60 = vadd.f32 %v2563_v16, %v405_v59  ;;  %v2067_v61 = vpop.f32.mrb[3].mxu1  ;;  %v1894_v2 = vmul.f32 -1.442695, %v409_v63 }
 0x39a   :  { %443 = vrot.lane.b32.xlu1 %v406_v60, %s2437_s11  ;;  %v435_v3 = vadd.f32 %v1891_v1, %v406_v60  ;;  %2348 = vpow2.f32 %v1894_v2 }
 0x39c   :  { %v1895_v5 = vmul.f32 -1.442695, %v435_v3 }
 0x39e   :  { %2350 = vpow2.f32 %v1895_v5 }
 0x3a4   :  { %v2349_v6 = vpop.eup %2348 }
 0x3a5   :  { %v413_v7 = vadd.f32 1.0, %v2349_v6 }
 0x3a7   :  { %2352 = vrcp.f32 %v413_v7 }
 0x3a8   :  { %v2351_v10 = vpop.eup %2350 }
 0x3a9   :  { %v439_v11 = vadd.f32 1.0, %v2351_v10 }
 0x3ab   :  { %2354 = vrcp.f32 %v439_v11 }
 0x3b1   :  { %v2353_v15 = vpop.eup %2352 }
 0x3b2   :  { %v427_v28 = vsub.f32 1.0, %v2353_v15  ;;  %v433_v30 = vmul.f32 %v2353_v15, %v2579_v48  ;;  %v1897_v48 = vld [vmem:[%s2884_s1 + $0xa] sm:$0x3] }
 0x3b5   :  { %v2355_v19 = vpop.eup %2354 }
 0x3b6   :  { %v453_v33 = vsub.f32 1.0, %v2355_v19  ;;  %v459_v35 = vmul.f32 %v2355_v19, %v2583_v53 }
 0x408   :  { %v418_v17 = vpop.permute.xlu0 %417 }
 0x409   :  { %v420_v18 = vmul.f32 %v2353_v15, %v418_v17 }
 0x40b   :  { %422 = vrot.lane.b32.xlu0 %v420_v18, %s2437_s11 }
 0x40c   :  { %v444_v20 = vpop.permute.xlu1 %443 }
 0x40d   :  { %v446_v21 = vmul.f32 %v2355_v19, %v444_v20 }
 0x40f   :  { %448 = vrot.lane.b32.xlu1 %v446_v21, %s2437_s11 }
 0x47d   :  { %v423_v22 = vpop.permute.xlu0 %422 }
 0x47e   :  { %v425_v23 = vadd.f32 %v1890_v62, %v423_v22 }
 0x480   :  { %2356 = vtanh.f32 %v425_v23 }
 0x481   :  { %v449_v24 = vpop.permute.xlu1 %448 }
 0x482   :  { %v451_v25 = vadd.f32 %v1891_v1, %v449_v24 }
 0x484   :  { %2358 = vtanh.f32 %v451_v25 }
 0x48a   :  { %v2357_v26 = vpop.eup %2356 }
 0x48b   :  { %429 = vrot.lane.b32.xlu0 %v2357_v26, %s2438_s14 }
 0x48e   :  { %v2359_v27 = vpop.eup %2358 }
 0x48f   :  { %455 = vrot.lane.b32.xlu1 %v2359_v27, %s2438_s14 }
 0x4fd   :  { %v430_v29 = vpop.permute.xlu0 %429 }
 0x4fe   :  { %v432_v31 = vmul.f32 %v430_v29, %v427_v28 }
 0x500   :  { %v2616_v32 = vadd.f32 %v433_v30, %v432_v31  ;;  %v1902_v30 = vld [vmem:[%s2883_s0 + $0x6] sm:$0x3] }
 0x501   :  { %v456_v34 = vpop.permute.xlu1 %455 }
 0x502   :  { %v458_v36 = vmul.f32 %v456_v34, %v453_v33  ;;  %466 = vrot.lane.b32.xlu0 %v2616_v32, %s2438_s14 }
 0x504   :  { %v2621_v37 = vadd.f32 %v459_v35, %v458_v36 }
 0x506   :  { %541 = vrot.lane.b32.xlu1 %v2621_v37, %s2438_s14 }
 0x574   :  { %v467_v38 = vpop.permute.xlu0 %466 }
 0x575   :  { %2077 = vmatmul.mubr.msk.f32.vlgmr.msra.gmra.mrb[4].mxu0 %vm53_vm1, %v467_v38 }
 0x576   :  { %2260 = vmatpush3.bf16.msra.mxu0 %v2506_v4  ;;  %2098 = vmatprep.mubr.msk.f32.mxu0 %vm2435_vm0, %v2436_v8 }
 0x577   :  { %2261 = vmatprep.subr.bf16.mxu0 %v2434_v0 }
 0x578   :  { %v542_v39 = vpop.permute.xlu1 %541 }
 0x579   :  { %2088 = vmatmul.mubr.msk.f32.vlgmr.msra.gmra.mrb[4].mxu1 %vm53_vm1, %v542_v39 }
 0x57a   :  { %2263 = vmatpush3.bf16.msra.mxu0 %v2530_v12  ;;  %2266 = vmatpush3.bf16.msra.mxu1 %v2521_v9 }
 0x57b   :  { %2267 = vmatprep.subr.bf16.mxu1 %v2434_v0  ;;  %2109 = vmatprep.mubr.msk.f32.mxu1 %vm2435_vm0, %v2436_v8 }
 0x57c   :  { %2270 = vmatprep.subr.bf16.mxu0 %v2434_v0 }
 0x57e   :  { %2269 = vmatpush3.bf16.msra.mxu1 %v2534_v13 }
 0x57f   :  { %2276 = vmatprep.subr.bf16.mxu1 %v2434_v0 }
 0x648   :  { %v536_v40 = vpop.f32.mrb[4].mxu0 }
 0x649   :  { %v537_v41 = vadd.f32 %v2558_v14, %v536_v40  ;;  %v2078_v42 = vpop.f32.mrb[5].mxu0 }
 0x64b   :  { %623 = vrot.lane.b32.xlu0 %v537_v41, %s2437_s11  ;;  %v615_v47 = vadd.f32 %v1896_v46, %v537_v41 }
 0x64c   :  { %v611_v43 = vpop.f32.mrb[4].mxu1 }
 0x64d   :  { %v612_v44 = vadd.f32 %v2563_v16, %v611_v43  ;;  %v2089_v45 = vpop.f32.mrb[5].mxu1  ;;  %v1900_v49 = vmul.f32 -1.442695, %v615_v47 }
 0x64f   :  { %649 = vrot.lane.b32.xlu1 %v612_v44, %s2437_s11  ;;  %v641_v50 = vadd.f32 %v1897_v48, %v612_v44  ;;  %2360 = vpow2.f32 %v1900_v49 }
 0x651   :  { %v1901_v51 = vmul.f32 -1.442695, %v641_v50 }
 0x653   :  { %2362 = vpow2.f32 %v1901_v51 }
 0x659   :  { %v2361_v52 = vpop.eup %2360 }
 0x65a   :  { %v619_v53 = vadd.f32 1.0, %v2361_v52 }
 0x65c   :  { %2364 = vrcp.f32 %v619_v53 }
 0x65d   :  { %v2363_v54 = vpop.eup %2362 }
 0x65e   :  { %v645_v55 = vadd.f32 1.0, %v2363_v54 }
 0x660   :  { %2366 = vrcp.f32 %v645_v55 }
 0x666   :  { %v2365_v56 = vpop.eup %2364 }
 0x667   :  { %v633_v6 = vsub.f32 1.0, %v2365_v56  ;;  %v639_v10 = vmul.f32 %v2365_v56, %v2616_v32  ;;  %v1903_v32 = vld [vmem:[%s2884_s1 + $0x8] sm:$0x3] }
 0x66a   :  { %v2367_v59 = vpop.eup %2366 }
 0x66b   :  { %v659_v17 = vsub.f32 1.0, %v2367_v59  ;;  %v665_v19 = vmul.f32 %v2367_v59, %v2621_v37 }
 0x6bd   :  { %v624_v57 = vpop.permute.xlu0 %623 }
 0x6be   :  { %v626_v58 = vmul.f32 %v2365_v56, %v624_v57 }
 0x6c0   :  { %628 = vrot.lane.b32.xlu0 %v626_v58, %s2437_s11 }
 0x6c1   :  { %v650_v60 = vpop.permute.xlu1 %649 }
 0x6c2   :  { %v652_v61 = vmul.f32 %v2367_v59, %v650_v60 }
 0x6c4   :  { %654 = vrot.lane.b32.xlu1 %v652_v61, %s2437_s11 }
 0x732   :  { %v629_v62 = vpop.permute.xlu0 %628 }
 0x733   :  { %v631_v63 = vadd.f32 %v1896_v46, %v629_v62 }
 0x735   :  { %2368 = vtanh.f32 %v631_v63 }
 0x736   :  { %v655_v1 = vpop.permute.xlu1 %654 }
 0x737   :  { %v657_v2 = vadd.f32 %v1897_v48, %v655_v1 }
 0x739   :  { %2370 = vtanh.f32 %v657_v2 }
 0x73f   :  { %v2369_v3 = vpop.eup %2368 }
 0x740   :  { %635 = vrot.lane.b32.xlu0 %v2369_v3, %s2438_s14 }
 0x743   :  { %v2371_v5 = vpop.eup %2370 }
 0x744   :  { %661 = vrot.lane.b32.xlu1 %v2371_v5, %s2438_s14 }
 0x7b2   :  { %v636_v7 = vpop.permute.xlu0 %635 }
 0x7b3   :  { %v638_v11 = vmul.f32 %v636_v7, %v633_v6 }
 0x7b5   :  { %v2654_v15 = vadd.f32 %v639_v10, %v638_v11  ;;  %v1908_v10 = vld [vmem:[%s2883_s0 + $0x8] sm:$0x3] }
 0x7b6   :  { %v662_v18 = vpop.permute.xlu1 %661 }
 0x7b7   :  { %v664_v20 = vmul.f32 %v662_v18, %v659_v17  ;;  %672 = vrot.lane.b32.xlu0 %v2654_v15, %s2438_s14 }
 0x7b9   :  { %v2659_v21 = vadd.f32 %v665_v19, %v664_v20 }
 0x7bb   :  { %747 = vrot.lane.b32.xlu1 %v2659_v21, %s2438_s14 }
 0x829   :  { %v673_v22 = vpop.permute.xlu0 %672 }
 0x82a   :  { %2099 = vmatmul.mubr.msk.f32.vlgmr.msra.gmra.mrb[6].mxu0 %vm53_vm1, %v673_v22 }
 0x82b   :  { %2272 = vmatpush3.bf16.msra.mxu0 %v2506_v4  ;;  %2120 = vmatprep.mubr.msk.f32.mxu0 %vm2435_vm0, %v2436_v8 }
 0x82c   :  { %2273 = vmatprep.subr.bf16.mxu0 %v2434_v0 }
 0x82d   :  { %v748_v23 = vpop.permute.xlu1 %747 }
 0x82e   :  { %2110 = vmatmul.mubr.msk.f32.vlgmr.msra.gmra.mrb[6].mxu1 %vm53_vm1, %v748_v23 }
 0x82f   :  { %2275 = vmatpush3.bf16.msra.mxu0 %v2530_v12  ;;  %2278 = vmatpush3.bf16.msra.mxu1 %v2521_v9 }
 0x830   :  { %2279 = vmatprep.subr.bf16.mxu1 %v2434_v0  ;;  %2131 = vmatprep.mubr.msk.f32.mxu1 %vm2435_vm0, %v2436_v8 }
 0x831   :  { %2282 = vmatprep.subr.bf16.mxu0 %v2434_v0 }
 0x833   :  { %2281 = vmatpush3.bf16.msra.mxu1 %v2534_v13 }
 0x834   :  { %2288 = vmatprep.subr.bf16.mxu1 %v2434_v0 }
 0x8fd   :  { %v742_v24 = vpop.f32.mrb[6].mxu0 }
 0x8fe   :  { %v743_v25 = vadd.f32 %v2558_v14, %v742_v24  ;;  %v2100_v26 = vpop.f32.mrb[7].mxu0 }
 0x900   :  { %829 = vrot.lane.b32.xlu0 %v743_v25, %s2437_s11  ;;  %v821_v31 = vadd.f32 %v1902_v30, %v743_v25 }
 0x901   :  { %v817_v27 = vpop.f32.mrb[6].mxu1 }
 0x902   :  { %v818_v28 = vadd.f32 %v2563_v16, %v817_v27  ;;  %v2111_v29 = vpop.f32.mrb[7].mxu1  ;;  %v1906_v33 = vmul.f32 -1.442695, %v821_v31 }
 0x904   :  { %855 = vrot.lane.b32.xlu1 %v818_v28, %s2437_s11  ;;  %v847_v34 = vadd.f32 %v1903_v32, %v818_v28  ;;  %2372 = vpow2.f32 %v1906_v33 }
 0x906   :  { %v1907_v35 = vmul.f32 -1.442695, %v847_v34 }
 0x908   :  { %2374 = vpow2.f32 %v1907_v35 }
 0x90e   :  { %v2373_v36 = vpop.eup %2372 }
 0x90f   :  { %v825_v37 = vadd.f32 1.0, %v2373_v36 }
 0x911   :  { %2376 = vrcp.f32 %v825_v37 }
 0x912   :  { %v2375_v38 = vpop.eup %2374 }
 0x913   :  { %v851_v39 = vadd.f32 1.0, %v2375_v38 }
 0x915   :  { %2378 = vrcp.f32 %v851_v39 }
 0x91b   :  { %v2377_v40 = vpop.eup %2376 }
 0x91c   :  { %v839_v52 = vsub.f32 1.0, %v2377_v40  ;;  %v845_v54 = vmul.f32 %v2377_v40, %v2654_v15  ;;  %v1909_v15 = vld [vmem:[%s2884_s1 + $0x6] sm:$0x3] }
 0x91f   :  { %v2379_v43 = vpop.eup %2378 }
 0x920   :  { %v865_v57 = vsub.f32 1.0, %v2379_v43  ;;  %v871_v59 = vmul.f32 %v2379_v43, %v2659_v21 }
 0x972   :  { %v830_v41 = vpop.permute.xlu0 %829 }
 0x973   :  { %v832_v42 = vmul.f32 %v2377_v40, %v830_v41 }
 0x975   :  { %834 = vrot.lane.b32.xlu0 %v832_v42, %s2437_s11 }
 0x976   :  { %v856_v44 = vpop.permute.xlu1 %855 }
 0x977   :  { %v858_v45 = vmul.f32 %v2379_v43, %v856_v44 }
 0x979   :  { %860 = vrot.lane.b32.xlu1 %v858_v45, %s2437_s11 }
 0x9e7   :  { %v835_v46 = vpop.permute.xlu0 %834 }
 0x9e8   :  { %v837_v47 = vadd.f32 %v1902_v30, %v835_v46 }
 0x9ea   :  { %2380 = vtanh.f32 %v837_v47 }
 0x9eb   :  { %v861_v48 = vpop.permute.xlu1 %860 }
 0x9ec   :  { %v863_v49 = vadd.f32 %v1903_v32, %v861_v48 }
 0x9ee   :  { %2382 = vtanh.f32 %v863_v49 }
 0x9f4   :  { %v2381_v50 = vpop.eup %2380 }
 0x9f5   :  { %841 = vrot.lane.b32.xlu0 %v2381_v50, %s2438_s14 }
 0x9f8   :  { %v2383_v51 = vpop.eup %2382 }
 0x9f9   :  { %867 = vrot.lane.b32.xlu1 %v2383_v51, %s2438_s14 }
 0xa67   :  { %v842_v53 = vpop.permute.xlu0 %841 }
 0xa68   :  { %v844_v55 = vmul.f32 %v842_v53, %v839_v52 }
 0xa6a   :  { %v2692_v56 = vadd.f32 %v845_v54, %v844_v55  ;;  %v1914_v54 = vld [vmem:[%s2883_s0 + $0xa] sm:$0x3] }
 0xa6b   :  { %v868_v58 = vpop.permute.xlu1 %867 }
 0xa6c   :  { %v870_v60 = vmul.f32 %v868_v58, %v865_v57  ;;  %878 = vrot.lane.b32.xlu0 %v2692_v56, %s2438_s14 }
 0xa6e   :  { %v2697_v61 = vadd.f32 %v871_v59, %v870_v60 }
 0xa70   :  { %953 = vrot.lane.b32.xlu1 %v2697_v61, %s2438_s14 }
 0xade   :  { %v879_v62 = vpop.permute.xlu0 %878 }
 0xadf   :  { %2121 = vmatmul.mubr.msk.f32.vlgmr.msra.gmra.mrb[8].mxu0 %vm53_vm1, %v879_v62 }
 0xae0   :  { %2284 = vmatpush3.bf16.msra.mxu0 %v2506_v4  ;;  %2142 = vmatprep.mubr.msk.f32.mxu0 %vm2435_vm0, %v2436_v8 }
 0xae1   :  { %2285 = vmatprep.subr.bf16.mxu0 %v2434_v0 }
 0xae2   :  { %v954_v63 = vpop.permute.xlu1 %953 }
 0xae3   :  { %2132 = vmatmul.mubr.msk.f32.vlgmr.msra.gmra.mrb[8].mxu1 %vm53_vm1, %v954_v63 }
 0xae4   :  { %2287 = vmatpush3.bf16.msra.mxu0 %v2530_v12  ;;  %2290 = vmatpush3.bf16.msra.mxu1 %v2521_v9 }
 0xae5   :  { %2291 = vmatprep.subr.bf16.mxu1 %v2434_v0  ;;  %2153 = vmatprep.mubr.msk.f32.mxu1 %vm2435_vm0, %v2436_v8 }
 0xae6   :  { %2294 = vmatprep.subr.bf16.mxu0 %v2434_v0 }
 0xae8   :  { %2293 = vmatpush3.bf16.msra.mxu1 %v2534_v13 }
 0xae9   :  { %2300 = vmatprep.subr.bf16.mxu1 %v2434_v0 }
 0xbb2   :  { %v948_v1 = vpop.f32.mrb[8].mxu0 }
 0xbb3   :  { %v949_v2 = vadd.f32 %v2558_v14, %v948_v1  ;;  %v2122_v3 = vpop.f32.mrb[9].mxu0 }
 0xbb5   :  { %1035 = vrot.lane.b32.xlu0 %v949_v2, %s2437_s11  ;;  %v1027_v11 = vadd.f32 %v1908_v10, %v949_v2 }
 0xbb6   :  { %v1023_v5 = vpop.f32.mrb[8].mxu1 }
 0xbb7   :  { %v1024_v6 = vadd.f32 %v2563_v16, %v1023_v5  ;;  %v2133_v7 = vpop.f32.mrb[9].mxu1  ;;  %v1912_v17 = vmul.f32 -1.442695, %v1027_v11 }
 0xbb9   :  { %1061 = vrot.lane.b32.xlu1 %v1024_v6, %s2437_s11  ;;  %v1053_v18 = vadd.f32 %v1909_v15, %v1024_v6  ;;  %2384 = vpow2.f32 %v1912_v17 }
 0xbbb   :  { %v1913_v19 = vmul.f32 -1.442695, %v1053_v18 }
 0xbbd   :  { %2386 = vpow2.f32 %v1913_v19 }
 0xbc3   :  { %v2385_v20 = vpop.eup %2384 }
 0xbc4   :  { %v1031_v21 = vadd.f32 1.0, %v2385_v20 }
 0xbc6   :  { %2388 = vrcp.f32 %v1031_v21 }
 0xbc7   :  { %v2387_v22 = vpop.eup %2386 }
 0xbc8   :  { %v1057_v23 = vadd.f32 1.0, %v2387_v22 }
 0xbca   :  { %2390 = vrcp.f32 %v1057_v23 }
 0xbd0   :  { %v2389_v24 = vpop.eup %2388 }
 0xbd1   :  { %v1045_v36 = vsub.f32 1.0, %v2389_v24  ;;  %v1051_v38 = vmul.f32 %v2389_v24, %v2692_v56  ;;  %v1915_v56 = vld [vmem:[%s2884_s1 + $0x4] sm:$0x3] }
 0xbd4   :  { %v2391_v27 = vpop.eup %2390 }
 0xbd5   :  { %v1071_v41 = vsub.f32 1.0, %v2391_v27  ;;  %v1077_v43 = vmul.f32 %v2391_v27, %v2697_v61 }
 0xc27   :  { %v1036_v25 = vpop.permute.xlu0 %1035 }
 0xc28   :  { %v1038_v26 = vmul.f32 %v2389_v24, %v1036_v25 }
 0xc2a   :  { %1040 = vrot.lane.b32.xlu0 %v1038_v26, %s2437_s11 }
 0xc2b   :  { %v1062_v28 = vpop.permute.xlu1 %1061 }
 0xc2c   :  { %v1064_v29 = vmul.f32 %v2391_v27, %v1062_v28 }
 0xc2e   :  { %1066 = vrot.lane.b32.xlu1 %v1064_v29, %s2437_s11 }
 0xc9c   :  { %v1041_v30 = vpop.permute.xlu0 %1040 }
 0xc9d   :  { %v1043_v31 = vadd.f32 %v1908_v10, %v1041_v30 }
 0xc9f   :  { %2392 = vtanh.f32 %v1043_v31 }
 0xca0   :  { %v1067_v32 = vpop.permute.xlu1 %1066 }
 0xca1   :  { %v1069_v33 = vadd.f32 %v1909_v15, %v1067_v32 }
 0xca3   :  { %2394 = vtanh.f32 %v1069_v33 }
 0xca9   :  { %v2393_v34 = vpop.eup %2392 }
 0xcaa   :  { %1047 = vrot.lane.b32.xlu0 %v2393_v34, %s2438_s14 }
 0xcad   :  { %v2395_v35 = vpop.eup %2394 }
 0xcae   :  { %1073 = vrot.lane.b32.xlu1 %v2395_v35, %s2438_s14  ;;  %v1920_v35 = vld [vmem:[%s2883_s0 + $0xc] sm:$0x3] }
 0xd1c   :  { %v1048_v37 = vpop.permute.xlu0 %1047 }
 0xd1d   :  { %v1050_v39 = vmul.f32 %v1048_v37, %v1045_v36 }
 0xd1f   :  { %v2730_v40 = vadd.f32 %v1051_v38, %v1050_v39 }
 0xd20   :  { %v1074_v42 = vpop.permute.xlu1 %1073 }
 0xd21   :  { %v1076_v44 = vmul.f32 %v1074_v42, %v1071_v41  ;;  %1084 = vrot.lane.b32.xlu0 %v2730_v40, %s2438_s14 }
 0xd23   :  { %v2735_v45 = vadd.f32 %v1077_v43, %v1076_v44 }
 0xd25   :  { %1159 = vrot.lane.b32.xlu1 %v2735_v45, %s2438_s14 }
 0xd93   :  { %v1085_v46 = vpop.permute.xlu0 %1084 }
 0xd94   :  { %2143 = vmatmul.mubr.msk.f32.vlgmr.msra.gmra.mrb[10].mxu0 %vm53_vm1, %v1085_v46 }
 0xd95   :  { %2296 = vmatpush3.bf16.msra.mxu0 %v2506_v4  ;;  %2164 = vmatprep.mubr.msk.f32.mxu0 %vm2435_vm0, %v2436_v8 }
 0xd96   :  { %2297 = vmatprep.subr.bf16.mxu0 %v2434_v0 }
 0xd97   :  { %v1160_v47 = vpop.permute.xlu1 %1159 }
 0xd98   :  { %2154 = vmatmul.mubr.msk.f32.vlgmr.msra.gmra.mrb[10].mxu1 %vm53_vm1, %v1160_v47 }
 0xd99   :  { %2299 = vmatpush3.bf16.msra.mxu0 %v2530_v12  ;;  %2302 = vmatpush3.bf16.msra.mxu1 %v2521_v9 }
 0xd9a   :  { %2303 = vmatprep.subr.bf16.mxu1 %v2434_v0  ;;  %2175 = vmatprep.mubr.msk.f32.mxu1 %vm2435_vm0, %v2436_v8 }
 0xd9b   :  { %2306 = vmatprep.subr.bf16.mxu0 %v2434_v0 }
 0xd9d   :  { %2305 = vmatpush3.bf16.msra.mxu1 %v2534_v13 }
 0xd9e   :  { %2312 = vmatprep.subr.bf16.mxu1 %v2434_v0 }
 0xe67   :  { %v1154_v48 = vpop.f32.mrb[10].mxu0 }
 0xe68   :  { %v1155_v49 = vadd.f32 %v2558_v14, %v1154_v48  ;;  %v2144_v50 = vpop.f32.mrb[11].mxu0 }
 0xe6a   :  { %1241 = vrot.lane.b32.xlu0 %v1155_v49, %s2437_s11  ;;  %v1233_v55 = vadd.f32 %v1914_v54, %v1155_v49 }
 0xe6b   :  { %v1229_v51 = vpop.f32.mrb[10].mxu1 }
 0xe6c   :  { %v1230_v52 = vadd.f32 %v2563_v16, %v1229_v51  ;;  %v2155_v53 = vpop.f32.mrb[11].mxu1  ;;  %v1918_v57 = vmul.f32 -1.442695, %v1233_v55 }
 0xe6e   :  { %1267 = vrot.lane.b32.xlu1 %v1230_v52, %s2437_s11  ;;  %v1259_v58 = vadd.f32 %v1915_v56, %v1230_v52  ;;  %2396 = vpow2.f32 %v1918_v57 }
 0xe70   :  { %v1919_v59 = vmul.f32 -1.442695, %v1259_v58 }
 0xe72   :  { %2398 = vpow2.f32 %v1919_v59 }
 0xe78   :  { %v2397_v60 = vpop.eup %2396 }
 0xe79   :  { %v1237_v61 = vadd.f32 1.0, %v2397_v60 }
 0xe7b   :  { %2400 = vrcp.f32 %v1237_v61 }
 0xe7c   :  { %v2399_v62 = vpop.eup %2398 }
 0xe7d   :  { %v1263_v63 = vadd.f32 1.0, %v2399_v62 }
 0xe7f   :  { %2402 = vrcp.f32 %v1263_v63 }
 0xe85   :  { %v2401_v1 = vpop.eup %2400 }
 0xe86   :  { %v1251_v20 = vsub.f32 1.0, %v2401_v1  ;;  %v1257_v22 = vmul.f32 %v2401_v1, %v2730_v40 }
 0xe89   :  { %v2403_v5 = vpop.eup %2402 }
 0xe8a   :  { %v1277_v25 = vsub.f32 1.0, %v2403_v5  ;;  %v1283_v27 = vmul.f32 %v2403_v5, %v2735_v45 }
 0xedc   :  { %v1242_v2 = vpop.permute.xlu0 %1241 }
 0xedd   :  { %v1244_v3 = vmul.f32 %v2401_v1, %v1242_v2 }
 0xedf   :  { %1246 = vrot.lane.b32.xlu0 %v1244_v3, %s2437_s11 }
 0xee0   :  { %v1268_v6 = vpop.permute.xlu1 %1267 }
 0xee1   :  { %v1270_v7 = vmul.f32 %v2403_v5, %v1268_v6 }
 0xee3   :  { %1272 = vrot.lane.b32.xlu1 %v1270_v7, %s2437_s11 }
 0xf51   :  { %v1247_v10 = vpop.permute.xlu0 %1246 }
 0xf52   :  { %v1249_v11 = vadd.f32 %v1914_v54, %v1247_v10 }
 0xf54   :  { %2404 = vtanh.f32 %v1249_v11 }
 0xf55   :  { %v1273_v15 = vpop.permute.xlu1 %1272 }
 0xf56   :  { %v1275_v17 = vadd.f32 %v1915_v56, %v1273_v15 }
 0xf58   :  { %2406 = vtanh.f32 %v1275_v17 }
 0xf5e   :  { %v2405_v18 = vpop.eup %2404 }
 0xf5f   :  { %1253 = vrot.lane.b32.xlu0 %v2405_v18, %s2438_s14  ;;  %v1926_v18 = vld [vmem:[%s2883_s0 + $0xe] sm:$0x3] }
 0xf62   :  { %v2407_v19 = vpop.eup %2406 }
 0xf63   :  { %1279 = vrot.lane.b32.xlu1 %v2407_v19, %s2438_s14 }
 0xfd1   :  { %v1254_v21 = vpop.permute.xlu0 %1253 }
 0xfd2   :  { %v1256_v23 = vmul.f32 %v1254_v21, %v1251_v20 }
 0xfd4   :  { %v2768_v24 = vadd.f32 %v1257_v22, %v1256_v23 }
 0xfd5   :  { %v1280_v26 = vpop.permute.xlu1 %1279 }
 0xfd6   :  { %v1282_v28 = vmul.f32 %v1280_v26, %v1277_v25  ;;  %1290 = vrot.lane.b32.xlu0 %v2768_v24, %s2438_s14 }
 0xfd8   :  { %v2773_v29 = vadd.f32 %v1283_v27, %v1282_v28 }
 0xfda   :  { %1365 = vrot.lane.b32.xlu1 %v2773_v29, %s2438_s14 }
0x1048   :  { %v1291_v30 = vpop.permute.xlu0 %1290 }
0x1049   :  { %2165 = vmatmul.mubr.msk.f32.vlgmr.msra.gmra.mrb[12].mxu0 %vm53_vm1, %v1291_v30 }
0x104a   :  { %2308 = vmatpush3.bf16.msra.mxu0 %v2506_v4  ;;  %2186 = vmatprep.mubr.msk.f32.mxu0 %vm2435_vm0, %v2436_v8 }
0x104b   :  { %2309 = vmatprep.subr.bf16.mxu0 %v2434_v0 }
0x104c   :  { %v1366_v31 = vpop.permute.xlu1 %1365 }
0x104d   :  { %2176 = vmatmul.mubr.msk.f32.vlgmr.msra.gmra.mrb[12].mxu1 %vm53_vm1, %v1366_v31 }
0x104e   :  { %2311 = vmatpush3.bf16.msra.mxu0 %v2530_v12  ;;  %2314 = vmatpush3.bf16.msra.mxu1 %v2521_v9 }
0x104f   :  { %2315 = vmatprep.subr.bf16.mxu1 %v2434_v0  ;;  %2197 = vmatprep.mubr.msk.f32.mxu1 %vm2435_vm0, %v2436_v8 }
0x1050   :  { %2318 = vmatprep.subr.bf16.mxu0 %v2434_v0 }
0x1052   :  { %2317 = vmatpush3.bf16.msra.mxu1 %v2534_v13  ;;  %v1921_v13 = vld [vmem:[%s2884_s1 + $0x2] sm:$0x3] }
0x1053   :  { %2324 = vmatprep.subr.bf16.mxu1 %v2434_v0 }
0x111c   :  { %v1360_v4 = vpop.f32.mrb[12].mxu0 }
0x111d   :  { %v1361_v32 = vadd.f32 %v2558_v14, %v1360_v4  ;;  %v2166_v33 = vpop.f32.mrb[13].mxu0 }
0x111f   :  { %1447 = vrot.lane.b32.xlu0 %v1361_v32, %s2437_s11  ;;  %v1439_v36 = vadd.f32 %v1920_v35, %v1361_v32 }
0x1120   :  { %v1435_v12 = vpop.f32.mrb[12].mxu1 }
0x1121   :  { %v1436_v9 = vadd.f32 %v2563_v16, %v1435_v12  ;;  %v2177_v34 = vpop.f32.mrb[13].mxu1  ;;  %v1924_v37 = vmul.f32 -1.442695, %v1439_v36  ;;  %v1702_v12 = vld [vmem:[%s2885_s6] sm:$0xff]  ;;  %v1707_v36 = vld [vmem:[%s2885_s6 + $0x28] sm:$0xff] }
0x1122   :  { %v1706_v34 = vld [vmem:[%s2885_s6 + $0x20] sm:$0xff] }
0x1123   :  { %1473 = vrot.lane.b32.xlu1 %v1436_v9, %s2437_s11  ;;  %v1465_v38 = vadd.f32 %v1921_v13, %v1436_v9  ;;  %2408 = vpow2.f32 %v1924_v37  ;;  %v1703_v9 = vld [vmem:[%s2885_s6 + $0x8] sm:$0xff]  ;;  %v1705_v37 = vld [vmem:[%s2885_s6 + $0x18] sm:$0xff] }
0x1125   :  { %v1925_v39 = vmul.f32 -1.442695, %v1465_v38  ;;  %v2319_v38 = vpack.c.bf16 %v1707_v36, %v1706_v34 }
0x1127   :  { %2410 = vpow2.f32 %v1925_v39 }
0x112d   :  { %v2409_v40 = vpop.eup %2408 }
0x112e   :  { %v1443_v41 = vadd.f32 1.0, %v2409_v40 }
0x1130   :  { %2412 = vrcp.f32 %v1443_v41 }
0x1131   :  { %v2411_v42 = vpop.eup %2410 }
0x1132   :  { %v1469_v43 = vadd.f32 1.0, %v2411_v42  ;;  %v1708_v42 = vld [vmem:[%s2885_s6 + $0x30] sm:$0xff] }
0x1134   :  { %2414 = vrcp.f32 %v1469_v43  ;;  %v1709_v43 = vld [vmem:[%s2885_s6 + $0x38] sm:$0xff] }
0x113a   :  { %v2413_v44 = vpop.eup %2412 }
0x113b   :  { %v1457_v56 = vsub.f32 1.0, %v2413_v44  ;;  %v1463_v58 = vmul.f32 %v2413_v44, %v2768_v24 }
0x113e   :  { %v2415_v47 = vpop.eup %2414 }
0x113f   :  { %v1483_v61 = vsub.f32 1.0, %v2415_v47  ;;  %v1489_v63 = vmul.f32 %v2415_v47, %v2773_v29 }
0x1191   :  { %v1448_v45 = vpop.permute.xlu0 %1447 }
0x1192   :  { %v1450_v46 = vmul.f32 %v2413_v44, %v1448_v45  ;;  %v2322_v44 = vpack.c.bf16 %v1709_v43, %v1708_v42 }
0x1194   :  { %1452 = vrot.lane.b32.xlu0 %v1450_v46, %s2437_s11 }
0x1195   :  { %v1474_v48 = vpop.permute.xlu1 %1473 }
0x1196   :  { %v1476_v49 = vmul.f32 %v2415_v47, %v1474_v48 }
0x1198   :  { %1478 = vrot.lane.b32.xlu1 %v1476_v49, %s2437_s11 }
0x1206   :  { %v1453_v50 = vpop.permute.xlu0 %1452 }
0x1207   :  { %v1455_v51 = vadd.f32 %v1920_v35, %v1453_v50  ;;  %v2325_v35 = vpack.c.bf16 %v1703_v9, %v1702_v12 }
0x1209   :  { %2416 = vtanh.f32 %v1455_v51 }
0x120a   :  { %v1479_v52 = vpop.permute.xlu1 %1478 }
0x120b   :  { %v1481_v53 = vadd.f32 %v1921_v13, %v1479_v52  ;;  %v1704_v13 = vld [vmem:[%s2885_s6 + $0x10] sm:$0xff] }
0x120c   :  { %v2328_v40 = vpack.c.bf16 %v1705_v37, %v1704_v13 }
0x120d   :  { %2418 = vtanh.f32 %v1481_v53 }
0x1213   :  { %v2417_v54 = vpop.eup %2416 }
0x1214   :  { %1459 = vrot.lane.b32.xlu0 %v2417_v54, %s2438_s14 }
0x1217   :  { %v2419_v55 = vpop.eup %2418 }
0x1218   :  { %1485 = vrot.lane.b32.xlu1 %v2419_v55, %s2438_s14 }
0x1286   :  { %v1460_v57 = vpop.permute.xlu0 %1459 }
0x1287   :  { %v1462_v59 = vmul.f32 %v1460_v57, %v1457_v56 }
0x1289   :  { %v2806_v60 = vadd.f32 %v1463_v58, %v1462_v59  ;;  %v1933_v59 = vld [vmem:[%s2887_s7] ss:$0 sm:$0xff] }
0x128a   :  { %v1486_v62 = vpop.permute.xlu1 %1485 }
0x128b   :  { %v1488_v1 = vmul.f32 %v1486_v62, %v1483_v61  ;;  %1495 = vrot.lane.b32.xlu0 %v2806_v60, %s2438_s14 }
0x128d   :  { %v2811_v2 = vadd.f32 %v1489_v63, %v1488_v1 }
0x128f   :  { %1570 = vrot.lane.b32.xlu1 %v2811_v2, %s2438_s14 }
0x12fd   :  { %v1496_v3 = vpop.permute.xlu0 %1495 }
0x12fe   :  { %2187 = vmatmul.mubr.msk.f32.vlgmr.msra.gmra.mrb[14].mxu0 %vm53_vm1, %v1496_v3  ;;  %v1865_v3 = vld [vmem:[%s2888_s8] sm:$0x3] }
0x12ff   :  { %2208 = vmatprep.mubr.msk.f32.mxu0 %vm2435_vm0, %v2436_v8  ;;  %2320 = vmatpush3.bf16.msra.mxu0 %v2319_v38 }
0x1300   :  { %2321 = vmatprep.subr.bf16.mxu0 %v2434_v0 }
0x1301   :  { %v1571_v5 = vpop.permute.xlu1 %1570 }
0x1302   :  { %2198 = vmatmul.mubr.msk.f32.vlgmr.msra.gmra.mrb[14].mxu1 %vm53_vm1, %v1571_v5 }
0x1303   :  { %2219 = vmatprep.mubr.msk.f32.mxu1 %vm2435_vm0, %v2436_v8  ;;  %v1493_v8 = vld [vmem:[%s2884_s1] sm:$0x3]  ;;  %2326 = vmatpush3.bf16.msra.mxu1 %v2325_v35 }
0x1304   :  { %2327 = vmatprep.subr.bf16.mxu1 %v2434_v0  ;;  %2323 = vmatpush3.bf16.msra.mxu0 %v2322_v44 }
0x1307   :  { %2329 = vmatpush3.bf16.msra.mxu1 %v2328_v40 }
0x13d1   :  { %v1565_v6 = vpop.f32.mrb[14].mxu0 }
0x13d2   :  { %v1566_v7 = vadd.f32 %v2558_v14, %v1565_v6  ;;  %v2188_v10 = vpop.f32.mrb[15].mxu0 }
0x13d4   :  { %1652 = vrot.lane.b32.xlu0 %v1566_v7, %s2437_s11  ;;  %v1644_v19 = vadd.f32 %v1926_v18, %v1566_v7 }
0x13d5   :  { %v1640_v11 = vpop.f32.mrb[14].mxu1 }
0x13d6   :  { %v1641_v15 = vadd.f32 %v2563_v16, %v1640_v11  ;;  %v2199_v17 = vpop.f32.mrb[15].mxu1  ;;  %v1929_v20 = vmul.f32 -1.442695, %v1644_v19 }
0x13d8   :  { %1678 = vrot.lane.b32.xlu1 %v1641_v15, %s2437_s11  ;;  %v1670_v14 = vadd.f32 %v1641_v15, %v1493_v8  ;;  %2420 = vpow2.f32 %v1929_v20 }
0x13da   :  { %v1930_v21 = vmul.f32 -1.442695, %v1670_v14 }
0x13dc   :  { %2422 = vpow2.f32 %v1930_v21 }
0x13e2   :  { %v2421_v22 = vpop.eup %2420 }
0x13e3   :  { %v1648_v23 = vadd.f32 1.0, %v2421_v22 }
0x13e5   :  { %2424 = vrcp.f32 %v1648_v23 }
0x13e6   :  { %v2423_v16 = vpop.eup %2422 }
0x13e7   :  { %v1674_v24 = vadd.f32 1.0, %v2423_v16 }
0x13e9   :  { %2426 = vrcp.f32 %v1674_v24 }
0x13ef   :  { %v2425_v25 = vpop.eup %2424 }
0x13f0   :  { %v1662_v45 = vsub.f32 1.0, %v2425_v25  ;;  %v1668_v47 = vmul.f32 %v2425_v25, %v2806_v60 }
0x13f3   :  { %v2427_v28 = vpop.eup %2426 }
0x13f4   :  { %v1688_v49 = vsub.f32 1.0, %v2427_v28  ;;  %v1694_v51 = vmul.f32 %v2427_v28, %v2811_v2 }
0x1446   :  { %v1653_v26 = vpop.permute.xlu0 %1652 }
0x1447   :  { %v1655_v27 = vmul.f32 %v2425_v25, %v1653_v26 }
0x1449   :  { %1657 = vrot.lane.b32.xlu0 %v1655_v27, %s2437_s11 }
0x144a   :  { %v1679_v29 = vpop.permute.xlu1 %1678 }
0x144b   :  { %v1681_v30 = vmul.f32 %v2427_v28, %v1679_v29 }
0x144d   :  { %1683 = vrot.lane.b32.xlu1 %v1681_v30, %s2437_s11 }
0x14bb   :  { %v1658_v31 = vpop.permute.xlu0 %1657 }
0x14bc   :  { %v1660_v4 = vadd.f32 %v1926_v18, %v1658_v31 }
0x14be   :  { %2428 = vtanh.f32 %v1660_v4 }
0x14bf   :  { %v1684_v32 = vpop.permute.xlu1 %1683 }
0x14c0   :  { %v1686_v33 = vadd.f32 %v1684_v32, %v1493_v8 }
0x14c2   :  { %2430 = vtanh.f32 %v1686_v33 }
0x14c8   :  { %v2429_v39 = vpop.eup %2428 }
0x14c9   :  { %1664 = vrot.lane.b32.xlu0 %v2429_v39, %s2438_s14 }
0x14cc   :  { %v2431_v41 = vpop.eup %2430 }
0x14cd   :  { %1690 = vrot.lane.b32.xlu1 %v2431_v41, %s2438_s14 }
0x153b   :  { %v1665_v46 = vpop.permute.xlu0 %1664 }
0x153c   :  { %v1667_v48 = vmul.f32 %v1665_v46, %v1662_v45 }
0x153e   :  { %v1669_v0 = vadd.f32 %v1668_v47, %v1667_v48 }
0x153f   :  { %v1691_v50 = vpop.permute.xlu1 %1690 }
0x1540   :  { %v1693_v52 = vmul.f32 %v1691_v50, %v1688_v49  ;;  %1697 = vrot.lane.b32.xlu0 %v1669_v0, %s2438_s14 }
0x1542   :  { %v1695_v53 = vadd.f32 %v1694_v51, %v1693_v52 }
0x1544   :  { %1711 = vrot.lane.b32.xlu1 %v1695_v53, %s2438_s14 }
0x15b2   :  { %v1698_v54 = vpop.permute.xlu0 %1697 }
0x15b3   :  { %1701 = vst.msk [vmem:[%s2886_s10] sm:$0x3] %vm1700_vm2, %v1698_v54  ;;  %2220 = vmatmul.mubr.msk.f32.vlgmr.msra.gmra.mrb[16].mxu1 %vm53_vm1, %v1698_v54  ;;  %s2439_s10 = smov 112  }
0x15b6   :  { %v1712_v55 = vpop.permute.xlu1 %1711 }
0x15b7   :  { %2209 = vmatmul.mubr.msk.f32.vlgmr.msra.gmra.mrb[16].mxu0 %vm53_vm1, %v1712_v55 }
0x1686   :  { %v1853_v56 = vpop.f32.mrb[16].mxu1 }
0x1687   :  { %v2221_v57 = vpop.f32.mrb[17].mxu1 }
0x168a   :  { %v1781_v58 = vpop.f32.mrb[16].mxu0 }
0x168b   :  { %v1854_v60 = vadd.f32 %v1853_v56, %v1781_v58  ;;  %v2210_v61 = vpop.f32.mrb[17].mxu0 }
0x168d   :  { %v1864_v62 = vadd.f32 %v1933_v59, %v1854_v60 }
0x168f   :  { %v1866_v63 = vmul.f32 0.5, %v1864_v62 }
0x1691   :  { %v1867_v1 = vmul.f32 1.442695, %v1866_v63 }
0x1693   :  { %2432 = vpow2.f32 %v1867_v1 }
0x169d   :  { %v2433_v2 = vpop.eup %2432 }
0x169e   :  { %1870 = vrot.lane.b32.xlu0 %v2433_v2, %s2439_s10 }
0x1710   :  { %v1871_v5 = vpop.permute.xlu0 %1870 }
0x1711   :  { %v1873_v6 = vmul.f32 %v1871_v5, %v1865_v3 }
0x1713   :  { %v1874_v7 = vadd.f32 %v1873_v6, %v1864_v62 }
0x1715   :  { %1876 = vst.msk [vmem:[%s2889_s9] sm:$0x3] %vm1875_vm3, %v1874_v7 }

</bundles_post_ra>
